<compile_context>
chip_gen: v7x
topology: tpu7x:2x2x1
jax: 0.10.0
libtpu: 0.0.40
codegen_flags: <defaults>
</compile_context>

<pallas_src>
import functools

import jax
import jax.numpy as jnp
from jax.experimental import pallas as pl
from jax.experimental.pallas import tpu as pltpu

LANE = 128


def _round_up(v, m):
    return ((v + m - 1) // m) * m


# ----------------------------- Pallas kernels --------------------------------

def _rgcn_layer_agg_kernel(adj_ref, xs_ref, xr_ref, w_ref, wroot_ref, b_ref,
                           o_ref, h_ref, acc_ref, *, num_relations, fin, apply_relu):
    """Aggregate-first layer tile (Fout >= Fin).

    Grid: (row_tile i [parallel], src_chunk k [arbitrary]).

    adj_ref   : (R, tm, tk)      bf16 normalized adjacency tiles (all relations)
    xs_ref    : (tk, Fin)        bf16 source-node feature chunk
    xr_ref    : (tm, Fin)        bf16 destination rows (root/self term)
    w_ref     : (R*Fin, Fout)    f32 relation-stacked projection weights
    wroot_ref : (Fin, Fout)      bf16 root weight
    b_ref     : (1, Fout)        f32 bias
    o_ref     : (tm, Fout)       output block (bf16 hidden / f32 final), written at last k
    h_ref     : (tm, R*Fin)      f32 scratch: per-relation aggregation, accumulated over k
    acc_ref   : (tm, Fout)       f32 scratch: root term + bias
    """
    k = pl.program_id(1)

    @pl.when(k == 0)
    def _init():
        h_ref[...] = jnp.zeros_like(h_ref)
        acc_ref[...] = (
            jnp.dot(xr_ref[...], wroot_ref[...], preferred_element_type=jnp.float32)
            + b_ref[...]
        )

    xs = xs_ref[...]  # loaded once, reused for every relation (bf16 straight to the MXU)
    for r in range(num_relations):  # static unroll; small R
        h_ref[:, r * fin:(r + 1) * fin] += jnp.dot(
            adj_ref[r], xs, preferred_element_type=jnp.float32)

    @pl.when(k == pl.num_programs(1) - 1)
    def _finalize():
        out = acc_ref[...] + jnp.dot(h_ref[...], w_ref[...],
                                     preferred_element_type=jnp.float32)
        if apply_relu:
            out = jnp.maximum(out, 0.0)
        o_ref[...] = out.astype(o_ref.dtype)


def _rgcn_layer_proj_kernel(adj_ref, xw_ref, xr_ref, wroot_ref, b_ref,
                            o_ref, acc_ref, *, num_relations, apply_relu):
    """Project-first layer tile (Fout < Fin); xw = x @ W_r is pre-computed in XLA.

    adj_ref   : (R, tm, tk)   bf16 normalized adjacency tiles
    xw_ref    : (R, tk, Fout) bf16 pre-projected source features
    xr_ref    : (tm, Fin)     bf16 destination rows (root term)
    wroot_ref : (Fin, Fout)   bf16 root weight
    b_ref     : (1, Fout)     f32 bias
    o_ref     : (tm, Fout)    output block, written at last k
    acc_ref   : (tm, Fout)    f32 accumulator scratch
    """
    k = pl.program_id(1)

    @pl.when(k == 0)
    def _init():
        acc_ref[...] = (
            jnp.dot(xr_ref[...], wroot_ref[...], preferred_element_type=jnp.float32)
            + b_ref[...]
        )

    acc = acc_ref[...]
    for r in range(num_relations):  # static unroll; bf16 x bf16 -> f32 MXU accumulation
        acc += jnp.dot(adj_ref[r], xw_ref[r], preferred_element_type=jnp.float32)
    acc_ref[...] = acc

    @pl.when(k == pl.num_programs(1) - 1)
    def _finalize():
        out = acc_ref[...]
        if apply_relu:
            out = jnp.maximum(out, 0.0)
        o_ref[...] = out.astype(o_ref.dtype)


# ------------------------------ layer wrappers --------------------------------

def _pre_project(x_bf16, w_f32):
    """xw[r] = x @ W_r, computed once in XLA (outside the kernel), emitted bf16."""
    xw = jnp.einsum("nf,rfo->rno", x_bf16.astype(jnp.float32), w_f32,
                    precision=jax.lax.Precision.HIGHEST)
    return xw.astype(jnp.bfloat16)


def rgcn_layer(adj, x, w, w_root, bias, *, project_first, apply_relu,
               out_dtype=jnp.float32, tm=256, tk=256,
               vmem_limit_bytes=40 * 1024 * 1024):
    """One RGCN layer on padded operands.

    adj    : [R, Np, Np]  normalized adjacency (cast to bf16)
    x      : [Np, Fin]    node features (cast to bf16)
    w      : [R, Fin, Fout] f32 relation weights
    w_root : [Fin, Fout]  root weight
    bias   : [Fout]
    Np must be divisible by tm and tk; Fin/Fout must be lane multiples (or full dims).
    """
    R, Np, _ = adj.shape
    fin = x.shape[1]
    fout = w.shape[2]
    tm = min(tm, Np)
    tk = min(tk, Np)
    assert Np % tm == 0 and Np % tk == 0

    adj = adj.astype(jnp.bfloat16)
    x = x.astype(jnp.bfloat16)
    wroot_bf = w_root.astype(jnp.bfloat16)
    bias2d = bias.reshape(1, fout).astype(jnp.float32)

    grid = (Np // tm, Np // tk)
    compiler_params = pltpu.CompilerParams(
        # row-tile axis shards across TensorCores (v7x megacore); reduction (k) last.
        dimension_semantics=("parallel", "arbitrary"),
        vmem_limit_bytes=vmem_limit_bytes,  # <= ~48 MiB keeps headroom on v7x (64 MiB)
    )

    if project_first:
        xw = _pre_project(x, w)  # [R, Np, Fout] bf16, computed once (not per row tile)
        kernel = functools.partial(_rgcn_layer_proj_kernel,
                                   num_relations=R, apply_relu=apply_relu)
        return pl.pallas_call(
            kernel,
            out_shape=jax.ShapeDtypeStruct((Np, fout), out_dtype),
            grid_spec=pltpu.PrefetchScalarGridSpec(
                num_scalar_prefetch=0,
                grid=grid,
                in_specs=[
                    pl.BlockSpec((R, tm, tk), lambda i, k: (0, i, k)),    # adjacency
                    pl.BlockSpec((R, tk, fout), lambda i, k: (0, k, 0)),  # pre-projected xw
                    pl.BlockSpec((tm, fin), lambda i, k: (i, 0)),         # root rows
                    pl.BlockSpec((fin, fout), lambda i, k: (0, 0)),       # W_root
                    pl.BlockSpec((1, fout), lambda i, k: (0, 0)),         # bias
                ],
                out_specs=pl.BlockSpec((tm, fout), lambda i, k: (i, 0)),
                scratch_shapes=[pltpu.VMEM((tm, fout), jnp.float32)],
            ),
            compiler_params=compiler_params,
        )(adj, xw, x, wroot_bf, bias2d)

    # aggregate-first path
    w_stacked = w.astype(jnp.float32).reshape(R * fin, fout)
    kernel = functools.partial(_rgcn_layer_agg_kernel,
                               num_relations=R, fin=fin, apply_relu=apply_relu)
    return pl.pallas_call(
        kernel,
        out_shape=jax.ShapeDtypeStruct((Np, fout), out_dtype),
        grid_spec=pltpu.PrefetchScalarGridSpec(
            num_scalar_prefetch=0,
            grid=grid,
            in_specs=[
                pl.BlockSpec((R, tm, tk), lambda i, k: (0, i, k)),      # adjacency
                pl.BlockSpec((tk, fin), lambda i, k: (k, 0)),           # source features
                pl.BlockSpec((tm, fin), lambda i, k: (i, 0)),           # root rows
                pl.BlockSpec((R * fin, fout), lambda i, k: (0, 0)),     # stacked W_r
                pl.BlockSpec((fin, fout), lambda i, k: (0, 0)),         # W_root
                pl.BlockSpec((1, fout), lambda i, k: (0, 0)),           # bias
            ],
            out_specs=pl.BlockSpec((tm, fout), lambda i, k: (i, 0)),
            scratch_shapes=[pltpu.VMEM((tm, R * fin), jnp.float32),     # h accumulator
                            pltpu.VMEM((tm, fout), jnp.float32)],       # root + bias
        ),
        compiler_params=compiler_params,
    )(adj, x, x, w_stacked, wroot_bf, bias2d)


def rgcn_layer_reference(adj, x, w, w_root, bias, *, project_first, apply_relu):
    """Plain-JAX layer mirroring the kernel's operand dtypes (bf16 adjacency/features,
    f32 accumulation). Used for per-layer correctness checks."""
    hi = jax.lax.Precision.HIGHEST
    adj_f = adj.astype(jnp.bfloat16).astype(jnp.float32)
    x_bf = x.astype(jnp.bfloat16)
    x_f = x_bf.astype(jnp.float32)
    root = jnp.dot(x_f, w_root.astype(jnp.bfloat16).astype(jnp.float32), precision=hi)
    root = root + bias.astype(jnp.float32)
    if project_first:
        xw = _pre_project(x_bf, w).astype(jnp.float32)  # identical bf16 rounding as kernel feed
        agg = jnp.einsum("rnm,rmo->no", adj_f, xw, precision=hi)
    else:
        h = jnp.einsum("rnm,mf->rnf", adj_f, x_f, precision=hi)
        agg = jnp.einsum("rnf,rfo->no", h, w.astype(jnp.float32), precision=hi)
    out = agg + root
    if apply_relu:
        out = jnp.maximum(out, 0.0)
    return out


# ------------------------------ plain-JAX glue -------------------------------

def build_norm_adj(edge_index, edge_type, num_nodes, num_relations):
    """Dense per-relation adjacency with mean normalization over incoming edges."""
    src, dst = edge_index[0], edge_index[1]
    adj = jnp.zeros((num_relations, num_nodes, num_nodes), jnp.float32)
    adj = adj.at[edge_type, dst, src].add(1.0)
    deg = adj.sum(axis=-1, keepdims=True)
    return adj / jnp.maximum(deg, 1.0)


def init_params(key, in_channels, out_channels, num_relations, hidden, max_depth=2):
    """Deterministic glorot-uniform style init matching RGCNConv parameter shapes."""
    dims = []
    for i in range(max_depth):
        if i == 0:
            dims.append((in_channels, hidden))
        elif i + 1 == max_depth:
            dims.append((hidden, out_channels))
        else:
            dims.append((hidden, hidden))

    params = []
    for (fin, fout) in dims:
        key, k1, k2 = jax.random.split(key, 3)
        s = (6.0 / (fin + fout)) ** 0.5
        w = jax.random.uniform(k1, (num_relations, fin, fout), jnp.float32, -s, s)
        w_root = jax.random.uniform(k2, (fin, fout), jnp.float32, -s, s)
        bias = jnp.zeros((fout,), jnp.float32)
        params.append(dict(weight=w, root=w_root, bias=bias))
    return params


def _pick_node_tiling(num_nodes):
    """(padded node count, square node tile). Tile always divides the padded count."""
    if num_nodes <= 128:
        n_pad = _round_up(num_nodes, 16)
        return n_pad, n_pad            # single block; block dims == full array dims
    n_pad = _round_up(num_nodes, LANE)
    # 256 tiles amortize per-step overhead well; raise toward 512/Np on v6e-sized VMEM.
    tile = 256 if n_pad % 256 == 0 else 128
    return n_pad, min(tile, n_pad)


def rgcn_net_forward(params, data, num_relations, *, validate=False):
    """Mirrors RGCN_Net.forward for a (x, edge_index, edge_type) tuple.

    With validate=True, each layer is checked against a plain-JAX reference computed
    from the exact same (bf16) layer input.
    """
    x, edge_index, edge_type = data
    N, in_channels = x.shape
    out_channels = params[-1]["root"].shape[1]

    # normalized adjacency, stored bf16 (dominant HBM operand -> half the bytes moved)
    adj = build_norm_adj(edge_index, edge_type, N, num_relations).astype(jnp.bfloat16)

    n_pad, tile = _pick_node_tiling(N)
    adj_p = jnp.pad(adj, ((0, 0), (0, n_pad - N), (0, n_pad - N)))

    fin0_p = _round_up(in_channels, LANE)
    x_p = jnp.pad(x.astype(jnp.bfloat16), ((0, n_pad - N), (0, fin0_p - in_channels)))

    n_layers = len(params)
    for i, p in enumerate(params):
        fin, fout = p["root"].shape
        fin_p, fout_p = _round_up(fin, LANE), _round_up(fout, LANE)
        w_p = jnp.pad(p["weight"], ((0, 0), (0, fin_p - fin), (0, fout_p - fout)))
        wr_p = jnp.pad(p["root"], ((0, fin_p - fin), (0, fout_p - fout)))
        b_p = jnp.pad(p["bias"], (0, fout_p - fout))

        is_last = (i + 1 == n_layers)
        project_first = fout < fin                      # UNPADDED dims (perf feedback)
        out_dtype = jnp.float32 if is_last else jnp.bfloat16   # bf16 hidden activations
        # dropout p=0.0 -> identity; ReLU fused into the kernel for non-final layers
        y = rgcn_layer(adj_p, x_p, w_p, wr_p, b_p,
                       project_first=project_first, apply_relu=not is_last,
                       out_dtype=out_dtype, tm=tile, tk=tile)

        if validate:
            y_ref = rgcn_layer_reference(adj_p, x_p, w_p, wr_p, b_p,
                                         project_first=project_first,
                                         apply_relu=not is_last)
            y32 = y.astype(jnp.float32)
            err = float(jnp.max(jnp.abs(y32 - y_ref)))
            if is_last:
                ok = bool(jnp.allclose(y32, y_ref, atol=1e-3, rtol=1e-3))
            else:
                # hidden output is rounded to bf16 (<= 0.5 ulp ~ 0.4% relative)
                ok = bool(jnp.allclose(y32, y_ref, atol=1e-3, rtol=1e-2))
            assert ok, f"layer {i} mismatch, max abs err {err}"

        x_p = y

    return x_p[:N, :out_channels]


# ---------------------------------- main -------------------------------------

if __name__ == "__main__":
    # Small synthetic graph, sized so the node tiling is exercised (grid = 2x2 per layer).
    NUM_NODES = 512
    IN_CHANNELS = 16
    HIDDEN = 64
    OUT_CHANNELS = 8
    NUM_RELATIONS = 3
    NUM_EDGES = 2048

    key = jax.random.PRNGKey(0)
    kx, ke_src, ke_dst, ke_typ, kp = jax.random.split(key, 5)

    x = jax.random.normal(kx, (NUM_NODES, IN_CHANNELS), jnp.float32)
    src = jax.random.randint(ke_src, (NUM_EDGES,), 0, NUM_NODES)
    dst = jax.random.randint(ke_dst, (NUM_EDGES,), 0, NUM_NODES)
    edge_index = jnp.stack([src, dst], axis=0)                 # [2, E]
    edge_type = jax.random.randint(ke_typ, (NUM_EDGES,), 0, NUM_RELATIONS)

    params = init_params(kp, IN_CHANNELS, OUT_CHANNELS, NUM_RELATIONS,
                         hidden=HIDDEN, max_depth=2)

    data = (x, edge_index, edge_type)
    # layer 0 is aggregate-first (16 -> 64), layer 1 is project-first (64 -> 8),
    # so both kernel paths run and are validated against the plain-JAX reference.
    out = jax.block_until_ready(
        rgcn_net_forward(params, data, NUM_RELATIONS, validate=True))

    assert out.shape == (NUM_NODES, OUT_CHANNELS)
    assert out.dtype == jnp.float32

    print("KERNEL_OK")
</pallas_src>

<mosaic_0001>
module attributes {stable_mosaic.version = 11 : i64} {
  func.func @_rgcn_layer_agg_kernel(%arg0: i32, %arg1: i32, %arg2: memref<3x256x256xbf16, #tpu.memory_space<vmem>>, %arg3: memref<256x128xbf16, #tpu.memory_space<vmem>>, %arg4: memref<256x128xbf16, #tpu.memory_space<vmem>>, %arg5: memref<384x128xf32, #tpu.memory_space<vmem>>, %arg6: memref<128x128xbf16, #tpu.memory_space<vmem>>, %arg7: memref<1x128xf32, #tpu.memory_space<vmem>>, %arg8: memref<256x128xbf16, #tpu.memory_space<vmem>>, %arg9: memref<256x384xf32, #tpu.memory_space<vmem>>, %arg10: memref<256x128xf32, #tpu.memory_space<vmem>>) attributes {dimension_semantics = [#tpu.dimension_semantics<parallel>, #tpu.dimension_semantics<arbitrary>], iteration_bounds = array<i64: 2, 2>, scalar_prefetch = 0 : i64, scratch_operands = 2 : i64, tpu.core_type = #tpu.core_type<tc>, window_params = [{transform_indices = @transform_0, window_bounds = array<i64: 3, 256, 256>}, {transform_indices = @transform_1, window_bounds = array<i64: 256, 128>}, {transform_indices = @transform_2, window_bounds = array<i64: 256, 128>}, {pipeline_mode = #tpu.pipeline_mode<synchronous>, transform_indices = @transform_3, window_bounds = array<i64: 384, 128>}, {pipeline_mode = #tpu.pipeline_mode<synchronous>, transform_indices = @transform_4, window_bounds = array<i64: 128, 128>}, {pipeline_mode = #tpu.pipeline_mode<synchronous>, transform_indices = @transform_5, window_bounds = array<i64: 1, 128>}, {transform_indices = @transform_6, window_bounds = array<i64: 256, 128>}]} {
    %c0_i32 = arith.constant 0 : i32
    %0 = arith.cmpi eq, %arg1, %c0_i32 : i32
    %1 = arith.extui %0 : i1 to i32
    %c0_i32_0 = arith.constant 0 : i32
    %2 = arith.cmpi ne, %1, %c0_i32_0 : i32
    scf.if %2 {
      %cst_22 = arith.constant 0.000000e+00 : f32
      %25 = vector.broadcast %cst_22 : f32 to vector<256x384xf32>
      %c0_23 = arith.constant 0 : index
      %c0_24 = arith.constant 0 : index
      %26 = vector.load %arg9[%c0_23, %c0_24] : memref<256x384xf32, #tpu.memory_space<vmem>>, vector<256x384xf32>
      tpu.vector_store %arg9[%c0_23, %c0_24], %25 {strides = array<i32>} : memref<256x384xf32, #tpu.memory_space<vmem>>, vector<256x384xf32>,
      %c0_25 = arith.constant 0 : index
      %c0_26 = arith.constant 0 : index
      %27 = vector.load %arg4[%c0_25, %c0_26] : memref<256x128xbf16, #tpu.memory_space<vmem>>, vector<256x128xbf16>
      %c0_27 = arith.constant 0 : index
      %c0_28 = arith.constant 0 : index
      %28 = vector.load %arg6[%c0_27, %c0_28] : memref<128x128xbf16, #tpu.memory_space<vmem>>, vector<128x128xbf16>
      %cst_29 = arith.constant dense<0.000000e+00> : vector<256x128xf32>
      %29 = tpu.matmul %27, %28, %cst_29 {dimension_numbers = #tpu.dot_dimension_numbers<[1], [0], [0], [1], [0, 0, 1, 1], [], []>} : vector<256x128xbf16>, vector<128x128xbf16>, vector<256x128xf32> -> vector<256x128xf32>
      %c0_30 = arith.constant 0 : index
      %c0_31 = arith.constant 0 : index
      %30 = vector.load %arg7[%c0_30, %c0_31] : memref<1x128xf32, #tpu.memory_space<vmem>>, vector<1x128xf32>
      %31 = vector.broadcast %30 : vector<1x128xf32> to vector<256x128xf32>
      %32 = arith.addf %29, %31 : vector<256x128xf32>
      %c0_32 = arith.constant 0 : index
      %c0_33 = arith.constant 0 : index
      %33 = vector.load %arg10[%c0_32, %c0_33] : memref<256x128xf32, #tpu.memory_space<vmem>>, vector<256x128xf32>
      tpu.vector_store %arg10[%c0_32, %c0_33], %32 {strides = array<i32>} : memref<256x128xf32, #tpu.memory_space<vmem>>, vector<256x128xf32>,
    } else {
    }
    %c0 = arith.constant 0 : index
    %c0_1 = arith.constant 0 : index
    %3 = vector.load %arg3[%c0, %c0_1] : memref<256x128xbf16, #tpu.memory_space<vmem>>, vector<256x128xbf16>
    %c0_2 = arith.constant 0 : index
    %c0_3 = arith.constant 0 : index
    %4 = vector.load %arg9[%c0_2, %c0_3] : memref<256x384xf32, #tpu.memory_space<vmem>>, vector<256x128xf32>
    %c0_4 = arith.constant 0 : index
    %c0_5 = arith.constant 0 : index
    %c0_6 = arith.constant 0 : index
    %5 = vector.load %arg2[%c0_4, %c0_5, %c0_6] : memref<3x256x256xbf16, #tpu.memory_space<vmem>>, vector<1x256x256xbf16>
    %6 = vector.shape_cast %5 : vector<1x256x256xbf16> to vector<256x256xbf16>
    %cst = arith.constant dense<0.000000e+00> : vector<256x128xf32>
    %7 = tpu.matmul %6, %3, %cst {dimension_numbers = #tpu.dot_dimension_numbers<[1], [0], [0], [1], [0, 0, 1, 1], [], []>} : vector<256x256xbf16>, vector<256x128xbf16>, vector<256x128xf32> -> vector<256x128xf32>
    %8 = arith.addf %4, %7 : vector<256x128xf32>
    %c0_7 = arith.constant 0 : index
    %c0_8 = arith.constant 0 : index
    %9 = vector.load %arg9[%c0_7, %c0_8] : memref<256x384xf32, #tpu.memory_space<vmem>>, vector<256x128xf32>
    tpu.vector_store %arg9[%c0_7, %c0_8], %8 {strides = array<i32>} : memref<256x384xf32, #tpu.memory_space<vmem>>, vector<256x128xf32>,
    %c0_9 = arith.constant 0 : index
    %c128 = arith.constant 128 : index
    %10 = vector.load %arg9[%c0_9, %c128] : memref<256x384xf32, #tpu.memory_space<vmem>>, vector<256x128xf32>
    %c1 = arith.constant 1 : index
    %c0_10 = arith.constant 0 : index
    %c0_11 = arith.constant 0 : index
    %11 = vector.load %arg2[%c1, %c0_10, %c0_11] : memref<3x256x256xbf16, #tpu.memory_space<vmem>>, vector<1x256x256xbf16>
    %12 = vector.shape_cast %11 : vector<1x256x256xbf16> to vector<256x256xbf16>
    %cst_12 = arith.constant dense<0.000000e+00> : vector<256x128xf32>
    %13 = tpu.matmul %12, %3, %cst_12 {dimension_numbers = #tpu.dot_dimension_numbers<[1], [0], [0], [1], [0, 0, 1, 1], [], []>} : vector<256x256xbf16>, vector<256x128xbf16>, vector<256x128xf32> -> vector<256x128xf32>
    %14 = arith.addf %10, %13 : vector<256x128xf32>
    %c0_13 = arith.constant 0 : index
    %c128_14 = arith.constant 128 : index
    %15 = vector.load %arg9[%c0_13, %c128_14] : memref<256x384xf32, #tpu.memory_space<vmem>>, vector<256x128xf32>
    tpu.vector_store %arg9[%c0_13, %c128_14], %14 {strides = array<i32>} : memref<256x384xf32, #tpu.memory_space<vmem>>, vector<256x128xf32>,
    %c0_15 = arith.constant 0 : index
    %c256 = arith.constant 256 : index
    %16 = vector.load %arg9[%c0_15, %c256] : memref<256x384xf32, #tpu.memory_space<vmem>>, vector<256x128xf32>
    %c2 = arith.constant 2 : index
    %c0_16 = arith.constant 0 : index
    %c0_17 = arith.constant 0 : index
    %17 = vector.load %arg2[%c2, %c0_16, %c0_17] : memref<3x256x256xbf16, #tpu.memory_space<vmem>>, vector<1x256x256xbf16>
    %18 = vector.shape_cast %17 : vector<1x256x256xbf16> to vector<256x256xbf16>
    %cst_18 = arith.constant dense<0.000000e+00> : vector<256x128xf32>
    %19 = tpu.matmul %18, %3, %cst_18 {dimension_numbers = #tpu.dot_dimension_numbers<[1], [0], [0], [1], [0, 0, 1, 1], [], []>} : vector<256x256xbf16>, vector<256x128xbf16>, vector<256x128xf32> -> vector<256x128xf32>
    %20 = arith.addf %16, %19 : vector<256x128xf32>
    %c0_19 = arith.constant 0 : index
    %c256_20 = arith.constant 256 : index
    %21 = vector.load %arg9[%c0_19, %c256_20] : memref<256x384xf32, #tpu.memory_space<vmem>>, vector<256x128xf32>
    tpu.vector_store %arg9[%c0_19, %c256_20], %20 {strides = array<i32>} : memref<256x384xf32, #tpu.memory_space<vmem>>, vector<256x128xf32>,
    %c1_i32 = arith.constant 1 : i32
    %22 = arith.cmpi eq, %arg1, %c1_i32 : i32
    %23 = arith.extui %22 : i1 to i32
    %c0_i32_21 = arith.constant 0 : i32
    %24 = arith.cmpi ne, %23, %c0_i32_21 : i32
    scf.if %24 {
      %c0_22 = arith.constant 0 : index
      %c0_23 = arith.constant 0 : index
      %25 = vector.load %arg10[%c0_22, %c0_23] : memref<256x128xf32, #tpu.memory_space<vmem>>, vector<256x128xf32>
      %c0_24 = arith.constant 0 : index
      %c0_25 = arith.constant 0 : index
      %26 = vector.load %arg9[%c0_24, %c0_25] : memref<256x384xf32, #tpu.memory_space<vmem>>, vector<256x384xf32>
      %c0_26 = arith.constant 0 : index
      %c0_27 = arith.constant 0 : index
      %27 = vector.load %arg5[%c0_26, %c0_27] : memref<384x128xf32, #tpu.memory_space<vmem>>, vector<384x128xf32>
      %cst_28 = arith.constant dense<0.000000e+00> : vector<256x128xf32>
      %28 = tpu.matmul %26, %27, %cst_28 {dimension_numbers = #tpu.dot_dimension_numbers<[1], [0], [0], [1], [0, 0, 1, 1], [], []>} : vector<256x384xf32>, vector<384x128xf32>, vector<256x128xf32> -> vector<256x128xf32>
      %29 = arith.addf %25, %28 : vector<256x128xf32>
      %cst_29 = arith.constant 0.000000e+00 : f32
      %30 = vector.broadcast %cst_29 : f32 to vector<256x128xf32>
      %31 = arith.maximumf %29, %30 : vector<256x128xf32>
      %32 = arith.truncf %31 : vector<256x128xf32> to vector<256x128xbf16>
      %c0_30 = arith.constant 0 : index
      %c0_31 = arith.constant 0 : index
      %33 = vector.load %arg8[%c0_30, %c0_31] : memref<256x128xbf16, #tpu.memory_space<vmem>>, vector<256x128xbf16>
      tpu.vector_store %arg8[%c0_30, %c0_31], %32 {strides = array<i32>} : memref<256x128xbf16, #tpu.memory_space<vmem>>, vector<256x128xbf16>,
    } else {
    }
    return
  }
  func.func @transform_0(%arg0: i32, %arg1: i32) -> (i32, i32, i32) {
    %c0_i32 = arith.constant 0 : i32
    %c0_i32_0 = arith.constant 0 : i32
    return %c0_i32, %arg0, %arg1 : i32, i32, i32
  }
  func.func @transform_1(%arg0: i32, %arg1: i32) -> (i32, i32) {
    %c0_i32 = arith.constant 0 : i32
    %c0_i32_0 = arith.constant 0 : i32
    return %arg1, %c0_i32 : i32, i32
  }
  func.func @transform_2(%arg0: i32, %arg1: i32) -> (i32, i32) {
    %c0_i32 = arith.constant 0 : i32
    %c0_i32_0 = arith.constant 0 : i32
    return %arg0, %c0_i32 : i32, i32
  }
  func.func @transform_3(%arg0: i32, %arg1: i32) -> (i32, i32) {
    %c0_i32 = arith.constant 0 : i32
    %c0_i32_0 = arith.constant 0 : i32
    %c0_i32_1 = arith.constant 0 : i32
    return %c0_i32, %c0_i32_0 : i32, i32
  }
  func.func @transform_4(%arg0: i32, %arg1: i32) -> (i32, i32) {
    %c0_i32 = arith.constant 0 : i32
    %c0_i32_0 = arith.constant 0 : i32
    %c0_i32_1 = arith.constant 0 : i32
    return %c0_i32, %c0_i32_0 : i32, i32
  }
  func.func @transform_5(%arg0: i32, %arg1: i32) -> (i32, i32) {
    %c0_i32 = arith.constant 0 : i32
    %c0_i32_0 = arith.constant 0 : i32
    %c0_i32_1 = arith.constant 0 : i32
    return %c0_i32, %c0_i32_0 : i32, i32
  }
  func.func @transform_6(%arg0: i32, %arg1: i32) -> (i32, i32) {
    %c0_i32 = arith.constant 0 : i32
    %c0_i32_0 = arith.constant 0 : i32
    return %arg0, %c0_i32 : i32, i32
  }
}

</mosaic_0001>

<bundles_post_ra>
// kernel: tpu_custom_call.1
= control target key start
LH: loop header
LB: loop body
LE: loop exit
PB: predicated region body
PF: predicated region fallthrough
CT: control target
= control target key end

     0   :  { %s6110_s0 = inlined_call_operand.hbm [shape: bf16[3,512,512], index: 0, kind: input, shape index: {}]   ;;  %s6111_s1 = inlined_call_operand.hbm [shape: bf16[512,128], index: 1, kind: input, shape index: {}]   ;;  %s6112_s2 = inlined_call_operand.hbm [shape: bf16[512,128], index: 2, kind: input, shape index: {}]   ;;  %s6113_s3 = inlined_call_operand.hbm [shape: f32[384,128], index: 3, kind: input, shape index: {}]   ;;  %s6114_s4 = inlined_call_operand.hbm [shape: bf16[128,128], index: 4, kind: input, shape index: {}]   ;;  %s6115_s5 = inlined_call_operand.hbm [shape: f32[1,128], index: 5, kind: input, shape index: {}]   ;;  %s6116_s6 = inlined_call_operand.hbm [shape: bf16[512,128], index: 6, kind: output, shape index: {}]  }
   0x1   :  { %6146 = sst [smem:[#allocation43_spill]] %s6116_s6 }
   0x2   :  { %11 = vsyncpa [#allocation5], 0 }
   0x3   :  { %13 = vsyncpa [#allocation5 + $0x1], 0 }
   0x4   :  { %14 = vsyncpa [#allocation8], 0 }
   0x5   :  { %16 = vsyncpa [#allocation8 + $0x1], 0 }
   0x6   :  { %17 = vsyncpa [#allocation11], 0 }
   0x7   :  { %18 = vsyncpa [#allocation14], 0 }
   0x8   :  { %19 = vsyncpa [#allocation6], 0 }
   0x9   :  { %21 = vsyncpa [#allocation6 + $0x1], 0  ;;  %s5238_s21 = smov 0   ;;  %s5240_s22 = smov 0  }
   0xa   :  { %s5242_s23 = smov 0   ;;  %s5244_s24 = smov 0  }
   0xb   :  { %s5246_s25 = smov 0   ;;  %s5248_s26 = smov 0  }
   0xc   :  { %s5250_s27 = smov 0   ;;  %s5252_s28 = smov 0  }
   0xd   :  { %s5254_s29 = smov 0   ;;  %s5256_s30 = smov 0  }
   0xe   :  { %s5258_s7 = smov 0   ;;  %s5260_s8 = smov 0  }
   0xf   :  { %s5262_s9 = smov 0   ;;  %s5264_s10 = smov 0  }
  0x10 LB: > { %6147 = sst [smem:[#allocation25_spill]] %s5126_s21  ;;  %s5307_s11 = sadd.s32 4294967295, %s5178_s10   ;;  %s5178_s10 = sphi %s5264_s10, %s27_s10   ;;  %s5174_s9 = sphi %s5262_s9, %s6226_s9   ;;  %s5170_s8 = sphi %s5260_s8, %s6225_s8   ;;  %s5166_s7 = sphi %s5258_s7, %s6224_s7   ;;  %s5162_s30 = sphi %s5256_s30, %s6223_s30   ;;  %s5158_s29 = sphi %s5254_s29, %s6222_s29   ;;  %s5154_s28 = sphi %s5252_s28, %s6221_s28   ;;  %s5150_s27 = sphi %s5250_s27, %s6212_s27   ;;  %s5146_s26 = sphi %s5248_s26, %s6220_s26   ;;  %s5142_s25 = sphi %s5246_s25, %s6219_s25   ;;  %s5138_s24 = sphi %s5244_s24, %s6210_s24   ;;  %s5134_s23 = sphi %s5242_s23, %s6218_s23   ;;  %s5130_s22 = sphi %s5240_s22, %s6217_s22   ;;  %s5126_s21 = sphi %s5238_s21, %s6208_s21  }
  0x11   : > { %6148 = sst [smem:[#allocation26_spill]] %s5130_s22  ;;  %s36_s13 = sadd.s32 1, %s5170_s8 }
  0x12   : > { %6149 = sst [smem:[#allocation27_spill]] %s5142_s25  ;;  %s39_s14 = sadd.s32 1, %s5174_s9 }
  0x13   : > { %6150 = sst [smem:[#allocation28_spill]] %s5154_s28  ;;  %p37_p0 = scmp.ge.s32.totalorder %s36_s13, 2 }
  0x14   : > { %6151 = sst [smem:[#allocation29_spill]] %s5162_s30  ;;  %s48_s15 = sadd.s32 1, %s5158_s29 }
  0x15   : > { %6152 = sst [smem:[#allocation30_spill]] %s5166_s7  ;;  %p55_p1 = scmp.ne.s32.totalorder %s5158_s29, %s5154_s28 }
  0x16   : > { %6153 = sst [smem:[#allocation31_spill]] %s5307_s11  ;;  %p56_p2 = scmp.eq.s32.totalorder %s5178_s10, 0 }
  0x17   : > { %s6228_s13 = smov (%p37_p0, %s36_s13), 0  ;;  %s6230_s14 = smov (!%p37_p0, %s39_s14), %s5174_s9 }
  0x18   : > { %6154 = sst [smem:[#allocation32_spill]] %s6228_s13  ;;  %s44_s16 = ssub.s32 %s5170_s8, %s6228_s13 }
  0x19   : > { %p5323_p3 = por %p56_p2, %p55_p1  ;;  %p41_p4 = scmp.ge.s32.totalorder %s6230_s14, 2 }
  0x1a   : > { %p61_p5 = scmp.ne.s32.totalorder %s5154_s28, %s5150_s27  ;;  %p6122_p6 = scmp.eq.s32.totalorder %s5307_s11, 0 }
  0x1b   : > { %s6155_s17 = scalar_select %p5323_p3, 1, 0 }
  0x1c   : > { %p72_p7 = scmp.eq.s32.totalorder %s44_s16, 0  ;;  %s6232_s14 = smov (%p41_p4, %s6230_s14), 0 }
  0x1d   : > { %6156 = sst [smem:[#allocation33_spill]] %s6232_s14  ;;  %p5333_p8 = por %p6122_p6, %p61_p5 }
  0x1e   : > { %s74_s19 = sadd.s32 1, %s5146_s26  ;;  %s43_s20 = ssub.s32 %s5174_s9, %s6232_s14 }
  0x1f   : > { %s6157_s18 = scalar_select %p5333_p8, 1, 0 }
  0x20   : > { %p81_p9 = scmp.ne.s32.totalorder %s5146_s26, %s5142_s25  ;;  %s45_s27 = sor.u32 %s44_s16, %s43_s20 }
  0x21   : > { %6158 = sst [smem:[#allocation34_spill]] %s6157_s18  ;;  %p87_p10 = scmp.ne.s32.totalorder %s5142_s25, %s5138_s24 }
  0x22   : > { %p46_p11 = scmp.eq.s32.totalorder %s45_s27, 0  ;;  %p5346_p12 = por %p81_p9, %p56_p2 }
  0x23   : > { %s5351_s13 = scalar_select %p72_p7, %s5146_s26, %s74_s19  }
  0x24   : > { %s6159_s12 = scalar_select %p5346_p12, 1, 0 }
  0x25   : > { %6160 = sst [smem:[#allocation35_spill]] %s5351_s13  ;;  %p5358_p13 = por %p87_p10, %p6122_p6 }
  0x26   : > { %s5354_s6 = scalar_select %p46_p11, %s5158_s29, %s48_s15  }
  0x27   : > { %s6162_s14 = scalar_select %p5358_p13, 1, 0 }
  0x28   : > { %6161 = sst [smem:[#allocation36_spill]] %s5354_s6  ;;  %p98_p0 = scmp.eq.s32.totalorder %s43_s20, 0 }
  0x29   : > { %6163 = sst [smem:[#allocation37_spill]] %s6162_s14  ;;  %s100_s16 = sadd.s32 1, %s5134_s23 }
  0x2a   : > { %p107_p1 = scmp.ne.s32.totalorder %s5134_s23, %s5130_s22  ;;  %p113_p5 = scmp.ne.s32.totalorder %s5130_s22, %s5126_s21 }
  0x2b   : > { %s5366_s24 = scalar_select %p98_p0, %s5134_s23, %s100_s16  }
  0x2c   : > { %p5370_p4 = por %p107_p1, %p56_p2  ;;  %p200_p7 = scmp.eq.s32.totalorder %s5307_s11, 3 }
  0x2d   : > { %6164 = sst [smem:[#allocation38_spill]] %s5366_s24  ;;  %s6166_s15 = sadd.s32 4294967294, %s5178_s10  }
  0x2e   : > { %s6165_s27 = scalar_select %p5370_p4, 1, 0 }
  0x2f   : > { %p206_p9 = scmp.eq.s32.totalorder %s6166_s15, 3  ;;  %p5381_p10 = por %p113_p5, %p6122_p6 }
  0x30   : > { %p3435_p11 = scmp.ge.s32.totalorder %s5178_s10, 1  ;;  %p5386_p13 = por %p200_p7, %p107_p1 }
  0x31   : > { %s6167_s19 = scalar_select %p5381_p10, 1, 0 }
  0x32   : > { %s6169_s20 = scalar_select %p5386_p13, 1, 0 }
  0x33   : > { %6168 = sst [smem:[#allocation39_spill]] %s6167_s19  ;;  %p5390_p0 = por %p206_p9, %p113_p5 }
  0x34   : > { %6170 = sst [smem:[#allocation40_spill]] %s6169_s20  ;;  %p213_p2 = scmp.lt.s32.totalorder %s5178_s10, 5 }
  0x35   : > { %s6171_s16 = scalar_select %p5390_p0, 1, 0 }
  0x36   : > { %p5395_p8 = pnand %p3435_p11, %p213_p2  ;;  %s5180_s15 = smov [#allocation10]  }
  0x37   : > { %6172 = sst [smem:[#allocation41_spill]] %s6171_s16  ;;  %s225_s13 = sshll.u32 %s5180_s15, 4  ;;  %s5399_s13 = int_to_ptr.vmem [resolvable:$true] %s225_s13 }
  0x38   : > { %s6173_s6 = scalar_select %p5395_p8, 1, 0 }
  0x39   : > { %p4539_p6 = pneg %p5395_p8  ;;  %s5181_s24 = smov [#allocation12]  }
  0x3a   : > { %6174 = sst [smem:[#allocation42_spill]] %s6173_s6  ;;  %s238_s21 = sshll.u32 %s5181_s24, 4  ;;  %s5409_s21 = int_to_ptr.vmem [resolvable:$true] %s238_s21 }
  0x3b   : > { %p6175_p1 = scmp.eq.s32.totalorder %s5307_s11, 0  ;;  %s5182_s16 = smov [#allocation13]  }
  0x3c   : > { %s5411_s7 = sshll.u32 %s5182_s16, 4  ;;  %s4876_s15 = scalar_lea.hbm %s6113_s3, 6144  ;;  %s253_s7 = int_to_ptr.vmem [resolvable:$true] %s5411_s7 }
  0x3d   : > { %p5405_p7 = pnand %p4539_p6, %p6175_p1  ;;  %p4877_p5 = scmp.ne.s32.totalorder %s6113_s3, %s4876_s15 }
  0x3e   : > { %p4883_p2 = scmp.lt.u32.totalorder %s4876_s15, %s6113_s3 }
  0x3f   : > { %p5421_p9 = pneg %p5405_p7 }
  0x41   : > { %p4879_p6 = pnand %p5421_p9, %p4877_p5 }
  0x43   : > { %p4880_p11 = pneg %p4879_p6 }
  0x45   : > { %p4885_p1 = pnand %p4883_p2, %p4880_p11 }
  0x47   : > { %4888 = shalt.err (!%p4885_p1)
}
  0x48   : > { %s4889_s22 = scalar_lea.vmem %s5399_s13, 6144  ;;  %p4897_p8 = scmp.lt.s32.totalorder %s5399_s13, %s5399_s13 }
  0x49   : > { %p4890_p0 = scmp.ne.s32.totalorder %s5399_s13, %s4889_s22  ;;  %p4898_p4 = scmp.lt.s32.totalorder %s4889_s22, %s4889_s22 }
  0x4b   : > { %p4892_p13 = pnand %p4890_p0, %p5421_p9  ;;  %p4899_p5 = por %p4898_p4, %p4897_p8 }
  0x4d   : > { %p4893_p10 = pneg %p4892_p13 }
  0x4f   : > { %p4900_p6 = pnand %p4899_p5, %p4893_p10 }
  0x51   : > { %4903 = shalt.err (!%p4900_p6)
}
  0x52   : > { %s5183_s30 = smov 128   ;;  %s5184_s25 = smov 8  }
  0x53   : > { %4542 = dma.hbm_to_vmem [thread:$0]  (!%p5405_p7), %s6113_s3, 6144, %s5399_s13, [#allocation11], %s5183_s30, %s5183_s30, %s5184_s25  }
  0x54   : > { %s4904_s11 = scalar_lea.hbm %s6114_s4, 1024 }
  0x55   : > { %p4905_p8 = scmp.ne.s32.totalorder %s6114_s4, %s4904_s11  ;;  %p4911_p10 = scmp.lt.u32.totalorder %s4904_s11, %s6114_s4 }
  0x57   : > { %p4907_p13 = pnand %p4905_p8, %p5421_p9 }
  0x59   : > { %p4908_p4 = pneg %p4907_p13 }
  0x5b   : > { %p4913_p0 = pnand %p4911_p10, %p4908_p4 }
  0x5d   : > { %4916 = shalt.err (!%p4913_p0)
}
  0x5e   : > { %s4917_s13 = scalar_lea.vmem %s5409_s21, 1024  ;;  %p4925_p5 = scmp.lt.s32.totalorder %s5409_s21, %s5409_s21 }
  0x5f   : > { %p4918_p11 = scmp.ne.s32.totalorder %s5409_s21, %s4917_s13  ;;  %p4926_p6 = scmp.lt.s32.totalorder %s4917_s13, %s4917_s13 }
  0x61   : > { %p4920_p2 = pnand %p4918_p11, %p5421_p9  ;;  %p4927_p8 = por %p4926_p6, %p4925_p5 }
  0x63   : > { %p4921_p1 = pneg %p4920_p2 }
  0x65   : > { %p4928_p13 = pnand %p4927_p8, %p4921_p1 }
  0x67   : > { %4931 = shalt.err (!%p4928_p13)
}
  0x68   : > { %s5185_s28 = smov 64   ;;  %s5186_s6 = smov 4  }
  0x69   : > { %4545 = dma.hbm_to_vmem [thread:$0]  (!%p5405_p7), %s6114_s4, 1024, %s5409_s21, [#allocation11], %s5185_s28, %s5185_s28, %s5186_s6  }
  0x6a   : > { %s4932_s14 = scalar_lea.hbm %s6115_s5, 16 }
  0x6b   : > { %p4933_p4 = scmp.ne.s32.totalorder %s6115_s5, %s4932_s14  ;;  %p4939_p11 = scmp.lt.u32.totalorder %s4932_s14, %s6115_s5 }
  0x6d   : > { %p4935_p10 = pnand %p4933_p4, %p5421_p9 }
  0x6f   : > { %p4936_p0 = pneg %p4935_p10 }
  0x71   : > { %p4941_p2 = pnand %p4939_p11, %p4936_p0 }
  0x73   : > { %4944 = shalt.err (!%p4941_p2)
}
  0x74   : > { %s4945_s13 = scalar_lea.vmem %s253_s7, 16  ;;  %s4952_s21 = scalar_lea.vmem %s253_s7, 32 }
  0x75   : > { %p4946_p1 = scmp.ne.s32.totalorder %s253_s7, %s4945_s13  ;;  %p4953_p8 = scmp.lt.s32.totalorder %s253_s7, %s253_s7 }
  0x76   : > { %p4954_p13 = scmp.lt.s32.totalorder %s4952_s21, %s4945_s13 }
  0x77   : > { %p4948_p5 = pnand %p4946_p1, %p5421_p9 }
  0x78   : > { %p4955_p12 = por %p4954_p13, %p4953_p8 }
  0x79   : > { %p4949_p6 = pneg %p4948_p5 }
  0x7b   : > { %p4956_p3 = pnand %p4955_p12, %p4949_p6 }
  0x7d   : > { %4959 = shalt.err (!%p4956_p3)
}
  0x7e   : > { %4548 = dma.hbm_to_vmem [thread:$0]  (!%p5405_p7), %s6115_s5, 16, %s253_s7, [#allocation14]  }
  0x7f   : > { %p3439_p4 = scmp.ge.s32.totalorder %s5178_s10, 4 }
  0x81   : > { %259 = sbr.rel (%p3439_p4) target bundleno = 204 (0xcc), region = 28 }
  0x88   : > { %s263_s24 = sand.u32 1, %s5158_s29   ;;  %s3441_s11 = sshll.u32 %s5170_s8, 1 }
  0x89   : > { %s4510_s18 = smul.u32 768, %s263_s24  ;;  %s3699_s30 = sshll.u32 %s5174_s9, 7 }
  0x8a   : > { %s274_s20 = sadd.s32 %s3699_s30, %s3441_s11  ;;  %p6178_p3 = scmp.ne.s32.totalorder %s6155_s17, 0 }
  0x8b   : > { %s3443_s25 = sshll.u32 %s274_s20, 6  ;;  %s267_s15 = scalar_lea.vmem [#allocation4], %s4510_s18 }
  0x8c   : > { %s276_s7 = scalar_lea.hbm %s6110_s0, %s3443_s25  ;;  %s289_s16 = sshll.u32 %s267_s15, 4  ;;  %s290_s16 = int_to_ptr.vmem [resolvable:$true] %s289_s16 }
  0x8d   : > { %s4518_s22 = scalar_select %p6178_p3, [#allocation0], [#allocation18] }
  0x8e   : > { %s5187_s13 = smov 16384   ;;  %s5188_s28 = smov 4096  }
  0x8f   : > { %4519 = sst [smem:[#allocation17]] (%p6178_p3), %s5187_s13  ;;  %s5189_s6 = smov 32  }
  0x90   : > { %s281_s21 = sld [smem:[%s4518_s22]]   ;;  %s5190_s11 = smov 256  }
  0x91   : > { %4520 = sst [smem:[#allocation17 + $0x1]] (%p6178_p3), %s5188_s28  ;;  %s5191_s18 = smov 128  }
  0x92   : > { %4521 = sst [smem:[#allocation17 + $0x2]] (%p6178_p3), %s5189_s6  ;;  %s5192_s30 = smov 8  }
  0x93   : > { %4522 = sst [smem:[#allocation17 + $0x3]] (%p6178_p3), %s5190_s11  ;;  %s264_s14 = scalar_lea.sflag [#allocation5], %s263_s24 }
  0x94   : > { %4523 = sst [smem:[#allocation17 + $0x4]] (%p6178_p3), %s5191_s18  ;;  %s5193_s19 = smov [#allocation16]  }
  0x95   : > { %4524 = sst [smem:[#allocation17 + $0x5]] (%p6178_p3), %s5192_s30  ;;  %s312_s15 = sand.u32 1, %s5178_s10  }
  0x96   : > { %s3444_s20 = sshll.u32 %s281_s21, 26  ;;  %s314_s22 = sand.u32 1, %s5146_s26  }
  0x97   : > { %s3445_s25 = sadd.s32 134217728, %s3444_s20  ;;  %s3446_s13 = sshll.u32 %s314_s22, 7 }
  0x98   : > { %4525 = dma.general (%p6178_p3), %s276_s7, 12288, %s290_s16, %s264_s14, %s5193_s19, [#allocation17], %s3445_s25, 0  }
  0x99   : > { %s3700_s28 = sshll.u32 %s5170_s8, 11  ;;  %s316_s17 = scalar_lea.vmem [#allocation7], %s3446_s13 }
  0x9a   : > { %s5513_s18 = scalar_lea.hbm %s6111_s1, %s3700_s28  ;;  %s323_s24 = sshll.u32 %s316_s17, 4  ;;  %s5515_s24 = int_to_ptr.vmem [resolvable:$true] %s323_s24 }
  0x9b   : > { %s335_s7 = sand.u32 1, %s5134_s23   ;;  %s5518_s16 = scalar_lea.sflag [#allocation8], %s312_s15 }
  0x9c   : > { %s4960_s21 = scalar_lea.hbm %s5513_s18, 2048  ;;  %p6179_p7 = scmp.ne.s32.totalorder %s6159_s12, 0 }
  0x9d   : > { %p4961_p12 = scmp.ne.s32.totalorder %s5513_s18, %s4960_s21  ;;  %s4964_s25 = scalar_lea.hbm %s6111_s1, 4096 }
  0x9e   : > { %p4965_p0 = scmp.lt.u32.totalorder %s5513_s18, %s6111_s1  ;;  %p4966_p11 = scmp.lt.u32.totalorder %s4964_s25, %s4960_s21 }
  0x9f   : > { %p4962_p9 = pnand %p4961_p12, %p6179_p7  ;;  %p4968_p1 = scmp.lt.u32.totalorder %s4960_s21, %s5513_s18 }
  0xa0   : > { %p4967_p2 = por %p4966_p11, %p4965_p0 }
  0xa1   : > { %p4963_p10 = pneg %p4962_p9 }
  0xa2   : > { %p4969_p5 = por %p4968_p1, %p4967_p2 }
  0xa4   : > { %p4970_p6 = pnand %p4969_p5, %p4963_p10 }
  0xa6   : > { %4973 = shalt.err (!%p4970_p6)
}
  0xa7   : > { %s4974_s15 = scalar_lea.vmem %s5515_s24, 2048  ;;  %s5194_s22 = smov [#allocation7]  }
  0xa8   : > { %p4975_p8 = scmp.ne.s32.totalorder %s5515_s24, %s4974_s15  ;;  %s4978_s13 = sshll.u32 %s5194_s22, 4  ;;  %s4979_s13 = int_to_ptr.vmem [resolvable:$false] %s4978_s13 }
  0xa9   : > { %s4980_s28 = scalar_lea.vmem %s4979_s13, 4096  ;;  %p4981_p3 = scmp.lt.s32.totalorder %s5515_s24, %s4979_s13 }
  0xaa   : > { %p4976_p13 = pnand %p4975_p8, %p6179_p7  ;;  %p4982_p12 = scmp.lt.s32.totalorder %s4980_s28, %s4974_s15 }
  0xac   : > { %p4977_p4 = pneg %p4976_p13  ;;  %p4983_p9 = por %p4982_p12, %p4981_p3 }
  0xae   : > { %p4984_p0 = pnand %p4983_p9, %p4977_p4 }
  0xb0   : > { %4987 = shalt.err (!%p4984_p0)
}
  0xb1   : > { %s5195_s6 = smov 64   ;;  %s5196_s11 = smov 4  }
  0xb2   : > { %4526 = dma.hbm_to_vmem [thread:$0]  (%p6179_p7), %s5513_s18, 2048, %s5515_s24, %s5518_s16, %s5195_s6, %s5195_s6, %s5196_s11  }
  0xb3   : > { %s3449_s17 = sshll.u32 %s335_s7, 7  ;;  %s3701_s21 = sshll.u32 %s5174_s9, 11 }
  0xb4   : > { %s5551_s25 = scalar_lea.hbm %s6112_s2, %s3701_s21  ;;  %s337_s14 = scalar_lea.vmem [#allocation9], %s3449_s17 }
  0xb5   : > { %s344_s19 = sshll.u32 %s337_s14, 4  ;;  %s4988_s12 = scalar_lea.hbm %s5551_s25, 2048  ;;  %s5553_s19 = int_to_ptr.vmem [resolvable:$true] %s344_s19 }
  0xb6   : > { %p4989_p10 = scmp.ne.s32.totalorder %s5551_s25, %s4988_s12  ;;  %p6180_p11 = scmp.ne.s32.totalorder %s6165_s27, 0 }
  0xb7   : > { %s4992_s7 = scalar_lea.hbm %s6112_s2, 4096  ;;  %p4993_p1 = scmp.lt.u32.totalorder %s5551_s25, %s6112_s2 }
  0xb8   : > { %p4990_p7 = pnand %p4989_p10, %p6180_p11  ;;  %p4994_p5 = scmp.lt.u32.totalorder %s4992_s7, %s4988_s12 }
  0xb9   : > { %p4996_p8 = scmp.lt.u32.totalorder %s4988_s12, %s5551_s25 }
  0xba   : > { %p4991_p2 = pneg %p4990_p7  ;;  %p4995_p6 = por %p4994_p5, %p4993_p1 }
  0xbc   : > { %p4997_p13 = por %p4996_p8, %p4995_p6 }
  0xbe   : > { %p4998_p4 = pnand %p4997_p13, %p4991_p2 }
  0xc0   : > { %5001 = shalt.err (!%p4998_p4)
}
  0xc1   : > { %s5002_s13 = scalar_lea.vmem %s5553_s19, 2048  ;;  %s5197_s28 = smov [#allocation9]  }
  0xc2   : > { %p5003_p3 = scmp.ne.s32.totalorder %s5553_s19, %s5002_s13  ;;  %s5006_s17 = sshll.u32 %s5197_s28, 4  ;;  %s5007_s17 = int_to_ptr.vmem [resolvable:$false] %s5006_s17 }
  0xc3   : > { %s5008_s21 = scalar_lea.vmem %s5007_s17, 4096  ;;  %p5009_p0 = scmp.lt.s32.totalorder %s5553_s19, %s5007_s17 }
  0xc4   : > { %p5004_p12 = pnand %p5003_p3, %p6180_p11  ;;  %p5010_p10 = scmp.lt.s32.totalorder %s5008_s21, %s5002_s13 }
  0xc6   : > { %p5005_p9 = pneg %p5004_p12  ;;  %p5011_p7 = por %p5010_p10, %p5009_p0 }
  0xc8   : > { %p5012_p1 = pnand %p5011_p7, %p5005_p9 }
  0xca   : > { %5015 = shalt.err (!%p5012_p1)
}
  0xcb   : > { %4527 = dma.hbm_to_vmem [thread:$0]  (%p6180_p11), %s5551_s25, 2048, %s5553_s19, %s5518_s16, %s5195_s6, %s5195_s6, %s5196_s11  }
  0xcc PF: > { %s6181_s30 = sld [smem:[#allocation42_spill]] }
  0xd2   : > { %p6182_p2 = scmp.ne.s32.totalorder %s6181_s30, 0 }
  0xd3   : > { %s6183_s20 = sld [smem:[#allocation28_spill]] (!%p6182_p2)  ;;  %s6184_s14 = sld [smem:[#allocation34_spill]] (!%p6182_p2) }
  0xd4   : > { %356 = sbr.rel (%p6182_p2) target bundleno = 1353 (0x549), region = 44 }
  0xd9   : > { %s358_s12 = sand.u32 (!%p6182_p2), 1, %s6183_s20   ;;  %p6185_p5 = scmp.ne.s32.totalorder (!%p6182_p2), %s6184_s14, 0 }
  0xda   : > { %s4511_s18 = smul.u32 (!%p6182_p2), 768, %s358_s12  ;;  %s359_s24 = scalar_lea.sflag (!%p6182_p2), [#allocation5], %s358_s12 }
  0xdc   : > { %s5583_s7 = scalar_lea.vmem [#allocation4], %s4511_s18 }
  0xdd   : > { %5101 = dma.done.wait (%p6185_p5), %s359_s24, 12288  }
  0xde   : > { %5103 = vsyncadd (%p6185_p5), %s359_s24, 4294955008  ;;  %s6186_s27 = sld [smem:[#allocation31_spill]]  ;;  %s6187_s15 = sld [smem:[#allocation27_spill]] }
  0xdf   : > { %s6188_s22 = sld [smem:[#allocation37_spill]] }
  0xe4   : > { %s367_s16 = sand.u32 1, %s6186_s27   ;;  %s369_s6 = sand.u32 1, %s6187_s15  }
  0xe5   : > { %s3453_s11 = sshll.u32 %s369_s6, 7  ;;  %s368_s25 = scalar_lea.sflag [#allocation8], %s367_s16 }
  0xe6   : > { %s5591_s19 = scalar_lea.vmem [#allocation7], %s3453_s11  ;;  %p6189_p11 = scmp.ne.s32.totalorder %s6188_s22, 0 }
  0xe8   : > { %5105 = dma.done.wait (%p6189_p11), %s368_s25, 2048  }
  0xe9   : > { %5107 = vsyncadd (%p6189_p11), %s368_s25, 4294965248  ;;  %s6190_s13 = sld [smem:[#allocation26_spill]]  ;;  %s6191_s28 = sld [smem:[#allocation39_spill]] }
  0xef   : > { %s378_s17 = sand.u32 1, %s6190_s13   ;;  %p6192_p6 = scmp.ne.s32.totalorder %s6191_s28, 0 }
  0xf0   : > { %s3454_s21 = sshll.u32 %s378_s17, 7 }
  0xf1   : > { %s5600_s30 = scalar_lea.vmem [#allocation9], %s3454_s21 }
  0xf2   : > { %5109 = dma.done.wait (%p6192_p6), %s368_s25, 2048  }
  0xf3   : > { %5111 = vsyncadd (%p6192_p6), %s368_s25, 4294965248  ;;  %p6193_p8 = scmp.eq.s32.totalorder %s6186_s27, 0 }
  0xf5   : > { %5113 = dma.done.wait (%p6193_p8), [#allocation11], 7168   ;;  %p6194_p13 = pmov %p6193_p8 }
  0xf6   : > { %p6195_p4 = pmov %p6193_p8 }
  0xf7   : > { %5115 = vsyncadd (%p6194_p13), [#allocation11], 4294960128 }
  0xf8   : > { %5117 = dma.done.wait (%p6195_p4), [#allocation14], 16   ;;  %p6196_p3 = pmov %p6195_p4 }
  0xf9   : > { %s5614_s20 = scalar_lea.vmem [#allocation15], %s3454_s21  ;;  %s6197_s14 = sld [smem:[#allocation29_spill]] }
  0xfa   : > { %5119 = vsyncadd (%p6196_p3), [#allocation14], 4294967280 }
  0xff   : > { %p3459_p12 = scmp.ne.s32.totalorder %s6197_s14, 0 }
 0x100   : > { %v5617_v0 = vld [vmem:[#allocation12] sm:$0xff] (!%p3459_p12)   ;;  %v5198_v1 = vmov (!%p3459_p12), 0.0   ;;  %v4693_v2 = vld [vmem:[#allocation12 + $0x8] sm:$0xff] (!%p3459_p12)   ;;  %v4694_v3 = vld [vmem:[#allocation12 + $0x10] sm:$0xff] (!%p3459_p12)  }
 0x101   : > { %440 = sbr.rel (%p3459_p12) target bundleno = 531 (0x213), region = 72  ;;  %441 = vst [vmem:[#allocation2] sm:$0xff] (!%p3459_p12), %v5198_v1  ;;  %442 = vst [vmem:[#allocation2 + $0x8] sm:$0xff] (!%p3459_p12), %v5198_v1  ;;  %4238 = vmatprep.subr.bf16.mxu0 (!%p3459_p12), %v5617_v0  ;;  %4446 = vmatprep.subr.bf16.mxu1 (!%p3459_p12), %v5617_v0  ;;  %v4695_v4 = vld [vmem:[#allocation12 + $0x18] sm:$0xff] (!%p3459_p12)   ;;  %v4700_v5 = vld [vmem:[%s5600_s30] sm:$0xff] (!%p3459_p12)  }
 0x102   : > { %443 = vst [vmem:[#allocation2 + $0x10] sm:$0xff] (!%p3459_p12), %v5198_v1  ;;  %444 = vst [vmem:[#allocation2 + $0x18] sm:$0xff] (!%p3459_p12), %v5198_v1  ;;  %4239 = vmatpush3.bf16.msra.mxu0 (!%p3459_p12), %v5617_v0  ;;  %4454 = vmatpush3.bf16.msra.mxu1 (!%p3459_p12), %v5617_v0  ;;  %v4701_v6 = vld [vmem:[%s5600_s30 + $0x40] sm:$0xff] (!%p3459_p12)   ;;  %v4697_v8 = vld [vmem:[#allocation12 + $0x28] sm:$0xff] (!%p3459_p12)  }
 0x103   : > { %445 = vst [vmem:[#allocation2 + $0x20] sm:$0xff] (!%p3459_p12), %v5198_v1  ;;  %446 = vst [vmem:[#allocation2 + $0x28] sm:$0xff] (!%p3459_p12), %v5198_v1  ;;  %4240 = vmatprep.subr.bf16.mxu0 (!%p3459_p12), %v4693_v2  ;;  %4447 = vmatprep.subr.bf16.mxu1 (!%p3459_p12), %v4693_v2  ;;  %v4696_v7 = vld [vmem:[#allocation12 + $0x20] sm:$0xff] (!%p3459_p12)   ;;  %v4698_v9 = vld [vmem:[#allocation12 + $0x30] sm:$0xff] (!%p3459_p12)  }
 0x104   : > { %447 = vst [vmem:[#allocation2 + $0x30] sm:$0xff] (!%p3459_p12), %v5198_v1  ;;  %448 = vst [vmem:[#allocation2 + $0x38] sm:$0xff] (!%p3459_p12), %v5198_v1  ;;  %4254 = vmatprep.mubr.bf16.mxu0 (!%p3459_p12), %v4700_v5  ;;  %4270 = vmatprep.mubr.bf16.mxu1 (!%p3459_p12), %v4701_v6  ;;  %v4699_v10 = vld [vmem:[#allocation12 + $0x38] sm:$0xff] (!%p3459_p12)   ;;  %v4702_v11 = vld [vmem:[%s5600_s30 + $0x8] sm:$0xff] (!%p3459_p12)  }
 0x105   : > { %449 = vst [vmem:[#allocation2 + $0x40] sm:$0xff] (!%p3459_p12), %v5198_v1  ;;  %450 = vst [vmem:[#allocation2 + $0x48] sm:$0xff] (!%p3459_p12), %v5198_v1  ;;  %v4703_v12 = vld [vmem:[%s5600_s30 + $0x48] sm:$0xff] (!%p3459_p12)   ;;  %v4704_v13 = vld [vmem:[%s5600_s30 + $0x10] sm:$0xff] (!%p3459_p12)  }
 0x106   : > { %451 = vst [vmem:[#allocation2 + $0x50] sm:$0xff] (!%p3459_p12), %v5198_v1  ;;  %452 = vst [vmem:[#allocation2 + $0x58] sm:$0xff] (!%p3459_p12), %v5198_v1  ;;  %4241 = vmatpush3.bf16.msra.mxu0 (!%p3459_p12), %v4693_v2  ;;  %4455 = vmatpush3.bf16.msra.mxu1 (!%p3459_p12), %v4693_v2  ;;  %v4705_v14 = vld [vmem:[%s5600_s30 + $0x50] sm:$0xff] (!%p3459_p12)   ;;  %v4706_v15 = vld [vmem:[%s5600_s30 + $0x18] sm:$0xff] (!%p3459_p12)  }
 0x107   : > { %453 = vst [vmem:[#allocation2 + $0x60] sm:$0xff] (!%p3459_p12), %v5198_v1  ;;  %454 = vst [vmem:[#allocation2 + $0x68] sm:$0xff] (!%p3459_p12), %v5198_v1  ;;  %4242 = vmatprep.subr.bf16.mxu0 (!%p3459_p12), %v4694_v3  ;;  %4448 = vmatprep.subr.bf16.mxu1 (!%p3459_p12), %v4694_v3  ;;  %v4707_v16 = vld [vmem:[%s5600_s30 + $0x58] sm:$0xff] (!%p3459_p12)   ;;  %v4708_v17 = vld [vmem:[%s5600_s30 + $0x20] sm:$0xff] (!%p3459_p12)  }
 0x108   : > { %455 = vst [vmem:[#allocation2 + $0x70] sm:$0xff] %v5198_v1  ;;  %456 = vst [vmem:[#allocation2 + $0x78] sm:$0xff] %v5198_v1  ;;  %v4709_v18 = vld [vmem:[%s5600_s30 + $0x60] sm:$0xff]   ;;  %v4710_v19 = vld [vmem:[%s5600_s30 + $0x28] sm:$0xff]  }
 0x109   : > { %457 = vst [vmem:[#allocation2 + $0x80] sm:$0xff] %v5198_v1  ;;  %458 = vst [vmem:[#allocation2 + $0x88] sm:$0xff] %v5198_v1  ;;  %v4711_v20 = vld [vmem:[%s5600_s30 + $0x68] sm:$0xff]   ;;  %v4712_v21 = vld [vmem:[%s5600_s30 + $0x30] sm:$0xff]  }
 0x10a   : > { %459 = vst [vmem:[#allocation2 + $0x90] sm:$0xff] %v5198_v1  ;;  %460 = vst [vmem:[#allocation2 + $0x98] sm:$0xff] %v5198_v1  ;;  %4243 = vmatpush3.bf16.msra.mxu0 %v4694_v3  ;;  %4456 = vmatpush3.bf16.msra.mxu1 %v4694_v3  ;;  %v4713_v22 = vld [vmem:[%s5600_s30 + $0x70] sm:$0xff]   ;;  %v4714_v23 = vld [vmem:[%s5600_s30 + $0x38] sm:$0xff]  }
 0x10b   : > { %461 = vst [vmem:[#allocation2 + $0xa0] sm:$0xff] %v5198_v1  ;;  %462 = vst [vmem:[#allocation2 + $0xa8] sm:$0xff] %v5198_v1  ;;  %4244 = vmatprep.subr.bf16.mxu0 %v4695_v4  ;;  %4449 = vmatprep.subr.bf16.mxu1 %v4695_v4  ;;  %v4715_v24 = vld [vmem:[%s5600_s30 + $0x78] sm:$0xff]   ;;  %v5735_v25 = vld [vmem:[#allocation13] ss:$0 sm:$0xff] }
 0x10c   : > { %463 = vst [vmem:[#allocation2 + $0xb0] sm:$0xff] %v5198_v1  ;;  %464 = vst [vmem:[#allocation2 + $0xb8] sm:$0xff] %v5198_v1 }
 0x10d   : > { %465 = vst [vmem:[#allocation2 + $0xc0] sm:$0xff] %v5198_v1  ;;  %466 = vst [vmem:[#allocation2 + $0xc8] sm:$0xff] %v5198_v1 }
 0x10e   : > { %467 = vst [vmem:[#allocation2 + $0xd0] sm:$0xff] %v5198_v1  ;;  %468 = vst [vmem:[#allocation2 + $0xd8] sm:$0xff] %v5198_v1  ;;  %4245 = vmatpush3.bf16.msra.mxu0 %v4695_v4  ;;  %4457 = vmatpush3.bf16.msra.mxu1 %v4695_v4 }
 0x10f   : > { %469 = vst [vmem:[#allocation2 + $0xe0] sm:$0xff] %v5198_v1  ;;  %470 = vst [vmem:[#allocation2 + $0xe8] sm:$0xff] %v5198_v1  ;;  %4246 = vmatprep.subr.bf16.mxu0 %v4696_v7  ;;  %4450 = vmatprep.subr.bf16.mxu1 %v4696_v7 }
 0x110   : > { %471 = vst [vmem:[#allocation2 + $0xf0] sm:$0xff] %v5198_v1  ;;  %472 = vst [vmem:[#allocation2 + $0xf8] sm:$0xff] %v5198_v1 }
 0x111   : > { %473 = vst [vmem:[#allocation2 + $0x100] sm:$0xff] %v5198_v1  ;;  %474 = vst [vmem:[#allocation2 + $0x108] sm:$0xff] %v5198_v1 }
 0x112   : > { %475 = vst [vmem:[#allocation2 + $0x110] sm:$0xff] %v5198_v1  ;;  %476 = vst [vmem:[#allocation2 + $0x118] sm:$0xff] %v5198_v1  ;;  %4247 = vmatpush3.bf16.msra.mxu0 %v4696_v7  ;;  %4458 = vmatpush3.bf16.msra.mxu1 %v4696_v7 }
 0x113   : > { %477 = vst [vmem:[#allocation2 + $0x120] sm:$0xff] %v5198_v1  ;;  %478 = vst [vmem:[#allocation2 + $0x128] sm:$0xff] %v5198_v1  ;;  %4248 = vmatprep.subr.bf16.mxu0 %v4697_v8  ;;  %4451 = vmatprep.subr.bf16.mxu1 %v4697_v8 }
 0x114   : > { %479 = vst [vmem:[#allocation2 + $0x130] sm:$0xff] %v5198_v1  ;;  %480 = vst [vmem:[#allocation2 + $0x138] sm:$0xff] %v5198_v1 }
 0x115   : > { %481 = vst [vmem:[#allocation2 + $0x140] sm:$0xff] %v5198_v1  ;;  %482 = vst [vmem:[#allocation2 + $0x148] sm:$0xff] %v5198_v1 }
 0x116   : > { %483 = vst [vmem:[#allocation2 + $0x150] sm:$0xff] %v5198_v1  ;;  %484 = vst [vmem:[#allocation2 + $0x158] sm:$0xff] %v5198_v1  ;;  %4249 = vmatpush3.bf16.msra.mxu0 %v4697_v8  ;;  %4459 = vmatpush3.bf16.msra.mxu1 %v4697_v8 }
 0x117   : > { %485 = vst [vmem:[#allocation2 + $0x160] sm:$0xff] %v5198_v1  ;;  %486 = vst [vmem:[#allocation2 + $0x168] sm:$0xff] %v5198_v1  ;;  %4250 = vmatprep.subr.bf16.mxu0 %v4698_v9  ;;  %4452 = vmatprep.subr.bf16.mxu1 %v4698_v9 }
 0x118   : > { %487 = vst [vmem:[#allocation2 + $0x170] sm:$0xff] %v5198_v1  ;;  %488 = vst [vmem:[#allocation2 + $0x178] sm:$0xff] %v5198_v1 }
 0x119   : > { %489 = vst [vmem:[#allocation2 + $0x180] sm:$0xff] %v5198_v1  ;;  %490 = vst [vmem:[#allocation2 + $0x188] sm:$0xff] %v5198_v1 }
 0x11a   : > { %491 = vst [vmem:[#allocation2 + $0x190] sm:$0xff] %v5198_v1  ;;  %492 = vst [vmem:[#allocation2 + $0x198] sm:$0xff] %v5198_v1  ;;  %4251 = vmatpush3.bf16.msra.mxu0 %v4698_v9  ;;  %4460 = vmatpush3.bf16.msra.mxu1 %v4698_v9 }
 0x11b   : > { %493 = vst [vmem:[#allocation2 + $0x1a0] sm:$0xff] %v5198_v1  ;;  %494 = vst [vmem:[#allocation2 + $0x1a8] sm:$0xff] %v5198_v1  ;;  %4252 = vmatprep.subr.bf16.mxu0 %v4699_v10  ;;  %4453 = vmatprep.subr.bf16.mxu1 %v4699_v10 }
 0x11c   : > { %495 = vst [vmem:[#allocation2 + $0x1b0] sm:$0xff] %v5198_v1  ;;  %496 = vst [vmem:[#allocation2 + $0x1b8] sm:$0xff] %v5198_v1 }
 0x11d   : > { %497 = vst [vmem:[#allocation2 + $0x1c0] sm:$0xff] %v5198_v1  ;;  %498 = vst [vmem:[#allocation2 + $0x1c8] sm:$0xff] %v5198_v1 }
 0x11e   : > { %499 = vst [vmem:[#allocation2 + $0x1d0] sm:$0xff] %v5198_v1  ;;  %500 = vst [vmem:[#allocation2 + $0x1d8] sm:$0xff] %v5198_v1  ;;  %4253 = vmatpush3.bf16.msra.mxu0 %v4699_v10  ;;  %4461 = vmatpush3.bf16.msra.mxu1 %v4699_v10 }
 0x11f   : > { %501 = vst [vmem:[#allocation2 + $0x1e0] sm:$0xff] %v5198_v1  ;;  %502 = vst [vmem:[#allocation2 + $0x1e8] sm:$0xff] %v5198_v1 }
 0x120   : > { %503 = vst [vmem:[#allocation2 + $0x1f0] sm:$0xff] %v5198_v1  ;;  %504 = vst [vmem:[#allocation2 + $0x1f8] sm:$0xff] %v5198_v1 }
 0x121   : > { %505 = vst [vmem:[#allocation2 + $0x200] sm:$0xff] %v5198_v1  ;;  %506 = vst [vmem:[#allocation2 + $0x208] sm:$0xff] %v5198_v1  ;;  %4255 = vmatmul.mubr.bf16.vlgmr.msra.gmra.mrb[0].mxu0 %v4702_v11  ;;  %4271 = vmatmul.mubr.bf16.vlgmr.msra.gmra.mrb[0].mxu1 %v4703_v12 }
 0x122   : > { %507 = vst [vmem:[#allocation2 + $0x210] sm:$0xff] %v5198_v1  ;;  %508 = vst [vmem:[#allocation2 + $0x218] sm:$0xff] %v5198_v1  ;;  %4258 = vmatprep.mubr.bf16.mxu0 %v4704_v13  ;;  %4274 = vmatprep.mubr.bf16.mxu1 %v4705_v14 }
 0x123   : > { %509 = vst [vmem:[#allocation2 + $0x220] sm:$0xff] %v5198_v1  ;;  %510 = vst [vmem:[#allocation2 + $0x228] sm:$0xff] %v5198_v1 }
 0x124   : > { %511 = vst [vmem:[#allocation2 + $0x230] sm:$0xff] %v5198_v1  ;;  %512 = vst [vmem:[#allocation2 + $0x238] sm:$0xff] %v5198_v1 }
 0x125   : > { %513 = vst [vmem:[#allocation2 + $0x240] sm:$0xff] %v5198_v1  ;;  %514 = vst [vmem:[#allocation2 + $0x248] sm:$0xff] %v5198_v1 }
 0x126   : > { %515 = vst [vmem:[#allocation2 + $0x250] sm:$0xff] %v5198_v1  ;;  %516 = vst [vmem:[#allocation2 + $0x258] sm:$0xff] %v5198_v1 }
 0x127   : > { %517 = vst [vmem:[#allocation2 + $0x260] sm:$0xff] %v5198_v1  ;;  %518 = vst [vmem:[#allocation2 + $0x268] sm:$0xff] %v5198_v1 }
 0x128   : > { %519 = vst [vmem:[#allocation2 + $0x270] sm:$0xff] %v5198_v1  ;;  %520 = vst [vmem:[#allocation2 + $0x278] sm:$0xff] %v5198_v1 }
 0x129   : > { %521 = vst [vmem:[#allocation2 + $0x280] sm:$0xff] %v5198_v1  ;;  %522 = vst [vmem:[#allocation2 + $0x288] sm:$0xff] %v5198_v1  ;;  %4259 = vmatmul.mubr.bf16.gmra.mrb[4].mxu0 %v4706_v15  ;;  %4275 = vmatmul.mubr.bf16.gmra.mrb[4].mxu1 %v4707_v16 }
 0x12a   : > { %523 = vst [vmem:[#allocation2 + $0x290] sm:$0xff] %v5198_v1  ;;  %524 = vst [vmem:[#allocation2 + $0x298] sm:$0xff] %v5198_v1  ;;  %4262 = vmatprep.mubr.bf16.mxu0 %v4708_v17  ;;  %4278 = vmatprep.mubr.bf16.mxu1 %v4709_v18 }
 0x12b   : > { %525 = vst [vmem:[#allocation2 + $0x2a0] sm:$0xff] %v5198_v1  ;;  %526 = vst [vmem:[#allocation2 + $0x2a8] sm:$0xff] %v5198_v1 }
 0x12c   : > { %527 = vst [vmem:[#allocation2 + $0x2b0] sm:$0xff] %v5198_v1  ;;  %528 = vst [vmem:[#allocation2 + $0x2b8] sm:$0xff] %v5198_v1 }
 0x12d   : > { %529 = vst [vmem:[#allocation2 + $0x2c0] sm:$0xff] %v5198_v1  ;;  %530 = vst [vmem:[#allocation2 + $0x2c8] sm:$0xff] %v5198_v1 }
 0x12e   : > { %531 = vst [vmem:[#allocation2 + $0x2d0] sm:$0xff] %v5198_v1  ;;  %532 = vst [vmem:[#allocation2 + $0x2d8] sm:$0xff] %v5198_v1 }
 0x12f   : > { %533 = vst [vmem:[#allocation2 + $0x2e0] sm:$0xff] %v5198_v1  ;;  %534 = vst [vmem:[#allocation2 + $0x2e8] sm:$0xff] %v5198_v1 }
 0x130   : > { %535 = vst [vmem:[#allocation2 + $0x2f0] sm:$0xff] %v5198_v1  ;;  %536 = vst [vmem:[#allocation2 + $0x2f8] sm:$0xff] %v5198_v1 }
 0x131   : > { %4263 = vmatmul.mubr.bf16.gmra.mrb[8].mxu0 %v4710_v19  ;;  %4279 = vmatmul.mubr.bf16.gmra.mrb[8].mxu1 %v4711_v20 }
 0x132   : > { %4266 = vmatprep.mubr.bf16.mxu0 %v4712_v21  ;;  %4282 = vmatprep.mubr.bf16.mxu1 %v4713_v22 }
 0x139   : > { %4267 = vmatmul.mubr.bf16.gmra.mrb[12].mxu0 %v4714_v23  ;;  %4283 = vmatmul.mubr.bf16.gmra.mrb[12].mxu1 %v4715_v24 }
 0x1f4   : > { %v4256_v26 = vpop.f32.mrb[0].mxu0  ;;  %v4272_v27 = vpop.f32.mrb[0].mxu1 }
 0x1f5   : > { %v779_v28 = vadd.f32 %v4256_v26, %v5735_v25  ;;  %v843_v29 = vadd.f32 %v4272_v27, %v5735_v25  ;;  %v770_v30 = vpop.f32.mrb[1].mxu0  ;;  %v834_v31 = vpop.f32.mrb[1].mxu1 }
 0x1f6   : > { %v771_v32 = vadd.f32 %v5735_v25, %v770_v30  ;;  %v835_v33 = vadd.f32 %v5735_v25, %v834_v31  ;;  %v4257_v34 = vpop.f32.mrb[2].mxu0  ;;  %v4273_v35 = vpop.f32.mrb[2].mxu1 }
 0x1f7   : > { %899 = vst [vmem:[#allocation3 + $0x10] sm:$0xff] %v779_v28  ;;  %915 = vst [vmem:[#allocation3 + $0x90] sm:$0xff] %v843_v29  ;;  %v782_v36 = vadd.f32 %v4257_v34, %v5735_v25  ;;  %v846_v37 = vadd.f32 %v4273_v35, %v5735_v25  ;;  %v773_v38 = vpop.f32.mrb[3].mxu0  ;;  %v837_v39 = vpop.f32.mrb[3].mxu1 }
 0x1f8   : > { %897 = vst [vmem:[#allocation3] sm:$0xff] %v771_v32  ;;  %913 = vst [vmem:[#allocation3 + $0x80] sm:$0xff] %v835_v33  ;;  %v774_v40 = vadd.f32 %v5735_v25, %v773_v38  ;;  %v838_v41 = vadd.f32 %v5735_v25, %v837_v39 }
 0x1f9   : > { %900 = vst [vmem:[#allocation3 + $0x18] sm:$0xff] %v782_v36  ;;  %916 = vst [vmem:[#allocation3 + $0x98] sm:$0xff] %v846_v37 }
 0x1fa   : > { %898 = vst [vmem:[#allocation3 + $0x8] sm:$0xff] %v774_v40  ;;  %914 = vst [vmem:[#allocation3 + $0x88] sm:$0xff] %v838_v41 }
 0x1fc   : > { %v4260_v42 = vpop.f32.mrb[4].mxu0  ;;  %v4276_v43 = vpop.f32.mrb[4].mxu1 }
 0x1fd   : > { %v795_v44 = vadd.f32 %v4260_v42, %v5735_v25  ;;  %v859_v45 = vadd.f32 %v4276_v43, %v5735_v25  ;;  %v786_v46 = vpop.f32.mrb[5].mxu0  ;;  %v850_v47 = vpop.f32.mrb[5].mxu1 }
 0x1fe   : > { %v787_v48 = vadd.f32 %v5735_v25, %v786_v46  ;;  %v851_v49 = vadd.f32 %v5735_v25, %v850_v47  ;;  %v4261_v50 = vpop.f32.mrb[6].mxu0  ;;  %v4277_v51 = vpop.f32.mrb[6].mxu1 }
 0x1ff   : > { %903 = vst [vmem:[#allocation3 + $0x30] sm:$0xff] %v795_v44  ;;  %919 = vst [vmem:[#allocation3 + $0xb0] sm:$0xff] %v859_v45  ;;  %v798_v52 = vadd.f32 %v4261_v50, %v5735_v25  ;;  %v862_v53 = vadd.f32 %v4277_v51, %v5735_v25  ;;  %v789_v54 = vpop.f32.mrb[7].mxu0  ;;  %v853_v55 = vpop.f32.mrb[7].mxu1 }
 0x200   : > { %901 = vst [vmem:[#allocation3 + $0x20] sm:$0xff] %v787_v48  ;;  %917 = vst [vmem:[#allocation3 + $0xa0] sm:$0xff] %v851_v49  ;;  %v790_v56 = vadd.f32 %v5735_v25, %v789_v54  ;;  %v854_v57 = vadd.f32 %v5735_v25, %v853_v55 }
 0x201   : > { %904 = vst [vmem:[#allocation3 + $0x38] sm:$0xff] %v798_v52  ;;  %920 = vst [vmem:[#allocation3 + $0xb8] sm:$0xff] %v862_v53 }
 0x202   : > { %902 = vst [vmem:[#allocation3 + $0x28] sm:$0xff] %v790_v56  ;;  %918 = vst [vmem:[#allocation3 + $0xa8] sm:$0xff] %v854_v57 }
 0x204   : > { %v4264_v58 = vpop.f32.mrb[8].mxu0  ;;  %v4280_v59 = vpop.f32.mrb[8].mxu1 }
 0x205   : > { %v811_v60 = vadd.f32 %v4264_v58, %v5735_v25  ;;  %v875_v61 = vadd.f32 %v4280_v59, %v5735_v25  ;;  %v802_v62 = vpop.f32.mrb[9].mxu0  ;;  %v866_v63 = vpop.f32.mrb[9].mxu1 }
 0x206   : > { %v803_v0 = vadd.f32 %v5735_v25, %v802_v62  ;;  %v867_v1 = vadd.f32 %v5735_v25, %v866_v63  ;;  %v4265_v2 = vpop.f32.mrb[10].mxu0  ;;  %v4281_v3 = vpop.f32.mrb[10].mxu1 }
 0x207   : > { %907 = vst [vmem:[#allocation3 + $0x50] sm:$0xff] %v811_v60  ;;  %923 = vst [vmem:[#allocation3 + $0xd0] sm:$0xff] %v875_v61  ;;  %v814_v4 = vadd.f32 %v4265_v2, %v5735_v25  ;;  %v878_v5 = vadd.f32 %v4281_v3, %v5735_v25  ;;  %v805_v6 = vpop.f32.mrb[11].mxu0  ;;  %v869_v7 = vpop.f32.mrb[11].mxu1 }
 0x208   : > { %905 = vst [vmem:[#allocation3 + $0x40] sm:$0xff] %v803_v0  ;;  %921 = vst [vmem:[#allocation3 + $0xc0] sm:$0xff] %v867_v1  ;;  %v806_v8 = vadd.f32 %v5735_v25, %v805_v6  ;;  %v870_v9 = vadd.f32 %v5735_v25, %v869_v7 }
 0x209   : > { %908 = vst [vmem:[#allocation3 + $0x58] sm:$0xff] %v814_v4  ;;  %924 = vst [vmem:[#allocation3 + $0xd8] sm:$0xff] %v878_v5 }
 0x20a   : > { %906 = vst [vmem:[#allocation3 + $0x48] sm:$0xff] %v806_v8  ;;  %922 = vst [vmem:[#allocation3 + $0xc8] sm:$0xff] %v870_v9 }
 0x20c   : > { %v4268_v10 = vpop.f32.mrb[12].mxu0  ;;  %v4284_v11 = vpop.f32.mrb[12].mxu1 }
 0x20d   : > { %v827_v12 = vadd.f32 %v4268_v10, %v5735_v25  ;;  %v891_v13 = vadd.f32 %v4284_v11, %v5735_v25  ;;  %v818_v14 = vpop.f32.mrb[13].mxu0  ;;  %v882_v15 = vpop.f32.mrb[13].mxu1 }
 0x20e   : > { %v819_v16 = vadd.f32 %v5735_v25, %v818_v14  ;;  %v883_v17 = vadd.f32 %v5735_v25, %v882_v15  ;;  %v4269_v18 = vpop.f32.mrb[14].mxu0  ;;  %v4285_v19 = vpop.f32.mrb[14].mxu1 }
 0x20f   : > { %911 = vst [vmem:[#allocation3 + $0x70] sm:$0xff] %v827_v12  ;;  %927 = vst [vmem:[#allocation3 + $0xf0] sm:$0xff] %v891_v13  ;;  %v830_v20 = vadd.f32 %v4269_v18, %v5735_v25  ;;  %v894_v21 = vadd.f32 %v4285_v19, %v5735_v25  ;;  %v821_v22 = vpop.f32.mrb[15].mxu0  ;;  %v885_v23 = vpop.f32.mrb[15].mxu1 }
 0x210   : > { %909 = vst [vmem:[#allocation3 + $0x60] sm:$0xff] %v819_v16  ;;  %925 = vst [vmem:[#allocation3 + $0xe0] sm:$0xff] %v883_v17  ;;  %v822_v24 = vadd.f32 %v5735_v25, %v821_v22  ;;  %v886_v26 = vadd.f32 %v5735_v25, %v885_v23 }
 0x211   : > { %912 = vst [vmem:[#allocation3 + $0x78] sm:$0xff] %v830_v20  ;;  %928 = vst [vmem:[#allocation3 + $0xf8] sm:$0xff] %v894_v21 }
 0x212   : > { %910 = vst [vmem:[#allocation3 + $0x68] sm:$0xff] %v822_v24  ;;  %926 = vst [vmem:[#allocation3 + $0xe8] sm:$0xff] %v886_v26 }
 0x213 PF: > { %v4716_v27 = vld [vmem:[%s5591_s19 + $0x40] sm:$0xff]   ;;  %v4718_v29 = vld [vmem:[%s5591_s19 + $0x48] sm:$0xff]   ;;  %v4720_v30 = vld [vmem:[%s5591_s19 + $0x50] sm:$0xff]   ;;  %s6198_s12 = sld [smem:[#allocation29_spill]] }
 0x214   : > { %v4717_v28 = vld [vmem:[%s5591_s19] sm:$0xff]   ;;  %3854 = vmatprep.subr.bf16.mxu0 %v4716_v27  ;;  %4462 = vmatprep.subr.bf16.mxu1 %v4716_v27  ;;  %v4719_v25 = vld [vmem:[%s5591_s19 + $0x8] sm:$0xff]   ;;  %v5775_v31 = vld [vmem:[%s5591_s19 + $0x10] sm:$0xff]  }
 0x215   : > { %3855 = vmatpush3.bf16.msra.mxu0 %v4717_v28  ;;  %4470 = vmatpush3.bf16.msra.mxu1 %v4717_v28  ;;  %v5778_v32 = vld [vmem:[%s5591_s19 + $0x58] sm:$0xff]   ;;  %v5788_v34 = vld [vmem:[%s5591_s19 + $0x60] sm:$0xff]   ;;  %v5798_v36 = vld [vmem:[%s5591_s19 + $0x68] sm:$0xff]  }
 0x216   : > { %3856 = vmatprep.subr.bf16.mxu0 %v4718_v29  ;;  %4463 = vmatprep.subr.bf16.mxu1 %v4718_v29  ;;  %v5783_v33 = vld [vmem:[%s5591_s19 + $0x18] sm:$0xff]   ;;  %v5793_v35 = vld [vmem:[%s5591_s19 + $0x20] sm:$0xff]   ;;  %v5805_v39 = vld [vmem:[%s5591_s19 + $0x28] sm:$0xff]  }
 0x217   : > { %v4734_v37 = vld [vmem:[%s5583_s7 + $0x4] ss:$8 sps:$4 sm:$0xff]   ;;  %v5810_v40 = vld [vmem:[%s5591_s19 + $0x70] sm:$0xff]   ;;  %v5820_v42 = vld [vmem:[%s5591_s19 + $0x78] sm:$0xff]  }
 0x218   : > { %v4737_v38 = vld [vmem:[%s5583_s7 + $0x84] ss:$8 sps:$4 sm:$0xff]   ;;  %1313 = vmatprep.mubr.bf16.mxu0 %v4734_v37  ;;  %v5815_v41 = vld [vmem:[%s5591_s19 + $0x30] sm:$0xff]   ;;  %v5825_v43 = vld [vmem:[%s5591_s19 + $0x38] sm:$0xff]  }
 0x219   : > { %3857 = vmatpush3.bf16.msra.mxu0 %v4719_v25  ;;  %4471 = vmatpush3.bf16.msra.mxu1 %v4719_v25  ;;  %v4732_v44 = vld [vmem:[%s5583_s7] ss:$8 sps:$4 sm:$0xff]   ;;  %v4738_v46 = vld [vmem:[%s5583_s7 + $0x14] ss:$8 sps:$4 sm:$0xff]   ;;  %v4742_v48 = vld [vmem:[%s5583_s7 + $0x10] ss:$8 sps:$4 sm:$0xff]  }
 0x21a   : > { %3858 = vmatprep.subr.bf16.mxu0 %v4720_v30  ;;  %4464 = vmatprep.subr.bf16.mxu1 %v4720_v30  ;;  %v4735_v45 = vld [vmem:[%s5583_s7 + $0x80] ss:$8 sps:$4 sm:$0xff]   ;;  %v4740_v47 = vld [vmem:[%s5583_s7 + $0x94] ss:$8 sps:$4 sm:$0xff]   ;;  %v4743_v49 = vld [vmem:[%s5583_s7 + $0x90] ss:$8 sps:$4 sm:$0xff]  }
 0x21b   : > { %1377 = vmatprep.mubr.bf16.mxu1 %v4737_v38  ;;  %v4744_v50 = vld [vmem:[%s5583_s7 + $0x24] ss:$8 sps:$4 sm:$0xff]   ;;  %v4748_v52 = vld [vmem:[%s5583_s7 + $0x20] ss:$8 sps:$4 sm:$0xff]   ;;  %v4750_v54 = vld [vmem:[%s5583_s7 + $0x34] ss:$8 sps:$4 sm:$0xff]  }
 0x21c   : > { %v4746_v51 = vld [vmem:[%s5583_s7 + $0xa4] ss:$8 sps:$4 sm:$0xff]   ;;  %v4749_v53 = vld [vmem:[%s5583_s7 + $0xa0] ss:$8 sps:$4 sm:$0xff]   ;;  %v4752_v55 = vld [vmem:[%s5583_s7 + $0xb4] ss:$8 sps:$4 sm:$0xff]  }
 0x21d   : > { %3859 = vmatpush3.bf16.msra.mxu0 %v5775_v31  ;;  %4472 = vmatpush3.bf16.msra.mxu1 %v5775_v31  ;;  %v4754_v56 = vld [vmem:[%s5583_s7 + $0x30] ss:$8 sps:$4 sm:$0xff]   ;;  %v4756_v58 = vld [vmem:[%s5583_s7 + $0x44] ss:$8 sps:$4 sm:$0xff]   ;;  %v4760_v60 = vld [vmem:[%s5583_s7 + $0x40] ss:$8 sps:$4 sm:$0xff]  }
 0x21e   : > { %3860 = vmatprep.subr.bf16.mxu0 %v5778_v32  ;;  %4465 = vmatprep.subr.bf16.mxu1 %v5778_v32  ;;  %v4755_v57 = vld [vmem:[%s5583_s7 + $0xb0] ss:$8 sps:$4 sm:$0xff]   ;;  %v4758_v59 = vld [vmem:[%s5583_s7 + $0xc4] ss:$8 sps:$4 sm:$0xff]   ;;  %v4761_v61 = vld [vmem:[%s5583_s7 + $0xc0] ss:$8 sps:$4 sm:$0xff]  }
 0x21f   : > { %v4762_v62 = vld [vmem:[%s5583_s7 + $0x54] ss:$8 sps:$4 sm:$0xff]   ;;  %v4766_v0 = vld [vmem:[%s5583_s7 + $0x50] ss:$8 sps:$4 sm:$0xff]   ;;  %v4768_v2 = vld [vmem:[%s5583_s7 + $0x64] ss:$8 sps:$4 sm:$0xff]  }
 0x220   : > { %v4764_v63 = vld [vmem:[%s5583_s7 + $0xd4] ss:$8 sps:$4 sm:$0xff]   ;;  %v4767_v1 = vld [vmem:[%s5583_s7 + $0xd0] ss:$8 sps:$4 sm:$0xff]   ;;  %v4770_v3 = vld [vmem:[%s5583_s7 + $0xe4] ss:$8 sps:$4 sm:$0xff]  }
 0x221   : > { %3861 = vmatpush3.bf16.msra.mxu0 %v5783_v33  ;;  %4473 = vmatpush3.bf16.msra.mxu1 %v5783_v33  ;;  %v4772_v4 = vld [vmem:[%s5583_s7 + $0x60] ss:$8 sps:$4 sm:$0xff]   ;;  %v4774_v6 = vld [vmem:[%s5583_s7 + $0x74] ss:$8 sps:$4 sm:$0xff]   ;;  %v4778_v8 = vld [vmem:[%s5583_s7 + $0x70] ss:$8 sps:$4 sm:$0xff]  }
 0x222   : > { %3862 = vmatprep.subr.bf16.mxu0 %v5788_v34  ;;  %4466 = vmatprep.subr.bf16.mxu1 %v5788_v34  ;;  %v4773_v5 = vld [vmem:[%s5583_s7 + $0xe0] ss:$8 sps:$4 sm:$0xff]   ;;  %v4776_v7 = vld [vmem:[%s5583_s7 + $0xf4] ss:$8 sps:$4 sm:$0xff]   ;;  %v4779_v9 = vld [vmem:[%s5583_s7 + $0xf0] ss:$8 sps:$4 sm:$0xff]  }
 0x223   : > { %v4782_v10 = vld [vmem:[%s5583_s7 + $0x104] ss:$8 sps:$4 sm:$0xff]   ;;  %v4780_v12 = vld [vmem:[%s5583_s7 + $0x100] ss:$8 sps:$4 sm:$0xff]   ;;  %v4786_v14 = vld [vmem:[%s5583_s7 + $0x114] ss:$8 sps:$4 sm:$0xff]  }
 0x224   : > { %v4785_v11 = vld [vmem:[%s5583_s7 + $0x204] ss:$8 sps:$4 sm:$0xff]   ;;  %v4783_v13 = vld [vmem:[%s5583_s7 + $0x200] ss:$8 sps:$4 sm:$0xff]   ;;  %v4788_v15 = vld [vmem:[%s5583_s7 + $0x214] ss:$8 sps:$4 sm:$0xff]  }
 0x225   : > { %3863 = vmatpush3.bf16.msra.mxu0 %v5793_v35  ;;  %4474 = vmatpush3.bf16.msra.mxu1 %v5793_v35  ;;  %v4790_v16 = vld [vmem:[%s5583_s7 + $0x110] ss:$8 sps:$4 sm:$0xff]   ;;  %v4792_v18 = vld [vmem:[%s5583_s7 + $0x124] ss:$8 sps:$4 sm:$0xff]   ;;  %v4796_v20 = vld [vmem:[%s5583_s7 + $0x120] ss:$8 sps:$4 sm:$0xff]  }
 0x226   : > { %3864 = vmatprep.subr.bf16.mxu0 %v5798_v36  ;;  %4467 = vmatprep.subr.bf16.mxu1 %v5798_v36  ;;  %v4791_v17 = vld [vmem:[%s5583_s7 + $0x210] ss:$8 sps:$4 sm:$0xff]   ;;  %v4794_v19 = vld [vmem:[%s5583_s7 + $0x224] ss:$8 sps:$4 sm:$0xff]   ;;  %v4797_v21 = vld [vmem:[%s5583_s7 + $0x220] ss:$8 sps:$4 sm:$0xff]  }
 0x227   : > { %v4798_v22 = vld [vmem:[%s5583_s7 + $0x134] ss:$8 sps:$4 sm:$0xff]   ;;  %v4802_v24 = vld [vmem:[%s5583_s7 + $0x130] ss:$8 sps:$4 sm:$0xff]   ;;  %v4821_v37 = vld [vmem:[%s5583_s7 + $0x260] ss:$8 sps:$4 sm:$0xff]  }
 0x228   : > { %v4800_v23 = vld [vmem:[%s5583_s7 + $0x234] ss:$8 sps:$4 sm:$0xff]   ;;  %v4803_v26 = vld [vmem:[%s5583_s7 + $0x230] ss:$8 sps:$4 sm:$0xff]   ;;  %p3661_p9 = scmp.ne.s32.totalorder %s6198_s12, 1 }
 0x229   : > { %3865 = vmatpush3.bf16.msra.mxu0 %v5805_v39  ;;  %4475 = vmatpush3.bf16.msra.mxu1 %v5805_v39  ;;  %v4822_v38 = vld [vmem:[%s5583_s7 + $0x174] ss:$8 sps:$4 sm:$0xff]  }
 0x22a   : > { %3866 = vmatprep.subr.bf16.mxu0 %v5810_v40  ;;  %4468 = vmatprep.subr.bf16.mxu1 %v5810_v40 }
 0x22d   : > { %3867 = vmatpush3.bf16.msra.mxu0 %v5815_v41  ;;  %4476 = vmatpush3.bf16.msra.mxu1 %v5815_v41 }
 0x22e   : > { %3868 = vmatprep.subr.bf16.mxu0 %v5820_v42  ;;  %4469 = vmatprep.subr.bf16.mxu1 %v5820_v42 }
 0x231   : > { %3869 = vmatpush3.bf16.msra.mxu0 %v5825_v43  ;;  %4477 = vmatpush3.bf16.msra.mxu1 %v5825_v43 }
 0x232   : > { %3966 = vmatprep.subr.bf16.mxu1 %v4716_v27  ;;  %4078 = vmatprep.subr.bf16.mxu0 %v4716_v27  ;;  %v4804_v27 = vld [vmem:[%s5583_s7 + $0x144] ss:$8 sps:$4 sm:$0xff]  }
 0x234   : > { %1314 = vmatmul.mubr.bf16.vlgmr.msra.gmra.mrb[0].mxu0 %v4732_v44  ;;  %1378 = vmatmul.mubr.bf16.vlgmr.msra.gmra.mrb[0].mxu1 %v4735_v45  ;;  %v4832_v44 = vld [vmem:[%s5583_s7 + $0x180] ss:$8 sps:$4 sm:$0xff]  }
 0x235   : > { %3967 = vmatpush3.bf16.msra.mxu1 %v4717_v28  ;;  %4079 = vmatpush3.bf16.msra.mxu0 %v4717_v28  ;;  %v4806_v28 = vld [vmem:[%s5583_s7 + $0x244] ss:$8 sps:$4 sm:$0xff]   ;;  %v4833_v45 = vld [vmem:[%s5583_s7 + $0x280] ss:$8 sps:$4 sm:$0xff]  }
 0x236   : > { %1321 = vmatprep.mubr.bf16.mxu0 %v4738_v46  ;;  %1385 = vmatprep.mubr.bf16.mxu1 %v4740_v47  ;;  %v4834_v46 = vld [vmem:[%s5583_s7 + $0x194] ss:$8 sps:$4 sm:$0xff]  }
 0x237   : > { %3968 = vmatprep.subr.bf16.mxu1 %v4718_v29  ;;  %4080 = vmatprep.subr.bf16.mxu0 %v4718_v29  ;;  %v4808_v29 = vld [vmem:[%s5583_s7 + $0x140] ss:$8 sps:$4 sm:$0xff]   ;;  %v4836_v47 = vld [vmem:[%s5583_s7 + $0x294] ss:$8 sps:$4 sm:$0xff]  }
 0x239   : > { %3969 = vmatpush3.bf16.msra.mxu1 %v4719_v25  ;;  %4081 = vmatpush3.bf16.msra.mxu0 %v4719_v25  ;;  %v4809_v25 = vld [vmem:[%s5583_s7 + $0x240] ss:$8 sps:$4 sm:$0xff]  }
 0x23a   : > { %3970 = vmatprep.subr.bf16.mxu1 %v4720_v30  ;;  %4082 = vmatprep.subr.bf16.mxu0 %v4720_v30  ;;  %v4810_v30 = vld [vmem:[%s5583_s7 + $0x154] ss:$8 sps:$4 sm:$0xff]  }
 0x23c   : > { %1322 = vmatmul.mubr.bf16.gmra.mrb[4].mxu0 %v4742_v48  ;;  %1386 = vmatmul.mubr.bf16.gmra.mrb[4].mxu1 %v4743_v49  ;;  %v4838_v48 = vld [vmem:[%s5583_s7 + $0x190] ss:$8 sps:$4 sm:$0xff]  }
 0x23d   : > { %1329 = vmatprep.mubr.bf16.mxu0 %v4744_v50  ;;  %1393 = vmatprep.mubr.bf16.mxu1 %v4746_v51  ;;  %v4839_v49 = vld [vmem:[%s5583_s7 + $0x290] ss:$8 sps:$4 sm:$0xff]   ;;  %v4840_v50 = vld [vmem:[%s5583_s7 + $0x1a4] ss:$8 sps:$4 sm:$0xff]  }
 0x23e   : > { %3971 = vmatpush3.bf16.msra.mxu1 %v5775_v31  ;;  %4083 = vmatpush3.bf16.msra.mxu0 %v5775_v31  ;;  %v4812_v31 = vld [vmem:[%s5583_s7 + $0x254] ss:$8 sps:$4 sm:$0xff]   ;;  %v4842_v51 = vld [vmem:[%s5583_s7 + $0x2a4] ss:$8 sps:$4 sm:$0xff]  }
 0x23f   : > { %3972 = vmatprep.subr.bf16.mxu1 %v5778_v32  ;;  %4084 = vmatprep.subr.bf16.mxu0 %v5778_v32  ;;  %v4814_v32 = vld [vmem:[%s5583_s7 + $0x150] ss:$8 sps:$4 sm:$0xff]  }
 0x242   : > { %3973 = vmatpush3.bf16.msra.mxu1 %v5783_v33  ;;  %4085 = vmatpush3.bf16.msra.mxu0 %v5783_v33  ;;  %v4815_v33 = vld [vmem:[%s5583_s7 + $0x250] ss:$8 sps:$4 sm:$0xff]  }
 0x243   : > { %3974 = vmatprep.subr.bf16.mxu1 %v5788_v34  ;;  %4086 = vmatprep.subr.bf16.mxu0 %v5788_v34  ;;  %v4816_v34 = vld [vmem:[%s5583_s7 + $0x164] ss:$8 sps:$4 sm:$0xff]  }
 0x244   : > { %1330 = vmatmul.mubr.bf16.gmra.mrb[8].mxu0 %v4748_v52  ;;  %1394 = vmatmul.mubr.bf16.gmra.mrb[8].mxu1 %v4749_v53  ;;  %v4844_v52 = vld [vmem:[%s5583_s7 + $0x1a0] ss:$8 sps:$4 sm:$0xff]  }
 0x245   : > { %1337 = vmatprep.mubr.bf16.mxu0 %v4750_v54  ;;  %1401 = vmatprep.mubr.bf16.mxu1 %v4752_v55  ;;  %v4845_v53 = vld [vmem:[%s5583_s7 + $0x2a0] ss:$8 sps:$4 sm:$0xff]   ;;  %v4846_v54 = vld [vmem:[%s5583_s7 + $0x1b4] ss:$8 sps:$4 sm:$0xff]  }
 0x246   : > { %3975 = vmatpush3.bf16.msra.mxu1 %v5793_v35  ;;  %4087 = vmatpush3.bf16.msra.mxu0 %v5793_v35  ;;  %v4818_v35 = vld [vmem:[%s5583_s7 + $0x264] ss:$8 sps:$4 sm:$0xff]   ;;  %v4848_v55 = vld [vmem:[%s5583_s7 + $0x2b4] ss:$8 sps:$4 sm:$0xff]  }
 0x247   : > { %3976 = vmatprep.subr.bf16.mxu1 %v5798_v36  ;;  %4088 = vmatprep.subr.bf16.mxu0 %v5798_v36  ;;  %v4820_v36 = vld [vmem:[%s5583_s7 + $0x160] ss:$8 sps:$4 sm:$0xff]  }
 0x24a   : > { %3977 = vmatpush3.bf16.msra.mxu1 %v5805_v39  ;;  %4089 = vmatpush3.bf16.msra.mxu0 %v5805_v39  ;;  %v4824_v39 = vld [vmem:[%s5583_s7 + $0x274] ss:$8 sps:$4 sm:$0xff]  }
 0x24b   : > { %3978 = vmatprep.subr.bf16.mxu1 %v5810_v40  ;;  %4090 = vmatprep.subr.bf16.mxu0 %v5810_v40  ;;  %v4826_v40 = vld [vmem:[%s5583_s7 + $0x170] ss:$8 sps:$4 sm:$0xff]  }
 0x24c   : > { %1338 = vmatmul.mubr.bf16.gmra.mrb[12].mxu0 %v4754_v56  ;;  %1402 = vmatmul.mubr.bf16.gmra.mrb[12].mxu1 %v4755_v57  ;;  %v4850_v56 = vld [vmem:[%s5583_s7 + $0x1b0] ss:$8 sps:$4 sm:$0xff]  }
 0x24d   : > { %1345 = vmatprep.mubr.bf16.mxu0 %v4756_v58  ;;  %1409 = vmatprep.mubr.bf16.mxu1 %v4758_v59  ;;  %v4851_v57 = vld [vmem:[%s5583_s7 + $0x2b0] ss:$8 sps:$4 sm:$0xff]   ;;  %v4852_v58 = vld [vmem:[%s5583_s7 + $0x1c4] ss:$8 sps:$4 sm:$0xff]  }
 0x24e   : > { %3979 = vmatpush3.bf16.msra.mxu1 %v5815_v41  ;;  %4091 = vmatpush3.bf16.msra.mxu0 %v5815_v41  ;;  %v4827_v41 = vld [vmem:[%s5583_s7 + $0x270] ss:$8 sps:$4 sm:$0xff]   ;;  %v4854_v59 = vld [vmem:[%s5583_s7 + $0x2c4] ss:$8 sps:$4 sm:$0xff]  }
 0x24f   : > { %3980 = vmatprep.subr.bf16.mxu1 %v5820_v42  ;;  %4092 = vmatprep.subr.bf16.mxu0 %v5820_v42  ;;  %v4828_v42 = vld [vmem:[%s5583_s7 + $0x184] ss:$8 sps:$4 sm:$0xff]  }
 0x252   : > { %3981 = vmatpush3.bf16.msra.mxu1 %v5825_v43  ;;  %4093 = vmatpush3.bf16.msra.mxu0 %v5825_v43  ;;  %v4830_v43 = vld [vmem:[%s5583_s7 + $0x284] ss:$8 sps:$4 sm:$0xff]  }
 0x254   : > { %1346 = vmatmul.mubr.bf16.gmra.mrb[16].mxu0 %v4760_v60  ;;  %1410 = vmatmul.mubr.bf16.gmra.mrb[16].mxu1 %v4761_v61  ;;  %v4856_v60 = vld [vmem:[%s5583_s7 + $0x1c0] ss:$8 sps:$4 sm:$0xff]  }
 0x255   : > { %1353 = vmatprep.mubr.bf16.mxu0 %v4762_v62  ;;  %1417 = vmatprep.mubr.bf16.mxu1 %v4764_v63  ;;  %v4857_v61 = vld [vmem:[%s5583_s7 + $0x2c0] ss:$8 sps:$4 sm:$0xff]   ;;  %v4858_v62 = vld [vmem:[%s5583_s7 + $0x1d4] ss:$8 sps:$4 sm:$0xff]  }
 0x256   : > { %v4860_v63 = vld [vmem:[%s5583_s7 + $0x2d4] ss:$8 sps:$4 sm:$0xff]  }
 0x25c   : > { %1354 = vmatmul.mubr.bf16.gmra.mrb[20].mxu0 %v4766_v0  ;;  %1418 = vmatmul.mubr.bf16.gmra.mrb[20].mxu1 %v4767_v1  ;;  %v4862_v0 = vld [vmem:[%s5583_s7 + $0x1d0] ss:$8 sps:$4 sm:$0xff]  }
 0x25d   : > { %1361 = vmatprep.mubr.bf16.mxu0 %v4768_v2  ;;  %1425 = vmatprep.mubr.bf16.mxu1 %v4770_v3  ;;  %v4863_v1 = vld [vmem:[%s5583_s7 + $0x2d0] ss:$8 sps:$4 sm:$0xff]   ;;  %v4864_v2 = vld [vmem:[%s5583_s7 + $0x1e4] ss:$8 sps:$4 sm:$0xff]  }
 0x25e   : > { %v4866_v3 = vld [vmem:[%s5583_s7 + $0x2e4] ss:$8 sps:$4 sm:$0xff]  }
 0x264   : > { %1362 = vmatmul.mubr.bf16.gmra.mrb[24].mxu0 %v4772_v4  ;;  %1426 = vmatmul.mubr.bf16.gmra.mrb[24].mxu1 %v4773_v5  ;;  %v4868_v4 = vld [vmem:[%s5583_s7 + $0x1e0] ss:$8 sps:$4 sm:$0xff]  }
 0x265   : > { %1369 = vmatprep.mubr.bf16.mxu0 %v4774_v6  ;;  %1433 = vmatprep.mubr.bf16.mxu1 %v4776_v7  ;;  %v4869_v5 = vld [vmem:[%s5583_s7 + $0x2e0] ss:$8 sps:$4 sm:$0xff]   ;;  %v4870_v6 = vld [vmem:[%s5583_s7 + $0x1f4] ss:$8 sps:$4 sm:$0xff]  }
 0x266   : > { %v4872_v7 = vld [vmem:[%s5583_s7 + $0x2f4] ss:$8 sps:$4 sm:$0xff]  }
 0x26c   : > { %1370 = vmatmul.mubr.bf16.gmra.mrb[28].mxu0 %v4778_v8  ;;  %1434 = vmatmul.mubr.bf16.gmra.mrb[28].mxu1 %v4779_v9  ;;  %v4874_v8 = vld [vmem:[%s5583_s7 + $0x1f0] ss:$8 sps:$4 sm:$0xff]  }
 0x26d   : > { %1763 = vmatprep.mubr.bf16.mxu1 %v4782_v10  ;;  %2213 = vmatprep.mubr.bf16.mxu0 %v4785_v11  ;;  %v4875_v9 = vld [vmem:[%s5583_s7 + $0x2f0] ss:$8 sps:$4 sm:$0xff]  }
 0x274   : > { %1764 = vmatmul.mubr.bf16.vlgmr.msra.gmra.mrb[32].mxu1 %v4780_v12  ;;  %2214 = vmatmul.mubr.bf16.vlgmr.msra.gmra.mrb[32].mxu0 %v4783_v13  ;;  %v961_v12 = vld [vmem:[#allocation2] sm:$0xff] }
 0x275   : > { %1771 = vmatprep.mubr.bf16.mxu1 %v4786_v14  ;;  %2221 = vmatprep.mubr.bf16.mxu0 %v4788_v15  ;;  %v977_v14 = vld [vmem:[#allocation2 + $0x180] sm:$0xff] }
 0x27c   : > { %1772 = vmatmul.mubr.bf16.gmra.mrb[36].mxu1 %v4790_v16  ;;  %2222 = vmatmul.mubr.bf16.gmra.mrb[36].mxu0 %v4791_v17 }
 0x27d   : > { %1779 = vmatprep.mubr.bf16.mxu1 %v4792_v18  ;;  %2229 = vmatprep.mubr.bf16.mxu0 %v4794_v19 }
 0x284   : > { %1780 = vmatmul.mubr.bf16.gmra.mrb[40].mxu1 %v4796_v20  ;;  %2230 = vmatmul.mubr.bf16.gmra.mrb[40].mxu0 %v4797_v21  ;;  %v962_v20 = vld [vmem:[#allocation2 + $0x18] sm:$0xff] }
 0x285   : > { %1787 = vmatprep.mubr.bf16.mxu1 %v4798_v22  ;;  %2237 = vmatprep.mubr.bf16.mxu0 %v4800_v23  ;;  %v978_v22 = vld [vmem:[#allocation2 + $0x198] sm:$0xff] }
 0x28c   : > { %1788 = vmatmul.mubr.bf16.gmra.mrb[44].mxu1 %v4802_v24  ;;  %2238 = vmatmul.mubr.bf16.gmra.mrb[44].mxu0 %v4803_v26 }
 0x28d   : > { %1795 = vmatprep.mubr.bf16.mxu1 %v4804_v27  ;;  %2245 = vmatprep.mubr.bf16.mxu0 %v4806_v28 }
 0x294   : > { %1796 = vmatmul.mubr.bf16.gmra.mrb[48].mxu1 %v4808_v29  ;;  %2246 = vmatmul.mubr.bf16.gmra.mrb[48].mxu0 %v4809_v25 }
 0x295   : > { %1803 = vmatprep.mubr.bf16.mxu1 %v4810_v30  ;;  %2253 = vmatprep.mubr.bf16.mxu0 %v4812_v31 }
 0x29c   : > { %1804 = vmatmul.mubr.bf16.gmra.mrb[52].mxu1 %v4814_v32  ;;  %2254 = vmatmul.mubr.bf16.gmra.mrb[52].mxu0 %v4815_v33  ;;  %v963_v32 = vld [vmem:[#allocation2 + $0x30] sm:$0xff] }
 0x29d   : > { %1811 = vmatprep.mubr.bf16.mxu1 %v4816_v34  ;;  %2261 = vmatprep.mubr.bf16.mxu0 %v4818_v35  ;;  %v979_v34 = vld [vmem:[#allocation2 + $0x1b0] sm:$0xff] }
 0x2a4   : > { %1812 = vmatmul.mubr.bf16.gmra.mrb[56].mxu1 %v4820_v36  ;;  %2262 = vmatmul.mubr.bf16.gmra.mrb[56].mxu0 %v4821_v37 }
 0x2a5   : > { %1819 = vmatprep.mubr.bf16.mxu1 %v4822_v38  ;;  %2269 = vmatprep.mubr.bf16.mxu0 %v4824_v39 }
 0x2ac   : > { %1820 = vmatmul.mubr.bf16.gmra.mrb[60].mxu1 %v4826_v40  ;;  %2270 = vmatmul.mubr.bf16.gmra.mrb[60].mxu0 %v4827_v41  ;;  %v964_v40 = vld [vmem:[#allocation2 + $0x48] sm:$0xff] }
 0x2ad   : > { %1827 = vmatprep.mubr.bf16.mxu1 %v4828_v42  ;;  %2277 = vmatprep.mubr.bf16.mxu0 %v4830_v43  ;;  %v980_v42 = vld [vmem:[#allocation2 + $0x1c8] sm:$0xff] }
 0x2b4   : > { %1828 = vmatmul.mubr.bf16.gmra.mrb[64].mxu1 %v4832_v44  ;;  %2278 = vmatmul.mubr.bf16.gmra.mrb[64].mxu0 %v4833_v45 }
 0x2b5   : > { %1835 = vmatprep.mubr.bf16.mxu1 %v4834_v46  ;;  %2285 = vmatprep.mubr.bf16.mxu0 %v4836_v47 }
 0x2bc   : > { %1836 = vmatmul.mubr.bf16.gmra.mrb[68].mxu1 %v4838_v48  ;;  %2286 = vmatmul.mubr.bf16.gmra.mrb[68].mxu0 %v4839_v49 }
 0x2bd   : > { %1843 = vmatprep.mubr.bf16.mxu1 %v4840_v50  ;;  %2293 = vmatprep.mubr.bf16.mxu0 %v4842_v51 }
 0x2c4   : > { %1844 = vmatmul.mubr.bf16.gmra.mrb[72].mxu1 %v4844_v52  ;;  %2294 = vmatmul.mubr.bf16.gmra.mrb[72].mxu0 %v4845_v53  ;;  %v965_v52 = vld [vmem:[#allocation2 + $0x60] sm:$0xff] }
 0x2c5   : > { %1851 = vmatprep.mubr.bf16.mxu1 %v4846_v54  ;;  %2301 = vmatprep.mubr.bf16.mxu0 %v4848_v55  ;;  %v981_v54 = vld [vmem:[#allocation2 + $0x1e0] sm:$0xff] }
 0x2cc   : > { %1852 = vmatmul.mubr.bf16.gmra.mrb[76].mxu1 %v4850_v56  ;;  %2302 = vmatmul.mubr.bf16.gmra.mrb[76].mxu0 %v4851_v57 }
 0x2cd   : > { %1859 = vmatprep.mubr.bf16.mxu1 %v4852_v58  ;;  %2309 = vmatprep.mubr.bf16.mxu0 %v4854_v59 }
 0x2d4   : > { %1860 = vmatmul.mubr.bf16.gmra.mrb[80].mxu1 %v4856_v60  ;;  %2310 = vmatmul.mubr.bf16.gmra.mrb[80].mxu0 %v4857_v61  ;;  %v966_v60 = vld [vmem:[#allocation2 + $0x78] sm:$0xff] }
 0x2d5   : > { %1867 = vmatprep.mubr.bf16.mxu1 %v4858_v62  ;;  %2317 = vmatprep.mubr.bf16.mxu0 %v4860_v63  ;;  %v982_v62 = vld [vmem:[#allocation2 + $0x1f8] sm:$0xff] }
 0x2dc   : > { %1868 = vmatmul.mubr.bf16.gmra.mrb[84].mxu1 %v4862_v0  ;;  %2318 = vmatmul.mubr.bf16.gmra.mrb[84].mxu0 %v4863_v1 }
 0x2dd   : > { %1875 = vmatprep.mubr.bf16.mxu1 %v4864_v2  ;;  %2325 = vmatprep.mubr.bf16.mxu0 %v4866_v3 }
 0x2e4   : > { %1876 = vmatmul.mubr.bf16.gmra.mrb[88].mxu1 %v4868_v4  ;;  %2326 = vmatmul.mubr.bf16.gmra.mrb[88].mxu0 %v4869_v5 }
 0x2e5   : > { %1883 = vmatprep.mubr.bf16.mxu1 %v4870_v6  ;;  %2333 = vmatprep.mubr.bf16.mxu0 %v4872_v7 }
 0x2ec   : > { %1884 = vmatmul.mubr.bf16.gmra.mrb[92].mxu1 %v4874_v8  ;;  %2334 = vmatmul.mubr.bf16.gmra.mrb[92].mxu0 %v4875_v9  ;;  %v967_v8 = vld [vmem:[#allocation2 + $0x90] sm:$0xff] }
 0x307   : > { %v3870_v10 = vpop.f32.mrb[0].mxu0  ;;  %v3918_v11 = vpop.f32.mrb[0].mxu1 }
 0x308   : > { %v3871_v13 = vpop.f32.mrb[1].mxu0  ;;  %v3919_v15 = vpop.f32.mrb[1].mxu1 }
 0x309   : > { %v3872_v16 = vadd.f32 %v3871_v13, %v3870_v10  ;;  %v3920_v17 = vadd.f32 %v3919_v15, %v3918_v11  ;;  %v3873_v18 = vpop.f32.mrb[2].mxu0  ;;  %v3921_v19 = vpop.f32.mrb[2].mxu1  ;;  %v983_v10 = vld [vmem:[#allocation2 + $0x210] sm:$0xff] }
 0x30a   : > { %v3874_v21 = vpop.f32.mrb[3].mxu0  ;;  %v3922_v23 = vpop.f32.mrb[3].mxu1 }
 0x30b   : > { %v1442_v24 = vadd.f32 %v3872_v16, %v961_v12  ;;  %v1458_v26 = vadd.f32 %v3920_v17, %v977_v14  ;;  %v3875_v27 = vadd.f32 %v3874_v21, %v3873_v18  ;;  %v3923_v28 = vadd.f32 %v3922_v23, %v3921_v19  ;;  %v968_v16 = vld [vmem:[#allocation2 + $0xa8] sm:$0xff] }
 0x30c   : > { %v984_v18 = vld [vmem:[#allocation2 + $0x228] sm:$0xff] }
 0x30d   : > { %1474 = vst [vmem:[#allocation2] sm:$0xff] %v1442_v24  ;;  %1490 = vst [vmem:[#allocation2 + $0x180] sm:$0xff] %v1458_v26  ;;  %v1443_v29 = vadd.f32 %v3875_v27, %v962_v20  ;;  %v1459_v25 = vadd.f32 %v3923_v28, %v978_v22 }
 0x30f   : > { %1475 = vst [vmem:[#allocation2 + $0x18] sm:$0xff] %v1443_v29  ;;  %1491 = vst [vmem:[#allocation2 + $0x198] sm:$0xff] %v1459_v25  ;;  %v3876_v30 = vpop.f32.mrb[4].mxu0  ;;  %v3924_v31 = vpop.f32.mrb[4].mxu1  ;;  %v969_v29 = vld [vmem:[#allocation2 + $0xc0] sm:$0xff] }
 0x310   : > { %v3877_v33 = vpop.f32.mrb[5].mxu0  ;;  %v3925_v35 = vpop.f32.mrb[5].mxu1 }
 0x311   : > { %v3878_v36 = vadd.f32 %v3877_v33, %v3876_v30  ;;  %v3926_v37 = vadd.f32 %v3925_v35, %v3924_v31  ;;  %v3879_v38 = vpop.f32.mrb[6].mxu0  ;;  %v3927_v39 = vpop.f32.mrb[6].mxu1  ;;  %v985_v30 = vld [vmem:[#allocation2 + $0x240] sm:$0xff] }
 0x312   : > { %v3880_v41 = vpop.f32.mrb[7].mxu0  ;;  %v3928_v43 = vpop.f32.mrb[7].mxu1 }
 0x313   : > { %v1444_v44 = vadd.f32 %v3878_v36, %v963_v32  ;;  %v1460_v45 = vadd.f32 %v3926_v37, %v979_v34  ;;  %v3881_v46 = vadd.f32 %v3880_v41, %v3879_v38  ;;  %v3929_v47 = vadd.f32 %v3928_v43, %v3927_v39  ;;  %v970_v36 = vld [vmem:[#allocation2 + $0xd8] sm:$0xff] }
 0x314   : > { %v986_v38 = vld [vmem:[#allocation2 + $0x258] sm:$0xff] }
 0x315   : > { %1476 = vst [vmem:[#allocation2 + $0x30] sm:$0xff] %v1444_v44  ;;  %1492 = vst [vmem:[#allocation2 + $0x1b0] sm:$0xff] %v1460_v45  ;;  %v1445_v48 = vadd.f32 %v3881_v46, %v964_v40  ;;  %v1461_v49 = vadd.f32 %v3929_v47, %v980_v42 }
 0x317   : > { %1477 = vst [vmem:[#allocation2 + $0x48] sm:$0xff] %v1445_v48  ;;  %1493 = vst [vmem:[#allocation2 + $0x1c8] sm:$0xff] %v1461_v49  ;;  %v3882_v50 = vpop.f32.mrb[8].mxu0  ;;  %v3930_v51 = vpop.f32.mrb[8].mxu1  ;;  %v971_v48 = vld [vmem:[#allocation2 + $0xf0] sm:$0xff] }
 0x318   : > { %v3883_v53 = vpop.f32.mrb[9].mxu0  ;;  %v3931_v55 = vpop.f32.mrb[9].mxu1 }
 0x319   : > { %v3884_v56 = vadd.f32 %v3883_v53, %v3882_v50  ;;  %v3932_v57 = vadd.f32 %v3931_v55, %v3930_v51  ;;  %v3885_v58 = vpop.f32.mrb[10].mxu0  ;;  %v3933_v59 = vpop.f32.mrb[10].mxu1  ;;  %v987_v50 = vld [vmem:[#allocation2 + $0x270] sm:$0xff] }
 0x31a   : > { %v3886_v61 = vpop.f32.mrb[11].mxu0  ;;  %v3934_v63 = vpop.f32.mrb[11].mxu1 }
 0x31b   : > { %v1446_v0 = vadd.f32 %v3884_v56, %v965_v52  ;;  %v1462_v1 = vadd.f32 %v3932_v57, %v981_v54  ;;  %v3887_v2 = vadd.f32 %v3886_v61, %v3885_v58  ;;  %v3935_v3 = vadd.f32 %v3934_v63, %v3933_v59  ;;  %v972_v56 = vld [vmem:[#allocation2 + $0x108] sm:$0xff] }
 0x31c   : > { %v988_v58 = vld [vmem:[#allocation2 + $0x288] sm:$0xff] }
 0x31d   : > { %1478 = vst [vmem:[#allocation2 + $0x60] sm:$0xff] %v1446_v0  ;;  %1494 = vst [vmem:[#allocation2 + $0x1e0] sm:$0xff] %v1462_v1  ;;  %v1447_v4 = vadd.f32 %v3887_v2, %v966_v60  ;;  %v1463_v5 = vadd.f32 %v3935_v3, %v982_v62 }
 0x31f   : > { %1479 = vst [vmem:[#allocation2 + $0x78] sm:$0xff] %v1447_v4  ;;  %1495 = vst [vmem:[#allocation2 + $0x1f8] sm:$0xff] %v1463_v5  ;;  %v3888_v6 = vpop.f32.mrb[12].mxu0  ;;  %v3936_v7 = vpop.f32.mrb[12].mxu1  ;;  %v973_v4 = vld [vmem:[#allocation2 + $0x120] sm:$0xff] }
 0x320   : > { %v3889_v9 = vpop.f32.mrb[13].mxu0  ;;  %v3937_v11 = vpop.f32.mrb[13].mxu1 }
 0x321   : > { %v3890_v12 = vadd.f32 %v3889_v9, %v3888_v6  ;;  %v3938_v13 = vadd.f32 %v3937_v11, %v3936_v7  ;;  %v3891_v14 = vpop.f32.mrb[14].mxu0  ;;  %v3939_v15 = vpop.f32.mrb[14].mxu1  ;;  %v989_v6 = vld [vmem:[#allocation2 + $0x2a0] sm:$0xff] }
 0x322   : > { %v3892_v17 = vpop.f32.mrb[15].mxu0  ;;  %v3940_v19 = vpop.f32.mrb[15].mxu1 }
 0x323   : > { %v1448_v20 = vadd.f32 %v3890_v12, %v967_v8  ;;  %v1464_v21 = vadd.f32 %v3938_v13, %v983_v10  ;;  %v3893_v22 = vadd.f32 %v3892_v17, %v3891_v14  ;;  %v3941_v23 = vadd.f32 %v3940_v19, %v3939_v15  ;;  %v974_v12 = vld [vmem:[#allocation2 + $0x138] sm:$0xff] }
 0x324   : > { %v990_v14 = vld [vmem:[#allocation2 + $0x2b8] sm:$0xff] }
 0x325   : > { %1480 = vst [vmem:[#allocation2 + $0x90] sm:$0xff] %v1448_v20  ;;  %1496 = vst [vmem:[#allocation2 + $0x210] sm:$0xff] %v1464_v21  ;;  %v1449_v24 = vadd.f32 %v3893_v22, %v968_v16  ;;  %v1465_v26 = vadd.f32 %v3941_v23, %v984_v18 }
 0x327   : > { %1481 = vst [vmem:[#allocation2 + $0xa8] sm:$0xff] %v1449_v24  ;;  %1497 = vst [vmem:[#allocation2 + $0x228] sm:$0xff] %v1465_v26  ;;  %v3894_v27 = vpop.f32.mrb[16].mxu0  ;;  %v3942_v28 = vpop.f32.mrb[16].mxu1  ;;  %v975_v24 = vld [vmem:[#allocation2 + $0x150] sm:$0xff] }
 0x328   : > { %v3895_v25 = vpop.f32.mrb[17].mxu0  ;;  %v3943_v31 = vpop.f32.mrb[17].mxu1 }
 0x329   : > { %v3896_v32 = vadd.f32 %v3895_v25, %v3894_v27  ;;  %v3944_v33 = vadd.f32 %v3943_v31, %v3942_v28  ;;  %v3897_v34 = vpop.f32.mrb[18].mxu0  ;;  %v3945_v35 = vpop.f32.mrb[18].mxu1  ;;  %v991_v27 = vld [vmem:[#allocation2 + $0x2d0] sm:$0xff] }
 0x32a   : > { %v3898_v37 = vpop.f32.mrb[19].mxu0  ;;  %v3946_v39 = vpop.f32.mrb[19].mxu1 }
 0x32b   : > { %v1450_v40 = vadd.f32 %v3896_v32, %v969_v29  ;;  %v1466_v41 = vadd.f32 %v3944_v33, %v985_v30  ;;  %v3899_v42 = vadd.f32 %v3898_v37, %v3897_v34  ;;  %v3947_v43 = vadd.f32 %v3946_v39, %v3945_v35  ;;  %v976_v32 = vld [vmem:[#allocation2 + $0x168] sm:$0xff] }
 0x32c   : > { %v992_v34 = vld [vmem:[#allocation2 + $0x2e8] sm:$0xff] }
 0x32d   : > { %1482 = vst [vmem:[#allocation2 + $0xc0] sm:$0xff] %v1450_v40  ;;  %1498 = vst [vmem:[#allocation2 + $0x240] sm:$0xff] %v1466_v41  ;;  %v1451_v44 = vadd.f32 %v3899_v42, %v970_v36  ;;  %v1467_v45 = vadd.f32 %v3947_v43, %v986_v38 }
 0x32f   : > { %1483 = vst [vmem:[#allocation2 + $0xd8] sm:$0xff] %v1451_v44  ;;  %1499 = vst [vmem:[#allocation2 + $0x258] sm:$0xff] %v1467_v45  ;;  %v3900_v46 = vpop.f32.mrb[20].mxu0  ;;  %v3948_v47 = vpop.f32.mrb[20].mxu1  ;;  %v1506_v44 = vld [vmem:[#allocation2 + $0x8] sm:$0xff] }
 0x330   : > { %v3901_v49 = vpop.f32.mrb[21].mxu0  ;;  %v3949_v51 = vpop.f32.mrb[21].mxu1 }
 0x331   : > { %v3902_v52 = vadd.f32 %v3901_v49, %v3900_v46  ;;  %v3950_v53 = vadd.f32 %v3949_v51, %v3948_v47  ;;  %v3903_v54 = vpop.f32.mrb[22].mxu0  ;;  %v3951_v55 = vpop.f32.mrb[22].mxu1  ;;  %v1956_v46 = vld [vmem:[#allocation2 + $0x10] sm:$0xff] }
 0x332   : > { %v3904_v57 = vpop.f32.mrb[23].mxu0  ;;  %v3952_v59 = vpop.f32.mrb[23].mxu1 }
 0x333   : > { %v1452_v60 = vadd.f32 %v3902_v52, %v971_v48  ;;  %v1468_v61 = vadd.f32 %v3950_v53, %v987_v50  ;;  %v3905_v62 = vadd.f32 %v3904_v57, %v3903_v54  ;;  %v3953_v63 = vadd.f32 %v3952_v59, %v3951_v55  ;;  %v1507_v52 = vld [vmem:[#allocation2 + $0x20] sm:$0xff]  ;;  %v1957_v54 = vld [vmem:[#allocation2 + $0x28] sm:$0xff] }
 0x335   : > { %1484 = vst [vmem:[#allocation2 + $0xf0] sm:$0xff] %v1452_v60  ;;  %1500 = vst [vmem:[#allocation2 + $0x270] sm:$0xff] %v1468_v61  ;;  %v1453_v0 = vadd.f32 %v3905_v62, %v972_v56  ;;  %v1469_v1 = vadd.f32 %v3953_v63, %v988_v58 }
 0x337   : > { %1485 = vst [vmem:[#allocation2 + $0x108] sm:$0xff] %v1453_v0  ;;  %1501 = vst [vmem:[#allocation2 + $0x288] sm:$0xff] %v1469_v1  ;;  %v3906_v2 = vpop.f32.mrb[24].mxu0  ;;  %v3954_v3 = vpop.f32.mrb[24].mxu1  ;;  %v1508_v0 = vld [vmem:[#allocation2 + $0x38] sm:$0xff] }
 0x338   : > { %v3907_v5 = vpop.f32.mrb[25].mxu0  ;;  %v3955_v7 = vpop.f32.mrb[25].mxu1 }
 0x339   : > { %v3908_v8 = vadd.f32 %v3907_v5, %v3906_v2  ;;  %v3956_v9 = vadd.f32 %v3955_v7, %v3954_v3  ;;  %v3909_v10 = vpop.f32.mrb[26].mxu0  ;;  %v3957_v11 = vpop.f32.mrb[26].mxu1  ;;  %v1958_v2 = vld [vmem:[#allocation2 + $0x40] sm:$0xff] }
 0x33a   : > { %v3910_v13 = vpop.f32.mrb[27].mxu0  ;;  %v3958_v15 = vpop.f32.mrb[27].mxu1 }
 0x33b   : > { %v1454_v16 = vadd.f32 %v3908_v8, %v973_v4  ;;  %v1470_v17 = vadd.f32 %v3956_v9, %v989_v6  ;;  %v3911_v18 = vadd.f32 %v3910_v13, %v3909_v10  ;;  %v3959_v19 = vadd.f32 %v3958_v15, %v3957_v11  ;;  %v1509_v8 = vld [vmem:[#allocation2 + $0x50] sm:$0xff]  ;;  %v1959_v10 = vld [vmem:[#allocation2 + $0x58] sm:$0xff] }
 0x33d   : > { %1486 = vst [vmem:[#allocation2 + $0x120] sm:$0xff] %v1454_v16  ;;  %1502 = vst [vmem:[#allocation2 + $0x2a0] sm:$0xff] %v1470_v17  ;;  %v1455_v20 = vadd.f32 %v3911_v18, %v974_v12  ;;  %v1471_v21 = vadd.f32 %v3959_v19, %v990_v14 }
 0x33f   : > { %1487 = vst [vmem:[#allocation2 + $0x138] sm:$0xff] %v1455_v20  ;;  %1503 = vst [vmem:[#allocation2 + $0x2b8] sm:$0xff] %v1471_v21  ;;  %v3912_v22 = vpop.f32.mrb[28].mxu0  ;;  %v3960_v23 = vpop.f32.mrb[28].mxu1  ;;  %v1510_v20 = vld [vmem:[#allocation2 + $0x68] sm:$0xff] }
 0x340   : > { %v3913_v26 = vpop.f32.mrb[29].mxu0  ;;  %v3961_v28 = vpop.f32.mrb[29].mxu1 }
 0x341   : > { %v3914_v29 = vadd.f32 %v3913_v26, %v3912_v22  ;;  %v3962_v25 = vadd.f32 %v3961_v28, %v3960_v23  ;;  %v3915_v30 = vpop.f32.mrb[30].mxu0  ;;  %v3963_v31 = vpop.f32.mrb[30].mxu1  ;;  %v1960_v22 = vld [vmem:[#allocation2 + $0x70] sm:$0xff] }
 0x342   : > { %v3916_v33 = vpop.f32.mrb[31].mxu0  ;;  %v3964_v35 = vpop.f32.mrb[31].mxu1 }
 0x343   : > { %v1456_v36 = vadd.f32 %v3914_v29, %v975_v24  ;;  %v1472_v37 = vadd.f32 %v3962_v25, %v991_v27  ;;  %v3917_v38 = vadd.f32 %v3916_v33, %v3915_v30  ;;  %v3965_v39 = vadd.f32 %v3964_v35, %v3963_v31  ;;  %v1511_v29 = vld [vmem:[#allocation2 + $0x80] sm:$0xff]  ;;  %v1961_v30 = vld [vmem:[#allocation2 + $0x88] sm:$0xff] }
 0x345   : > { %1488 = vst [vmem:[#allocation2 + $0x150] sm:$0xff] %v1456_v36  ;;  %1504 = vst [vmem:[#allocation2 + $0x2d0] sm:$0xff] %v1472_v37  ;;  %v1457_v40 = vadd.f32 %v3917_v38, %v976_v32  ;;  %v1473_v41 = vadd.f32 %v3965_v39, %v992_v34 }
 0x347   : > { %1489 = vst [vmem:[#allocation2 + $0x168] sm:$0xff] %v1457_v40  ;;  %1505 = vst [vmem:[#allocation2 + $0x2e8] sm:$0xff] %v1473_v41  ;;  %v3982_v42 = vpop.f32.mrb[32].mxu1  ;;  %v4094_v43 = vpop.f32.mrb[32].mxu0  ;;  %v1512_v40 = vld [vmem:[#allocation2 + $0x98] sm:$0xff] }
 0x348   : > { %v3983_v45 = vpop.f32.mrb[33].mxu1  ;;  %v4095_v47 = vpop.f32.mrb[33].mxu0 }
 0x349   : > { %v3984_v48 = vadd.f32 %v3983_v45, %v3982_v42  ;;  %v4096_v49 = vadd.f32 %v4095_v47, %v4094_v43  ;;  %v3985_v50 = vpop.f32.mrb[34].mxu1  ;;  %v4097_v51 = vpop.f32.mrb[34].mxu0  ;;  %v1962_v42 = vld [vmem:[#allocation2 + $0xa0] sm:$0xff] }
 0x34a   : > { %v3986_v53 = vpop.f32.mrb[35].mxu1  ;;  %v4098_v55 = vpop.f32.mrb[35].mxu0 }
 0x34b   : > { %v1892_v56 = vadd.f32 %v3984_v48, %v1506_v44  ;;  %v2342_v57 = vadd.f32 %v4096_v49, %v1956_v46  ;;  %v3987_v58 = vadd.f32 %v3986_v53, %v3985_v50  ;;  %v4099_v59 = vadd.f32 %v4098_v55, %v4097_v51  ;;  %v1513_v48 = vld [vmem:[#allocation2 + $0xb0] sm:$0xff]  ;;  %v1963_v50 = vld [vmem:[#allocation2 + $0xb8] sm:$0xff] }
 0x34d   : > { %1924 = vst [vmem:[#allocation2 + $0x8] sm:$0xff] %v1892_v56  ;;  %2374 = vst [vmem:[#allocation2 + $0x10] sm:$0xff] %v2342_v57  ;;  %v1893_v60 = vadd.f32 %v3987_v58, %v1507_v52  ;;  %v2343_v61 = vadd.f32 %v4099_v59, %v1957_v54 }
 0x34f   : > { %1925 = vst [vmem:[#allocation2 + $0x20] sm:$0xff] %v1893_v60  ;;  %2375 = vst [vmem:[#allocation2 + $0x28] sm:$0xff] %v2343_v61  ;;  %v3988_v62 = vpop.f32.mrb[36].mxu1  ;;  %v4100_v63 = vpop.f32.mrb[36].mxu0  ;;  %v1514_v60 = vld [vmem:[#allocation2 + $0xc8] sm:$0xff] }
 0x350   : > { %v3989_v1 = vpop.f32.mrb[37].mxu1  ;;  %v4101_v3 = vpop.f32.mrb[37].mxu0 }
 0x351   : > { %v3990_v4 = vadd.f32 %v3989_v1, %v3988_v62  ;;  %v4102_v5 = vadd.f32 %v4101_v3, %v4100_v63  ;;  %v3991_v6 = vpop.f32.mrb[38].mxu1  ;;  %v4103_v7 = vpop.f32.mrb[38].mxu0  ;;  %v1964_v62 = vld [vmem:[#allocation2 + $0xd0] sm:$0xff] }
 0x352   : > { %v3992_v9 = vpop.f32.mrb[39].mxu1  ;;  %v4104_v11 = vpop.f32.mrb[39].mxu0 }
 0x353   : > { %v1894_v12 = vadd.f32 %v3990_v4, %v1508_v0  ;;  %v2344_v13 = vadd.f32 %v4102_v5, %v1958_v2  ;;  %v3993_v14 = vadd.f32 %v3992_v9, %v3991_v6  ;;  %v4105_v15 = vadd.f32 %v4104_v11, %v4103_v7  ;;  %v1515_v4 = vld [vmem:[#allocation2 + $0xe0] sm:$0xff]  ;;  %v1965_v6 = vld [vmem:[#allocation2 + $0xe8] sm:$0xff] }
 0x355   : > { %1926 = vst [vmem:[#allocation2 + $0x38] sm:$0xff] %v1894_v12  ;;  %2376 = vst [vmem:[#allocation2 + $0x40] sm:$0xff] %v2344_v13  ;;  %v1895_v16 = vadd.f32 %v3993_v14, %v1509_v8  ;;  %v2345_v17 = vadd.f32 %v4105_v15, %v1959_v10 }
 0x357   : > { %1927 = vst [vmem:[#allocation2 + $0x50] sm:$0xff] %v1895_v16  ;;  %2377 = vst [vmem:[#allocation2 + $0x58] sm:$0xff] %v2345_v17  ;;  %v3994_v18 = vpop.f32.mrb[40].mxu1  ;;  %v4106_v19 = vpop.f32.mrb[40].mxu0  ;;  %v1516_v16 = vld [vmem:[#allocation2 + $0xf8] sm:$0xff] }
 0x358   : > { %v3995_v21 = vpop.f32.mrb[41].mxu1  ;;  %v4107_v23 = vpop.f32.mrb[41].mxu0 }
 0x359   : > { %v3996_v24 = vadd.f32 %v3995_v21, %v3994_v18  ;;  %v4108_v26 = vadd.f32 %v4107_v23, %v4106_v19  ;;  %v3997_v27 = vpop.f32.mrb[42].mxu1  ;;  %v4109_v28 = vpop.f32.mrb[42].mxu0  ;;  %v1966_v18 = vld [vmem:[#allocation2 + $0x100] sm:$0xff] }
 0x35a   : > { %v3998_v25 = vpop.f32.mrb[43].mxu1  ;;  %v4110_v31 = vpop.f32.mrb[43].mxu0 }
 0x35b   : > { %v1896_v32 = vadd.f32 %v3996_v24, %v1510_v20  ;;  %v2346_v33 = vadd.f32 %v4108_v26, %v1960_v22  ;;  %v3999_v34 = vadd.f32 %v3998_v25, %v3997_v27  ;;  %v4111_v35 = vadd.f32 %v4110_v31, %v4109_v28  ;;  %v1517_v24 = vld [vmem:[#allocation2 + $0x110] sm:$0xff]  ;;  %v1967_v27 = vld [vmem:[#allocation2 + $0x118] sm:$0xff] }
 0x35d   : > { %1928 = vst [vmem:[#allocation2 + $0x68] sm:$0xff] %v1896_v32  ;;  %2378 = vst [vmem:[#allocation2 + $0x70] sm:$0xff] %v2346_v33  ;;  %v1897_v36 = vadd.f32 %v3999_v34, %v1511_v29  ;;  %v2347_v37 = vadd.f32 %v4111_v35, %v1961_v30 }
 0x35f   : > { %1929 = vst [vmem:[#allocation2 + $0x80] sm:$0xff] %v1897_v36  ;;  %2379 = vst [vmem:[#allocation2 + $0x88] sm:$0xff] %v2347_v37  ;;  %v4000_v38 = vpop.f32.mrb[44].mxu1  ;;  %v4112_v39 = vpop.f32.mrb[44].mxu0  ;;  %v1518_v36 = vld [vmem:[#allocation2 + $0x128] sm:$0xff] }
 0x360   : > { %v4001_v41 = vpop.f32.mrb[45].mxu1  ;;  %v4113_v43 = vpop.f32.mrb[45].mxu0 }
 0x361   : > { %v4002_v44 = vadd.f32 %v4001_v41, %v4000_v38  ;;  %v4114_v45 = vadd.f32 %v4113_v43, %v4112_v39  ;;  %v4003_v46 = vpop.f32.mrb[46].mxu1  ;;  %v4115_v47 = vpop.f32.mrb[46].mxu0  ;;  %v1968_v38 = vld [vmem:[#allocation2 + $0x130] sm:$0xff] }
 0x362   : > { %v4004_v49 = vpop.f32.mrb[47].mxu1  ;;  %v4116_v51 = vpop.f32.mrb[47].mxu0 }
 0x363   : > { %v1898_v52 = vadd.f32 %v4002_v44, %v1512_v40  ;;  %v2348_v53 = vadd.f32 %v4114_v45, %v1962_v42  ;;  %v4005_v54 = vadd.f32 %v4004_v49, %v4003_v46  ;;  %v4117_v55 = vadd.f32 %v4116_v51, %v4115_v47  ;;  %v1519_v44 = vld [vmem:[#allocation2 + $0x140] sm:$0xff]  ;;  %v1969_v46 = vld [vmem:[#allocation2 + $0x148] sm:$0xff] }
 0x365   : > { %1930 = vst [vmem:[#allocation2 + $0x98] sm:$0xff] %v1898_v52  ;;  %2380 = vst [vmem:[#allocation2 + $0xa0] sm:$0xff] %v2348_v53  ;;  %v1899_v56 = vadd.f32 %v4005_v54, %v1513_v48  ;;  %v2349_v57 = vadd.f32 %v4117_v55, %v1963_v50 }
 0x367   : > { %1931 = vst [vmem:[#allocation2 + $0xb0] sm:$0xff] %v1899_v56  ;;  %2381 = vst [vmem:[#allocation2 + $0xb8] sm:$0xff] %v2349_v57  ;;  %v4006_v58 = vpop.f32.mrb[48].mxu1  ;;  %v4118_v59 = vpop.f32.mrb[48].mxu0  ;;  %v1520_v56 = vld [vmem:[#allocation2 + $0x158] sm:$0xff] }
 0x368   : > { %v4007_v61 = vpop.f32.mrb[49].mxu1  ;;  %v4119_v63 = vpop.f32.mrb[49].mxu0 }
 0x369   : > { %v4008_v0 = vadd.f32 %v4007_v61, %v4006_v58  ;;  %v4120_v1 = vadd.f32 %v4119_v63, %v4118_v59  ;;  %v4009_v2 = vpop.f32.mrb[50].mxu1  ;;  %v4121_v3 = vpop.f32.mrb[50].mxu0  ;;  %v1970_v58 = vld [vmem:[#allocation2 + $0x160] sm:$0xff] }
 0x36a   : > { %v4010_v5 = vpop.f32.mrb[51].mxu1  ;;  %v4122_v7 = vpop.f32.mrb[51].mxu0 }
 0x36b   : > { %v1900_v8 = vadd.f32 %v4008_v0, %v1514_v60  ;;  %v2350_v9 = vadd.f32 %v4120_v1, %v1964_v62  ;;  %v4011_v10 = vadd.f32 %v4010_v5, %v4009_v2  ;;  %v4123_v11 = vadd.f32 %v4122_v7, %v4121_v3  ;;  %v1521_v0 = vld [vmem:[#allocation2 + $0x170] sm:$0xff]  ;;  %v1971_v2 = vld [vmem:[#allocation2 + $0x178] sm:$0xff] }
 0x36d   : > { %1932 = vst [vmem:[#allocation2 + $0xc8] sm:$0xff] %v1900_v8  ;;  %2382 = vst [vmem:[#allocation2 + $0xd0] sm:$0xff] %v2350_v9  ;;  %v1901_v12 = vadd.f32 %v4011_v10, %v1515_v4  ;;  %v2351_v13 = vadd.f32 %v4123_v11, %v1965_v6 }
 0x36f   : > { %1933 = vst [vmem:[#allocation2 + $0xe0] sm:$0xff] %v1901_v12  ;;  %2383 = vst [vmem:[#allocation2 + $0xe8] sm:$0xff] %v2351_v13  ;;  %v4012_v14 = vpop.f32.mrb[52].mxu1  ;;  %v4124_v15 = vpop.f32.mrb[52].mxu0  ;;  %v1522_v12 = vld [vmem:[#allocation2 + $0x188] sm:$0xff] }
 0x370   : > { %v4013_v17 = vpop.f32.mrb[53].mxu1  ;;  %v4125_v19 = vpop.f32.mrb[53].mxu0 }
 0x371   : > { %v4014_v20 = vadd.f32 %v4013_v17, %v4012_v14  ;;  %v4126_v21 = vadd.f32 %v4125_v19, %v4124_v15  ;;  %v4015_v22 = vpop.f32.mrb[54].mxu1  ;;  %v4127_v23 = vpop.f32.mrb[54].mxu0  ;;  %v1972_v14 = vld [vmem:[#allocation2 + $0x190] sm:$0xff] }
 0x372   : > { %v4016_v26 = vpop.f32.mrb[55].mxu1  ;;  %v4128_v28 = vpop.f32.mrb[55].mxu0 }
 0x373   : > { %v1902_v29 = vadd.f32 %v4014_v20, %v1516_v16  ;;  %v2352_v25 = vadd.f32 %v4126_v21, %v1966_v18  ;;  %v4017_v30 = vadd.f32 %v4016_v26, %v4015_v22  ;;  %v4129_v31 = vadd.f32 %v4128_v28, %v4127_v23  ;;  %v1523_v20 = vld [vmem:[#allocation2 + $0x1a0] sm:$0xff]  ;;  %v1973_v22 = vld [vmem:[#allocation2 + $0x1a8] sm:$0xff] }
 0x375   : > { %1934 = vst [vmem:[#allocation2 + $0xf8] sm:$0xff] %v1902_v29  ;;  %2384 = vst [vmem:[#allocation2 + $0x100] sm:$0xff] %v2352_v25  ;;  %v1903_v32 = vadd.f32 %v4017_v30, %v1517_v24  ;;  %v2353_v33 = vadd.f32 %v4129_v31, %v1967_v27 }
 0x377   : > { %1935 = vst [vmem:[#allocation2 + $0x110] sm:$0xff] %v1903_v32  ;;  %2385 = vst [vmem:[#allocation2 + $0x118] sm:$0xff] %v2353_v33  ;;  %v4018_v34 = vpop.f32.mrb[56].mxu1  ;;  %v4130_v35 = vpop.f32.mrb[56].mxu0  ;;  %v1524_v32 = vld [vmem:[#allocation2 + $0x1b8] sm:$0xff] }
 0x378   : > { %v4019_v37 = vpop.f32.mrb[57].mxu1  ;;  %v4131_v39 = vpop.f32.mrb[57].mxu0 }
 0x379   : > { %v4020_v40 = vadd.f32 %v4019_v37, %v4018_v34  ;;  %v4132_v41 = vadd.f32 %v4131_v39, %v4130_v35  ;;  %v4021_v42 = vpop.f32.mrb[58].mxu1  ;;  %v4133_v43 = vpop.f32.mrb[58].mxu0  ;;  %v1974_v34 = vld [vmem:[#allocation2 + $0x1c0] sm:$0xff] }
 0x37a   : > { %v4022_v45 = vpop.f32.mrb[59].mxu1  ;;  %v4134_v47 = vpop.f32.mrb[59].mxu0 }
 0x37b   : > { %v1904_v48 = vadd.f32 %v4020_v40, %v1518_v36  ;;  %v2354_v49 = vadd.f32 %v4132_v41, %v1968_v38  ;;  %v4023_v50 = vadd.f32 %v4022_v45, %v4021_v42  ;;  %v4135_v51 = vadd.f32 %v4134_v47, %v4133_v43  ;;  %v1525_v40 = vld [vmem:[#allocation2 + $0x1d0] sm:$0xff]  ;;  %v1975_v42 = vld [vmem:[#allocation2 + $0x1d8] sm:$0xff] }
 0x37d   : > { %1936 = vst [vmem:[#allocation2 + $0x128] sm:$0xff] %v1904_v48  ;;  %2386 = vst [vmem:[#allocation2 + $0x130] sm:$0xff] %v2354_v49  ;;  %v1905_v52 = vadd.f32 %v4023_v50, %v1519_v44  ;;  %v2355_v53 = vadd.f32 %v4135_v51, %v1969_v46 }
 0x37f   : > { %1937 = vst [vmem:[#allocation2 + $0x140] sm:$0xff] %v1905_v52  ;;  %2387 = vst [vmem:[#allocation2 + $0x148] sm:$0xff] %v2355_v53  ;;  %v4024_v54 = vpop.f32.mrb[60].mxu1  ;;  %v4136_v55 = vpop.f32.mrb[60].mxu0  ;;  %v1526_v52 = vld [vmem:[#allocation2 + $0x1e8] sm:$0xff] }
 0x380   : > { %v4025_v57 = vpop.f32.mrb[61].mxu1  ;;  %v4137_v59 = vpop.f32.mrb[61].mxu0 }
 0x381   : > { %v4026_v60 = vadd.f32 %v4025_v57, %v4024_v54  ;;  %v4138_v61 = vadd.f32 %v4137_v59, %v4136_v55  ;;  %v4027_v62 = vpop.f32.mrb[62].mxu1  ;;  %v4139_v63 = vpop.f32.mrb[62].mxu0  ;;  %v1976_v54 = vld [vmem:[#allocation2 + $0x1f0] sm:$0xff] }
 0x382   : > { %v4028_v1 = vpop.f32.mrb[63].mxu1  ;;  %v4140_v3 = vpop.f32.mrb[63].mxu0 }
 0x383   : > { %v1906_v4 = vadd.f32 %v4026_v60, %v1520_v56  ;;  %v2356_v5 = vadd.f32 %v4138_v61, %v1970_v58  ;;  %v4029_v6 = vadd.f32 %v4028_v1, %v4027_v62  ;;  %v4141_v7 = vadd.f32 %v4140_v3, %v4139_v63  ;;  %v1527_v60 = vld [vmem:[#allocation2 + $0x200] sm:$0xff]  ;;  %v1977_v62 = vld [vmem:[#allocation2 + $0x208] sm:$0xff] }
 0x385   : > { %1938 = vst [vmem:[#allocation2 + $0x158] sm:$0xff] %v1906_v4  ;;  %2388 = vst [vmem:[#allocation2 + $0x160] sm:$0xff] %v2356_v5  ;;  %v1907_v8 = vadd.f32 %v4029_v6, %v1521_v0  ;;  %v2357_v9 = vadd.f32 %v4141_v7, %v1971_v2 }
 0x387   : > { %1939 = vst [vmem:[#allocation2 + $0x170] sm:$0xff] %v1907_v8  ;;  %2389 = vst [vmem:[#allocation2 + $0x178] sm:$0xff] %v2357_v9  ;;  %v4030_v10 = vpop.f32.mrb[64].mxu1  ;;  %v4142_v11 = vpop.f32.mrb[64].mxu0  ;;  %v1528_v8 = vld [vmem:[#allocation2 + $0x218] sm:$0xff] }
 0x388   : > { %v4031_v13 = vpop.f32.mrb[65].mxu1  ;;  %v4143_v15 = vpop.f32.mrb[65].mxu0 }
 0x389   : > { %v4032_v16 = vadd.f32 %v4031_v13, %v4030_v10  ;;  %v4144_v17 = vadd.f32 %v4143_v15, %v4142_v11  ;;  %v4033_v18 = vpop.f32.mrb[66].mxu1  ;;  %v4145_v19 = vpop.f32.mrb[66].mxu0  ;;  %v1978_v10 = vld [vmem:[#allocation2 + $0x220] sm:$0xff] }
 0x38a   : > { %v4034_v21 = vpop.f32.mrb[67].mxu1  ;;  %v4146_v23 = vpop.f32.mrb[67].mxu0 }
 0x38b   : > { %v1908_v24 = vadd.f32 %v4032_v16, %v1522_v12  ;;  %v2358_v26 = vadd.f32 %v4144_v17, %v1972_v14  ;;  %v4035_v27 = vadd.f32 %v4034_v21, %v4033_v18  ;;  %v4147_v28 = vadd.f32 %v4146_v23, %v4145_v19  ;;  %v1529_v16 = vld [vmem:[#allocation2 + $0x230] sm:$0xff]  ;;  %v1979_v18 = vld [vmem:[#allocation2 + $0x238] sm:$0xff] }
 0x38d   : > { %1940 = vst [vmem:[#allocation2 + $0x188] sm:$0xff] %v1908_v24  ;;  %2390 = vst [vmem:[#allocation2 + $0x190] sm:$0xff] %v2358_v26  ;;  %v1909_v29 = vadd.f32 %v4035_v27, %v1523_v20  ;;  %v2359_v25 = vadd.f32 %v4147_v28, %v1973_v22 }
 0x38f   : > { %1941 = vst [vmem:[#allocation2 + $0x1a0] sm:$0xff] %v1909_v29  ;;  %2391 = vst [vmem:[#allocation2 + $0x1a8] sm:$0xff] %v2359_v25  ;;  %v4036_v30 = vpop.f32.mrb[68].mxu1  ;;  %v4148_v31 = vpop.f32.mrb[68].mxu0  ;;  %v1530_v29 = vld [vmem:[#allocation2 + $0x248] sm:$0xff] }
 0x390   : > { %v4037_v33 = vpop.f32.mrb[69].mxu1  ;;  %v4149_v35 = vpop.f32.mrb[69].mxu0 }
 0x391   : > { %v4038_v36 = vadd.f32 %v4037_v33, %v4036_v30  ;;  %v4150_v37 = vadd.f32 %v4149_v35, %v4148_v31  ;;  %v4039_v38 = vpop.f32.mrb[70].mxu1  ;;  %v4151_v39 = vpop.f32.mrb[70].mxu0  ;;  %v1980_v30 = vld [vmem:[#allocation2 + $0x250] sm:$0xff] }
 0x392   : > { %v4040_v41 = vpop.f32.mrb[71].mxu1  ;;  %v4152_v43 = vpop.f32.mrb[71].mxu0 }
 0x393   : > { %v1910_v44 = vadd.f32 %v4038_v36, %v1524_v32  ;;  %v2360_v45 = vadd.f32 %v4150_v37, %v1974_v34  ;;  %v4041_v46 = vadd.f32 %v4040_v41, %v4039_v38  ;;  %v4153_v47 = vadd.f32 %v4152_v43, %v4151_v39  ;;  %v1531_v36 = vld [vmem:[#allocation2 + $0x260] sm:$0xff]  ;;  %v1981_v38 = vld [vmem:[#allocation2 + $0x268] sm:$0xff] }
 0x395   : > { %1942 = vst [vmem:[#allocation2 + $0x1b8] sm:$0xff] %v1910_v44  ;;  %2392 = vst [vmem:[#allocation2 + $0x1c0] sm:$0xff] %v2360_v45  ;;  %v1911_v48 = vadd.f32 %v4041_v46, %v1525_v40  ;;  %v2361_v49 = vadd.f32 %v4153_v47, %v1975_v42 }
 0x397   : > { %1943 = vst [vmem:[#allocation2 + $0x1d0] sm:$0xff] %v1911_v48  ;;  %2393 = vst [vmem:[#allocation2 + $0x1d8] sm:$0xff] %v2361_v49  ;;  %v4042_v50 = vpop.f32.mrb[72].mxu1  ;;  %v4154_v51 = vpop.f32.mrb[72].mxu0  ;;  %v1532_v48 = vld [vmem:[#allocation2 + $0x278] sm:$0xff] }
 0x398   : > { %v4043_v53 = vpop.f32.mrb[73].mxu1  ;;  %v4155_v55 = vpop.f32.mrb[73].mxu0 }
 0x399   : > { %v4044_v56 = vadd.f32 %v4043_v53, %v4042_v50  ;;  %v4156_v57 = vadd.f32 %v4155_v55, %v4154_v51  ;;  %v4045_v58 = vpop.f32.mrb[74].mxu1  ;;  %v4157_v59 = vpop.f32.mrb[74].mxu0  ;;  %v1982_v50 = vld [vmem:[#allocation2 + $0x280] sm:$0xff] }
 0x39a   : > { %v4046_v61 = vpop.f32.mrb[75].mxu1  ;;  %v4158_v63 = vpop.f32.mrb[75].mxu0 }
 0x39b   : > { %v1912_v0 = vadd.f32 %v4044_v56, %v1526_v52  ;;  %v2362_v1 = vadd.f32 %v4156_v57, %v1976_v54  ;;  %v4047_v2 = vadd.f32 %v4046_v61, %v4045_v58  ;;  %v4159_v3 = vadd.f32 %v4158_v63, %v4157_v59  ;;  %v1533_v56 = vld [vmem:[#allocation2 + $0x290] sm:$0xff]  ;;  %v1983_v58 = vld [vmem:[#allocation2 + $0x298] sm:$0xff] }
 0x39d   : > { %1944 = vst [vmem:[#allocation2 + $0x1e8] sm:$0xff] %v1912_v0  ;;  %2394 = vst [vmem:[#allocation2 + $0x1f0] sm:$0xff] %v2362_v1  ;;  %v1913_v4 = vadd.f32 %v4047_v2, %v1527_v60  ;;  %v2363_v5 = vadd.f32 %v4159_v3, %v1977_v62 }
 0x39f   : > { %1945 = vst [vmem:[#allocation2 + $0x200] sm:$0xff] %v1913_v4  ;;  %2395 = vst [vmem:[#allocation2 + $0x208] sm:$0xff] %v2363_v5  ;;  %v4048_v6 = vpop.f32.mrb[76].mxu1  ;;  %v4160_v7 = vpop.f32.mrb[76].mxu0  ;;  %v1534_v4 = vld [vmem:[#allocation2 + $0x2a8] sm:$0xff] }
 0x3a0   : > { %v4049_v9 = vpop.f32.mrb[77].mxu1  ;;  %v4161_v11 = vpop.f32.mrb[77].mxu0 }
 0x3a1   : > { %v4050_v12 = vadd.f32 %v4049_v9, %v4048_v6  ;;  %v4162_v13 = vadd.f32 %v4161_v11, %v4160_v7  ;;  %v4051_v14 = vpop.f32.mrb[78].mxu1  ;;  %v4163_v15 = vpop.f32.mrb[78].mxu0  ;;  %v1984_v6 = vld [vmem:[#allocation2 + $0x2b0] sm:$0xff] }
 0x3a2   : > { %v4052_v17 = vpop.f32.mrb[79].mxu1  ;;  %v4164_v19 = vpop.f32.mrb[79].mxu0 }
 0x3a3   : > { %v1914_v20 = vadd.f32 %v4050_v12, %v1528_v8  ;;  %v2364_v21 = vadd.f32 %v4162_v13, %v1978_v10  ;;  %v4053_v22 = vadd.f32 %v4052_v17, %v4051_v14  ;;  %v4165_v23 = vadd.f32 %v4164_v19, %v4163_v15  ;;  %v1535_v12 = vld [vmem:[#allocation2 + $0x2c0] sm:$0xff]  ;;  %v1985_v14 = vld [vmem:[#allocation2 + $0x2c8] sm:$0xff] }
 0x3a5   : > { %1946 = vst [vmem:[#allocation2 + $0x218] sm:$0xff] %v1914_v20  ;;  %2396 = vst [vmem:[#allocation2 + $0x220] sm:$0xff] %v2364_v21  ;;  %v1915_v24 = vadd.f32 %v4053_v22, %v1529_v16  ;;  %v2365_v26 = vadd.f32 %v4165_v23, %v1979_v18 }
 0x3a7   : > { %1947 = vst [vmem:[#allocation2 + $0x230] sm:$0xff] %v1915_v24  ;;  %2397 = vst [vmem:[#allocation2 + $0x238] sm:$0xff] %v2365_v26  ;;  %v4054_v27 = vpop.f32.mrb[80].mxu1  ;;  %v4166_v28 = vpop.f32.mrb[80].mxu0  ;;  %v1536_v24 = vld [vmem:[#allocation2 + $0x2d8] sm:$0xff] }
 0x3a8   : > { %v4055_v25 = vpop.f32.mrb[81].mxu1  ;;  %v4167_v31 = vpop.f32.mrb[81].mxu0 }
 0x3a9   : > { %v4056_v32 = vadd.f32 %v4055_v25, %v4054_v27  ;;  %v4168_v33 = vadd.f32 %v4167_v31, %v4166_v28  ;;  %v4057_v34 = vpop.f32.mrb[82].mxu1  ;;  %v4169_v35 = vpop.f32.mrb[82].mxu0  ;;  %v1986_v27 = vld [vmem:[#allocation2 + $0x2e0] sm:$0xff] }
 0x3aa   : > { %v4058_v37 = vpop.f32.mrb[83].mxu1  ;;  %v4170_v39 = vpop.f32.mrb[83].mxu0 }
 0x3ab   : > { %v1916_v40 = vadd.f32 %v4056_v32, %v1530_v29  ;;  %v2366_v41 = vadd.f32 %v4168_v33, %v1980_v30  ;;  %v4059_v42 = vadd.f32 %v4058_v37, %v4057_v34  ;;  %v4171_v43 = vadd.f32 %v4170_v39, %v4169_v35  ;;  %v1537_v32 = vld [vmem:[#allocation2 + $0x2f0] sm:$0xff]  ;;  %v1987_v34 = vld [vmem:[#allocation2 + $0x2f8] sm:$0xff] }
 0x3ad   : > { %1948 = vst [vmem:[#allocation2 + $0x248] sm:$0xff] %v1916_v40  ;;  %2398 = vst [vmem:[#allocation2 + $0x250] sm:$0xff] %v2366_v41  ;;  %v1917_v44 = vadd.f32 %v4059_v42, %v1531_v36  ;;  %v2367_v45 = vadd.f32 %v4171_v43, %v1981_v38  ;;  %v2538_v42 = vld [vmem:[#allocation10] sm:$0xff] (!%p3661_p9)  ;;  %v2539_v43 = vld [vmem:[#allocation10 + $0x8] sm:$0xff] (!%p3661_p9) }
 0x3af   : > { %1949 = vst [vmem:[#allocation2 + $0x260] sm:$0xff] %v1917_v44  ;;  %2399 = vst [vmem:[#allocation2 + $0x268] sm:$0xff] %v2367_v45  ;;  %v4060_v46 = vpop.f32.mrb[84].mxu1  ;;  %v4172_v47 = vpop.f32.mrb[84].mxu0  ;;  %v2540_v44 = vld [vmem:[#allocation10 + $0x10] sm:$0xff] (!%p3661_p9)  ;;  %v5199_v45 = vmov (!%p3661_p9), 0.0|0.0  }
 0x3b0   : > { %v4061_v49 = vpop.f32.mrb[85].mxu1  ;;  %v4173_v51 = vpop.f32.mrb[85].mxu0  ;;  %4366 = vmatprep.subr.bf16.mxu0 (!%p3661_p9), %v5199_v45  ;;  %4478 = vmatprep.subr.bf16.mxu1 (!%p3661_p9), %v5199_v45 }
 0x3b1   : > { %v4062_v52 = vadd.f32 %v4061_v49, %v4060_v46  ;;  %v4174_v53 = vadd.f32 %v4173_v51, %v4172_v47  ;;  %v4063_v54 = vpop.f32.mrb[86].mxu1  ;;  %v4175_v55 = vpop.f32.mrb[86].mxu0  ;;  %v4367_v46 = vpack.c.bf16 (!%p3661_p9), %v2539_v43, %v2538_v42  ;;  %v2541_v47 = vld [vmem:[#allocation10 + $0x18] sm:$0xff] (!%p3661_p9)  ;;  %v2542_v49 = vld [vmem:[#allocation10 + $0x20] sm:$0xff] (!%p3661_p9) }
 0x3b2   : > { %v4064_v57 = vpop.f32.mrb[87].mxu1  ;;  %v4176_v59 = vpop.f32.mrb[87].mxu0  ;;  %v2517_v42 = vld [vmem:[#allocation2 + $0x258] sm:$0xff] (!%p3661_p9) }
 0x3b3   : > { %v1918_v60 = vadd.f32 %v4062_v52, %v1532_v48  ;;  %v2368_v61 = vadd.f32 %v4174_v53, %v1982_v50  ;;  %v4065_v62 = vadd.f32 %v4064_v57, %v4063_v54  ;;  %v4177_v63 = vadd.f32 %v4176_v59, %v4175_v55  ;;  %4368 = vmatpush1.bf16.msra.mxu0 (!%p3661_p9), %v4367_v46  ;;  %v2543_v50 = vld [vmem:[#allocation10 + $0x28] sm:$0xff] (!%p3661_p9)  ;;  %v2544_v52 = vld [vmem:[#allocation10 + $0x30] sm:$0xff] (!%p3661_p9)  ;;  %v2545_v53 = vld [vmem:[#allocation10 + $0x38] sm:$0xff] (!%p3661_p9) }
 0x3b4   : > { %4494 = vmatpush1.bf16.msra.mxu1 (!%p3661_p9), %v4367_v46  ;;  %v4370_v48 = vpack.c.bf16 (!%p3661_p9), %v2541_v47, %v2540_v44  ;;  %4369 = vmatprep.subr.bf16.mxu0 (!%p3661_p9), %v5199_v45  ;;  %v4373_v51 = vpack.c.bf16 (!%p3661_p9), %v2543_v50, %v2542_v49  ;;  %v2443_v54 = vld [vmem:[#allocation2 + $0x8] sm:$0xff] (!%p3661_p9)  ;;  %v4376_v55 = vpack.c.bf16 (!%p3661_p9), %v2545_v53, %v2544_v52  ;;  %v2546_v57 = vld [vmem:[#allocation10 + $0x40] sm:$0xff] (!%p3661_p9)  ;;  %v2449_v43 = vld [vmem:[#allocation2 + $0x38] sm:$0xff] (!%p3661_p9) }
 0x3b5   : > { %1950 = vst [vmem:[#allocation2 + $0x278] sm:$0xff] %v1918_v60  ;;  %2400 = vst [vmem:[#allocation2 + $0x280] sm:$0xff] %v2368_v61  ;;  %v1919_v0 = vadd.f32 %v4065_v62, %v1533_v56  ;;  %v2369_v1 = vadd.f32 %v4177_v63, %v1983_v58  ;;  %4479 = vmatprep.subr.bf16.mxu1 (!%p3661_p9), %v5199_v45  ;;  %v2515_v56 = vld [vmem:[#allocation2 + $0x248] sm:$0xff] (!%p3661_p9)  ;;  %2650 = vmatprep.mubr.f32.mxu0 (!%p3661_p9), %v2443_v54  ;;  %v2548_v60 = vld [vmem:[#allocation10 + $0x50] sm:$0xff] (!%p3661_p9) }
 0x3b6   : > { %v2547_v58 = vld [vmem:[#allocation10 + $0x48] sm:$0xff] (!%p3661_p9)  ;;  %2770 = vmatprep.mubr.f32.mxu1 (!%p3661_p9), %v2515_v56  ;;  %v2549_v61 = vld [vmem:[#allocation10 + $0x58] sm:$0xff] (!%p3661_p9)  ;;  %v2550_v63 = vld [vmem:[#allocation10 + $0x60] sm:$0xff] (!%p3661_p9) }
 0x3b7   : > { %1951 = vst [vmem:[#allocation2 + $0x290] sm:$0xff] %v1919_v0  ;;  %2401 = vst [vmem:[#allocation2 + $0x298] sm:$0xff] %v2369_v1  ;;  %v4066_v2 = vpop.f32.mrb[88].mxu1  ;;  %v4178_v3 = vpop.f32.mrb[88].mxu0  ;;  %4371 = vmatpush1.bf16.msra.mxu0 (!%p3661_p9), %v4370_v48  ;;  %v4379_v59 = vpack.c.bf16 (!%p3661_p9), %v2547_v58, %v2546_v57  ;;  %v4382_v62 = vpack.c.bf16 (!%p3661_p9), %v2549_v61, %v2548_v60  ;;  %v2551_v0 = vld [vmem:[#allocation10 + $0x68] sm:$0xff] (!%p3661_p9)  ;;  %v2576_v46 = vld [vmem:[#allocation10 + $0x130] sm:$0xff] (!%p3661_p9) }
 0x3b8   : > { %v4067_v5 = vpop.f32.mrb[89].mxu1  ;;  %v4179_v7 = vpop.f32.mrb[89].mxu0  ;;  %4495 = vmatpush1.bf16.msra.mxu1 (!%p3661_p9), %v4370_v48  ;;  %4372 = vmatprep.subr.bf16.mxu0 (!%p3661_p9), %v5199_v45  ;;  %v4385_v1 = vpack.c.bf16 (!%p3661_p9), %v2551_v0, %v2550_v63  ;;  %v2577_v47 = vld [vmem:[#allocation10 + $0x138] sm:$0xff] (!%p3661_p9)  ;;  %v2448_v48 = vld [vmem:[#allocation2 + $0x30] sm:$0xff] (!%p3661_p9)  ;;  %v2578_v53 = vld [vmem:[#allocation10 + $0x140] sm:$0xff] (!%p3661_p9) }
 0x3b9   : > { %v4068_v8 = vadd.f32 %v4067_v5, %v4066_v2  ;;  %v4180_v9 = vadd.f32 %v4179_v7, %v4178_v3  ;;  %v4069_v10 = vpop.f32.mrb[90].mxu1  ;;  %v4181_v11 = vpop.f32.mrb[90].mxu0  ;;  %4480 = vmatprep.subr.bf16.mxu1 (!%p3661_p9), %v5199_v45  ;;  %v2552_v2 = vld [vmem:[#allocation10 + $0x70] sm:$0xff] (!%p3661_p9)  ;;  %v2553_v3 = vld [vmem:[#allocation10 + $0x78] sm:$0xff] (!%p3661_p9)  ;;  %v2554_v5 = vld [vmem:[#allocation10 + $0x80] sm:$0xff] (!%p3661_p9) }
 0x3ba   : > { %v4070_v13 = vpop.f32.mrb[91].mxu1  ;;  %v4182_v15 = vpop.f32.mrb[91].mxu0  ;;  %v2520_v49 = vld [vmem:[#allocation2 + $0x270] sm:$0xff] (!%p3661_p9)  ;;  %v2579_v54 = vld [vmem:[#allocation10 + $0x148] sm:$0xff] (!%p3661_p9)  ;;  %v2581_v61 = vld [vmem:[#allocation10 + $0x158] sm:$0xff] (!%p3661_p9) }
 0x3bb   : > { %v1920_v16 = vadd.f32 %v4068_v8, %v1534_v4  ;;  %v2370_v17 = vadd.f32 %v4180_v9, %v1984_v6  ;;  %v4071_v18 = vadd.f32 %v4070_v13, %v4069_v10  ;;  %v4183_v19 = vadd.f32 %v4182_v15, %v4181_v11  ;;  %4374 = vmatpush1.bf16.msra.mxu0 (!%p3661_p9), %v4373_v51  ;;  %v2555_v6 = vld [vmem:[#allocation10 + $0x88] sm:$0xff] (!%p3661_p9)  ;;  %v2556_v8 = vld [vmem:[#allocation10 + $0x90] sm:$0xff] (!%p3661_p9)  ;;  %v2557_v9 = vld [vmem:[#allocation10 + $0x98] sm:$0xff] (!%p3661_p9) }
 0x3bc   : > { %4496 = vmatpush1.bf16.msra.mxu1 (!%p3661_p9), %v4373_v51  ;;  %4375 = vmatprep.subr.bf16.mxu0 (!%p3661_p9), %v5199_v45  ;;  %v4388_v4 = vpack.c.bf16 (!%p3661_p9), %v2553_v3, %v2552_v2  ;;  %v4391_v7 = vpack.c.bf16 (!%p3661_p9), %v2555_v6, %v2554_v5  ;;  %v4394_v10 = vpack.c.bf16 (!%p3661_p9), %v2557_v9, %v2556_v8  ;;  %v2558_v11 = vld [vmem:[#allocation10 + $0xa0] sm:$0xff] (!%p3661_p9)  ;;  %v2561_v15 = vld [vmem:[#allocation10 + $0xb8] sm:$0xff] (!%p3661_p9)  ;;  %v2452_v50 = vld [vmem:[#allocation2 + $0x50] sm:$0xff] (!%p3661_p9) }
 0x3bd   : > { %1952 = vst [vmem:[#allocation2 + $0x2a8] sm:$0xff] %v1920_v16  ;;  %2402 = vst [vmem:[#allocation2 + $0x2b0] sm:$0xff] %v2370_v17  ;;  %v1921_v20 = vadd.f32 %v4071_v18, %v1535_v12  ;;  %v2371_v21 = vadd.f32 %v4183_v19, %v1985_v14  ;;  %4481 = vmatprep.subr.bf16.mxu1 (!%p3661_p9), %v5199_v45  ;;  %v2559_v12 = vld [vmem:[#allocation10 + $0xa8] sm:$0xff] (!%p3661_p9)  ;;  %v2560_v14 = vld [vmem:[#allocation10 + $0xb0] sm:$0xff] (!%p3661_p9)  ;;  %v4426_v51 = vpack.c.bf16 (!%p3661_p9), %v2577_v47, %v2576_v46 }
 0x3be   : > { %v4397_v13 = vpack.c.bf16 (!%p3661_p9), %v2559_v12, %v2558_v11  ;;  %v4400_v16 = vpack.c.bf16 (!%p3661_p9), %v2561_v15, %v2560_v14  ;;  %v2562_v17 = vld [vmem:[#allocation10 + $0xc0] sm:$0xff] (!%p3661_p9)  ;;  %v2563_v18 = vld [vmem:[#allocation10 + $0xc8] sm:$0xff] (!%p3661_p9)  ;;  %v2524_v52 = vld [vmem:[#allocation2 + $0x290] sm:$0xff] (!%p3661_p9)  ;;  %v4430_v58 = vpack.c.bf16 (!%p3661_p9), %v2579_v54, %v2578_v53 }
 0x3bf   : > { %1953 = vst [vmem:[#allocation2 + $0x2c0] sm:$0xff] %v1921_v20  ;;  %2403 = vst [vmem:[#allocation2 + $0x2c8] sm:$0xff] %v2371_v21  ;;  %v4072_v22 = vpop.f32.mrb[92].mxu1  ;;  %v4184_v23 = vpop.f32.mrb[92].mxu0  ;;  %4377 = vmatpush1.bf16.msra.mxu0 (!%p3661_p9), %v4376_v55  ;;  %v4403_v19 = vpack.c.bf16 (!%p3661_p9), %v2563_v18, %v2562_v17  ;;  %v2564_v20 = vld [vmem:[#allocation10 + $0xd0] sm:$0xff] (!%p3661_p9)  ;;  %v2565_v21 = vld [vmem:[#allocation10 + $0xd8] sm:$0xff] (!%p3661_p9) }
 0x3c0   : > { %v4073_v26 = vpop.f32.mrb[93].mxu1  ;;  %v4185_v28 = vpop.f32.mrb[93].mxu0  ;;  %4497 = vmatpush1.bf16.msra.mxu1 (!%p3661_p9), %v4376_v55  ;;  %4378 = vmatprep.subr.bf16.mxu0 (!%p3661_p9), %v5199_v45  ;;  %v2451_v55 = vld [vmem:[#allocation2 + $0x48] sm:$0xff] (!%p3661_p9)  ;;  %v2580_v60 = vld [vmem:[#allocation10 + $0x150] sm:$0xff] (!%p3661_p9)  ;;  %v2526_v63 = vld [vmem:[#allocation2 + $0x2a0] sm:$0xff] (!%p3661_p9) }
 0x3c1   : > { %v4074_v29 = vadd.f32 %v4073_v26, %v4072_v22  ;;  %v4186_v25 = vadd.f32 %v4185_v28, %v4184_v23  ;;  %v4075_v30 = vpop.f32.mrb[94].mxu1  ;;  %v4187_v31 = vpop.f32.mrb[94].mxu0  ;;  %2409 = sbr.rel (%p3661_p9) target bundleno = 1325 (0x52d), region = 76  ;;  %4482 = vmatprep.subr.bf16.mxu1 (!%p3661_p9), %v5199_v45  ;;  %v4406_v22 = vpack.c.bf16 (!%p3661_p9), %v2565_v21, %v2564_v20  ;;  %v2566_v23 = vld [vmem:[#allocation10 + $0xe0] sm:$0xff] (!%p3661_p9)  ;;  %v2569_v28 = vld [vmem:[#allocation10 + $0xf8] sm:$0xff] (!%p3661_p9)  ;;  %v2523_v56 = vld [vmem:[#allocation2 + $0x288] sm:$0xff] (!%p3661_p9) }
 0x3c2   : > { %v4076_v33 = vpop.f32.mrb[95].mxu1  ;;  %v4188_v35 = vpop.f32.mrb[95].mxu0  ;;  %v2455_v57 = vld [vmem:[#allocation2 + $0x68] sm:$0xff] (!%p3661_p9)  ;;  %v2458_v0 = vld [vmem:[#allocation2 + $0x80] sm:$0xff] (!%p3661_p9)  ;;  %v2457_v5 = vld [vmem:[#allocation2 + $0x78] sm:$0xff] (!%p3661_p9) }
 0x3c3   : > { %v1922_v36 = vadd.f32 %v4074_v29, %v1536_v24  ;;  %v2372_v37 = vadd.f32 %v4186_v25, %v1986_v27  ;;  %v4077_v38 = vadd.f32 %v4076_v33, %v4075_v30  ;;  %v4189_v39 = vadd.f32 %v4188_v35, %v4187_v31  ;;  %4380 = vmatpush1.bf16.msra.mxu0 (!%p3661_p9), %v4379_v59  ;;  %v2567_v24 = vld [vmem:[#allocation10 + $0xe8] sm:$0xff] (!%p3661_p9)  ;;  %v2568_v27 = vld [vmem:[#allocation10 + $0xf0] sm:$0xff] (!%p3661_p9)  ;;  %v2570_v29 = vld [vmem:[#allocation10 + $0x100] sm:$0xff] (!%p3661_p9) }
 0x3c4   : > { %4498 = vmatpush1.bf16.msra.mxu1 (!%p3661_p9), %v4379_v59  ;;  %4381 = vmatprep.subr.bf16.mxu0 (!%p3661_p9), %v5199_v45  ;;  %v4409_v26 = vpack.c.bf16 (!%p3661_p9), %v2567_v24, %v2566_v23  ;;  %v2571_v25 = vld [vmem:[#allocation10 + $0x108] sm:$0xff] (!%p3661_p9)  ;;  %v4412_v30 = vpack.c.bf16 (!%p3661_p9), %v2569_v28, %v2568_v27  ;;  %v2573_v33 = vld [vmem:[#allocation10 + $0x118] sm:$0xff] (!%p3661_p9)  ;;  %v2514_v35 = vld [vmem:[#allocation2 + $0x240] sm:$0xff] (!%p3661_p9) }
 0x3c5   : > { %1954 = vst [vmem:[#allocation2 + $0x2d8] sm:$0xff] %v1922_v36  ;;  %2404 = vst [vmem:[#allocation2 + $0x2e0] sm:$0xff] %v2372_v37  ;;  %v1923_v40 = vadd.f32 %v4077_v38, %v1537_v32  ;;  %v2373_v41 = vadd.f32 %v4189_v39, %v1987_v34  ;;  %4483 = vmatprep.subr.bf16.mxu1 (!%p3661_p9), %v5199_v45  ;;  %v4414_v31 = vpack.c.bf16 (!%p3661_p9), %v2571_v25, %v2570_v29  ;;  %v2572_v32 = vld [vmem:[#allocation10 + $0x110] sm:$0xff] (!%p3661_p9)  ;;  %v2442_v34 = vld [vmem:[#allocation2] sm:$0xff] (!%p3661_p9) }
 0x3c6   : > { %v2446_v36 = vld [vmem:[#allocation2 + $0x20] sm:$0xff] (!%p3661_p9)  ;;  %v4418_v37 = vpack.c.bf16 (!%p3661_p9), %v2573_v33, %v2572_v32  ;;  %v2527_v59 = vld [vmem:[#allocation2 + $0x2a8] sm:$0xff] (!%p3661_p9)  ;;  %v2529_v6 = vld [vmem:[#allocation2 + $0x2b8] sm:$0xff] (!%p3661_p9) }
 0x3c7   : > { %1955 = vst [vmem:[#allocation2 + $0x2f0] sm:$0xff] %v1923_v40  ;;  %2405 = vst [vmem:[#allocation2 + $0x2f8] sm:$0xff] %v2373_v41  ;;  %4383 = vmatpush1.bf16.msra.mxu0 (!%p3661_p9), %v4382_v62  ;;  %v2518_v38 = vld [vmem:[#allocation2 + $0x260] sm:$0xff] (!%p3661_p9)  ;;  %v2575_v40 = vld [vmem:[#allocation10 + $0x128] sm:$0xff] (!%p3661_p9) }
 0x3c8   : > { %4499 = vmatpush1.bf16.msra.mxu1 %v4382_v62  ;;  %4384 = vmatprep.subr.bf16.mxu0 %v5199_v45  ;;  %v2574_v39 = vld [vmem:[#allocation10 + $0x120] sm:$0xff]  ;;  %v2445_v41 = vld [vmem:[#allocation2 + $0x18] sm:$0xff]  ;;  %v2460_v12 = vld [vmem:[#allocation2 + $0x90] sm:$0xff] }
 0x3c9   : > { %4484 = vmatprep.subr.bf16.mxu1 %v5199_v45  ;;  %v4422_v44 = vpack.c.bf16 %v2575_v40, %v2574_v39  ;;  %v2454_v62 = vld [vmem:[#allocation2 + $0x60] sm:$0xff]  ;;  %v2585_v11 = vld [vmem:[#allocation10 + $0x178] sm:$0xff]  ;;  %v2464_v14 = vld [vmem:[#allocation2 + $0xb0] sm:$0xff] }
 0x3ca   : > { %v2530_v2 = vld [vmem:[#allocation2 + $0x2c0] sm:$0xff]  ;;  %v2463_v17 = vld [vmem:[#allocation2 + $0xa8] sm:$0xff]  ;;  %v2444_v20 = vld [vmem:[#allocation2 + $0x10] sm:$0xff] }
 0x3cb   : > { %4386 = vmatpush1.bf16.msra.mxu0 %v4385_v1  ;;  %v2582_v3 = vld [vmem:[#allocation10 + $0x160] sm:$0xff]  ;;  %v2535_v18 = vld [vmem:[#allocation2 + $0x2e8] sm:$0xff]  ;;  %v2453_v27 = vld [vmem:[#allocation2 + $0x58] sm:$0xff] }
 0x3cc   : > { %4500 = vmatpush1.bf16.msra.mxu1 %v4385_v1  ;;  %4387 = vmatprep.subr.bf16.mxu0 %v5199_v45  ;;  %v4434_v1 = vpack.c.bf16 %v2581_v61, %v2580_v60  ;;  %v2533_v9 = vld [vmem:[#allocation2 + $0x2d8] sm:$0xff]  ;;  %v2466_v21 = vld [vmem:[#allocation2 + $0xc0] sm:$0xff]  ;;  %v2456_v29 = vld [vmem:[#allocation2 + $0x70] sm:$0xff] }
 0x3cd   : > { %4485 = vmatprep.subr.bf16.mxu1 %v5199_v45  ;;  %v2470_v23 = vld [vmem:[#allocation2 + $0xe0] sm:$0xff]  ;;  %v2473_v28 = vld [vmem:[#allocation2 + $0xf8] sm:$0xff]  ;;  %v2472_v25 = vld [vmem:[#allocation2 + $0xf0] sm:$0xff] }
 0x3ce   : > { %v2450_v24 = vld [vmem:[#allocation2 + $0x40] sm:$0xff]  ;;  %v2475_v33 = vld [vmem:[#allocation2 + $0x108] sm:$0xff]  ;;  %v2488_v47 = vld [vmem:[#allocation2 + $0x170] sm:$0xff] }
 0x3cf   : > { %4389 = vmatpush1.bf16.msra.mxu0 %v4388_v4  ;;  %v2462_v32 = vld [vmem:[#allocation2 + $0xa0] sm:$0xff]  ;;  %v2483_v46 = vld [vmem:[#allocation2 + $0x148] sm:$0xff]  ;;  %v2504_v60 = vld [vmem:[#allocation2 + $0x1f0] sm:$0xff] }
 0x3d0   : > { %4501 = vmatpush1.bf16.msra.mxu1 %v4388_v4  ;;  %4390 = vmatprep.subr.bf16.mxu0 %v5199_v45  ;;  %v2583_v4 = vld [vmem:[#allocation10 + $0x168] sm:$0xff]  ;;  %v2482_v39 = vld [vmem:[#allocation2 + $0x140] sm:$0xff]  ;;  %v2496_v61 = vld [vmem:[#allocation2 + $0x1b0] sm:$0xff] }
 0x3d1   : > { %4486 = vmatprep.subr.bf16.mxu1 %v5199_v45  ;;  %v4438_v8 = vpack.c.bf16 %v2583_v4, %v2582_v3  ;;  %v2474_v40 = vld [vmem:[#allocation2 + $0x100] sm:$0xff]  ;;  %v2495_v54 = vld [vmem:[#allocation2 + $0x1a8] sm:$0xff]  ;;  %v2516_v4 = vld [vmem:[#allocation2 + $0x250] sm:$0xff] }
 0x3d2   : > { %v2490_v53 = vld [vmem:[#allocation2 + $0x180] sm:$0xff]  ;;  %v2503_v3 = vld [vmem:[#allocation2 + $0x1e8] sm:$0xff] }
 0x3d3   : > { %4392 = vmatpush1.bf16.msra.mxu0 %v4391_v7 }
 0x3d4   : > { %4502 = vmatpush1.bf16.msra.mxu1 %v4391_v7  ;;  %4393 = vmatprep.subr.bf16.mxu0 %v5199_v45  ;;  %v2461_v7 = vld [vmem:[#allocation2 + $0x98] sm:$0xff] }
 0x3d5   : > { %4487 = vmatprep.subr.bf16.mxu1 %v5199_v45 }
 0x3d7   : > { %4395 = vmatpush1.bf16.msra.mxu0 %v4394_v10 }
 0x3d8   : > { %4503 = vmatpush1.bf16.msra.mxu1 %v4394_v10  ;;  %4396 = vmatprep.subr.bf16.mxu0 %v5199_v45  ;;  %v2584_v10 = vld [vmem:[#allocation10 + $0x170] sm:$0xff] }
 0x3d9   : > { %4488 = vmatprep.subr.bf16.mxu1 %v5199_v45  ;;  %v4442_v15 = vpack.c.bf16 %v2585_v11, %v2584_v10  ;;  %v2525_v10 = vld [vmem:[#allocation2 + $0x298] sm:$0xff] }
 0x3da   : > { %v2509_v11 = vld [vmem:[#allocation2 + $0x218] sm:$0xff] }
 0x3db   : > { %4398 = vmatpush1.bf16.msra.mxu0 %v4397_v13 }
 0x3dc   : > { %4504 = vmatpush1.bf16.msra.mxu1 %v4397_v13  ;;  %4399 = vmatprep.subr.bf16.mxu0 %v5199_v45  ;;  %v2532_v13 = vld [vmem:[#allocation2 + $0x2d0] sm:$0xff] }
 0x3dd   : > { %4489 = vmatprep.subr.bf16.mxu1 %v5199_v45 }
 0x3df   : > { %4401 = vmatpush1.bf16.msra.mxu0 %v4400_v16 }
 0x3e0   : > { %4505 = vmatpush1.bf16.msra.mxu1 %v4400_v16  ;;  %4402 = vmatprep.subr.bf16.mxu0 %v5199_v45  ;;  %v2536_v16 = vld [vmem:[#allocation2 + $0x2f0] sm:$0xff] }
 0x3e1   : > { %4490 = vmatprep.subr.bf16.mxu1 %v5199_v45 }
 0x3e3   : > { %4404 = vmatpush1.bf16.msra.mxu0 %v4403_v19 }
 0x3e4   : > { %4506 = vmatpush1.bf16.msra.mxu1 %v4403_v19  ;;  %4405 = vmatprep.subr.bf16.mxu0 %v5199_v45  ;;  %v2467_v19 = vld [vmem:[#allocation2 + $0xc8] sm:$0xff] }
 0x3e5   : > { %4491 = vmatprep.subr.bf16.mxu1 %v5199_v45 }
 0x3e7   : > { %4407 = vmatpush1.bf16.msra.mxu0 %v4406_v22 }
 0x3e8   : > { %4507 = vmatpush1.bf16.msra.mxu1 %v4406_v22  ;;  %4408 = vmatprep.subr.bf16.mxu0 %v5199_v45  ;;  %v2447_v22 = vld [vmem:[#allocation2 + $0x28] sm:$0xff] }
 0x3e9   : > { %4492 = vmatprep.subr.bf16.mxu1 %v5199_v45 }
 0x3eb   : > { %4410 = vmatpush1.bf16.msra.mxu0 %v4409_v26 }
 0x3ec   : > { %4508 = vmatpush1.bf16.msra.mxu1 %v4409_v26  ;;  %4411 = vmatprep.subr.bf16.mxu0 %v5199_v45  ;;  %v2469_v26 = vld [vmem:[#allocation2 + $0xd8] sm:$0xff] }
 0x3ed   : > { %4493 = vmatprep.subr.bf16.mxu1 %v5199_v45  ;;  %v2521_v45 = vld [vmem:[#allocation2 + $0x278] sm:$0xff] }
 0x3ef   : > { %4413 = vmatpush1.bf16.msra.mxu0 %v4412_v30 }
 0x3f0   : > { %4509 = vmatpush1.bf16.msra.mxu1 %v4412_v30  ;;  %v2459_v30 = vld [vmem:[#allocation2 + $0x88] sm:$0xff] }
 0x3f1   : > { %4415 = vmatprep.subr.bf16.mxu1 %v4414_v31 }
 0x3f2   : > { %2651 = vmatmul.mubr.f32.vlgmr.msra.gmra.mrb[0].mxu0 %v2442_v34  ;;  %v2465_v34 = vld [vmem:[#allocation2 + $0xb8] sm:$0xff] }
 0x3f3   : > { %2771 = vmatmul.mubr.f32.vlgmr.msra.gmra.mrb[0].mxu1 %v2514_v35  ;;  %2655 = vmatprep.mubr.f32.mxu0 %v2446_v36  ;;  %v2479_v35 = vld [vmem:[#allocation2 + $0x128] sm:$0xff]  ;;  %v2468_v36 = vld [vmem:[#allocation2 + $0xd0] sm:$0xff] }
 0x3f4   : > { %4417 = vmatpush3.bf16.msra.mxu1 %v4414_v31  ;;  %2775 = vmatprep.mubr.f32.mxu1 %v2518_v38  ;;  %v2476_v31 = vld [vmem:[#allocation2 + $0x110] sm:$0xff]  ;;  %v2471_v38 = vld [vmem:[#allocation2 + $0xe8] sm:$0xff] }
 0x3f5   : > { %4419 = vmatprep.subr.bf16.mxu1 %v4418_v37 }
 0x3f6   : > { %2656 = vmatmul.mubr.f32.gmra.mrb[2].mxu0 %v2445_v41  ;;  %v2481_v41 = vld [vmem:[#allocation2 + $0x138] sm:$0xff] }
 0x3f7   : > { %2776 = vmatmul.mubr.f32.gmra.mrb[2].mxu1 %v2517_v42  ;;  %2660 = vmatprep.mubr.f32.mxu0 %v2449_v43  ;;  %v2477_v42 = vld [vmem:[#allocation2 + $0x118] sm:$0xff] }
 0x3f8   : > { %4421 = vmatpush3.bf16.msra.mxu1 %v4418_v37  ;;  %2780 = vmatprep.mubr.f32.mxu1 %v2521_v45  ;;  %v2478_v37 = vld [vmem:[#allocation2 + $0x120] sm:$0xff]  ;;  %v2485_v43 = vld [vmem:[#allocation2 + $0x158] sm:$0xff]  ;;  %v2484_v45 = vld [vmem:[#allocation2 + $0x150] sm:$0xff] }
 0x3f9   : > { %4423 = vmatprep.subr.bf16.mxu1 %v4422_v44 }
 0x3fa   : > { %2661 = vmatmul.mubr.f32.gmra.mrb[4].mxu0 %v2448_v48  ;;  %v2486_v48 = vld [vmem:[#allocation2 + $0x160] sm:$0xff] }
 0x3fb   : > { %2781 = vmatmul.mubr.f32.gmra.mrb[4].mxu1 %v2520_v49  ;;  %2665 = vmatprep.mubr.f32.mxu0 %v2452_v50  ;;  %v2487_v49 = vld [vmem:[#allocation2 + $0x168] sm:$0xff]  ;;  %v2489_v50 = vld [vmem:[#allocation2 + $0x178] sm:$0xff] }
 0x3fc   : > { %4425 = vmatpush3.bf16.msra.mxu1 %v4422_v44  ;;  %2785 = vmatprep.mubr.f32.mxu1 %v2524_v52  ;;  %v2480_v44 = vld [vmem:[#allocation2 + $0x130] sm:$0xff] }
 0x3fd   : > { %4427 = vmatprep.subr.bf16.mxu1 %v4426_v51  ;;  %v2492_v52 = vld [vmem:[#allocation2 + $0x190] sm:$0xff] }
 0x3fe   : > { %2666 = vmatmul.mubr.f32.gmra.mrb[6].mxu0 %v2451_v55  ;;  %v2494_v55 = vld [vmem:[#allocation2 + $0x1a0] sm:$0xff] }
 0x3ff   : > { %2786 = vmatmul.mubr.f32.gmra.mrb[6].mxu1 %v2523_v56  ;;  %2670 = vmatprep.mubr.f32.mxu0 %v2455_v57  ;;  %v2498_v56 = vld [vmem:[#allocation2 + $0x1c0] sm:$0xff]  ;;  %v2493_v57 = vld [vmem:[#allocation2 + $0x198] sm:$0xff] }
 0x400   : > { %4429 = vmatpush3.bf16.msra.mxu1 %v4426_v51  ;;  %2790 = vmatprep.mubr.f32.mxu1 %v2527_v59  ;;  %v2491_v51 = vld [vmem:[#allocation2 + $0x188] sm:$0xff]  ;;  %v2497_v59 = vld [vmem:[#allocation2 + $0x1b8] sm:$0xff] }
 0x401   : > { %4431 = vmatprep.subr.bf16.mxu1 %v4430_v58 }
 0x402   : > { %2671 = vmatmul.mubr.f32.gmra.mrb[8].mxu0 %v2454_v62  ;;  %v2507_v62 = vld [vmem:[#allocation2 + $0x208] sm:$0xff] }
 0x403   : > { %2791 = vmatmul.mubr.f32.gmra.mrb[8].mxu1 %v2526_v63  ;;  %2675 = vmatprep.mubr.f32.mxu0 %v2458_v0  ;;  %v2500_v63 = vld [vmem:[#allocation2 + $0x1d0] sm:$0xff]  ;;  %v2510_v0 = vld [vmem:[#allocation2 + $0x220] sm:$0xff] }
 0x404   : > { %4433 = vmatpush3.bf16.msra.mxu1 %v4430_v58  ;;  %2795 = vmatprep.mubr.f32.mxu1 %v2530_v2  ;;  %v2501_v58 = vld [vmem:[#allocation2 + $0x1d8] sm:$0xff] }
 0x405   : > { %4435 = vmatprep.subr.bf16.mxu1 %v4434_v1  ;;  %v2513_v2 = vld [vmem:[#allocation2 + $0x238] sm:$0xff] }
 0x406   : > { %2676 = vmatmul.mubr.f32.gmra.mrb[10].mxu0 %v2457_v5  ;;  %v2502_v5 = vld [vmem:[#allocation2 + $0x1e0] sm:$0xff] }
 0x407   : > { %2796 = vmatmul.mubr.f32.gmra.mrb[10].mxu1 %v2529_v6  ;;  %2680 = vmatprep.mubr.f32.mxu0 %v2461_v7  ;;  %v2519_v6 = vld [vmem:[#allocation2 + $0x268] sm:$0xff]  ;;  %v2506_v7 = vld [vmem:[#allocation2 + $0x200] sm:$0xff] }
 0x408   : > { %4437 = vmatpush3.bf16.msra.mxu1 %v4434_v1  ;;  %2800 = vmatprep.mubr.f32.mxu1 %v2533_v9  ;;  %v2499_v1 = vld [vmem:[#allocation2 + $0x1c8] sm:$0xff]  ;;  %v2505_v9 = vld [vmem:[#allocation2 + $0x1f8] sm:$0xff] }
 0x409   : > { %4439 = vmatprep.subr.bf16.mxu1 %v4438_v8 }
 0x40a   : > { %2681 = vmatmul.mubr.f32.gmra.mrb[12].mxu0 %v2460_v12  ;;  %v2528_v12 = vld [vmem:[#allocation2 + $0x2b0] sm:$0xff] }
 0x40b   : > { %2801 = vmatmul.mubr.f32.gmra.mrb[12].mxu1 %v2532_v13  ;;  %2685 = vmatprep.mubr.f32.mxu0 %v2464_v14  ;;  %v2508_v13 = vld [vmem:[#allocation2 + $0x210] sm:$0xff]  ;;  %v2531_v14 = vld [vmem:[#allocation2 + $0x2c8] sm:$0xff] }
 0x40c   : > { %4441 = vmatpush3.bf16.msra.mxu1 %v4438_v8  ;;  %2805 = vmatprep.mubr.f32.mxu1 %v2536_v16  ;;  %v2522_v8 = vld [vmem:[#allocation2 + $0x280] sm:$0xff] }
 0x40d   : > { %4443 = vmatprep.subr.bf16.mxu1 %v4442_v15  ;;  %v2534_v16 = vld [vmem:[#allocation2 + $0x2e0] sm:$0xff] }
 0x40e   : > { %2686 = vmatmul.mubr.f32.gmra.mrb[14].mxu0 %v2463_v17  ;;  %v2511_v17 = vld [vmem:[#allocation2 + $0x228] sm:$0xff] }
 0x40f   : > { %2806 = vmatmul.mubr.f32.gmra.mrb[14].mxu1 %v2535_v18  ;;  %2690 = vmatprep.mubr.f32.mxu0 %v2467_v19  ;;  %v2537_v18 = vld [vmem:[#allocation2 + $0x2f8] sm:$0xff] }
 0x410   : > { %4445 = vmatpush3.bf16.msra.mxu1 %v4442_v15  ;;  %4318 = vmatprep.mubr.f32.mxu1 %v2444_v20  ;;  %v2512_v15 = vld [vmem:[#allocation2 + $0x230] sm:$0xff] }
 0x412   : > { %2691 = vmatmul.mubr.f32.gmra.mrb[16].mxu0 %v2466_v21 }
 0x413   : > { %4319 = vmatmul.mubr.f32.vlgmr.msra.gmra.mrb[16].mxu1 %v2447_v22  ;;  %2695 = vmatprep.mubr.f32.mxu0 %v2470_v23 }
 0x414   : > { %4321 = vmatprep.mubr.f32.mxu1 %v2450_v24 }
 0x416   : > { %2696 = vmatmul.mubr.f32.gmra.mrb[18].mxu0 %v2469_v26 }
 0x417   : > { %4322 = vmatmul.mubr.f32.gmra.mrb[18].mxu1 %v2453_v27  ;;  %2700 = vmatprep.mubr.f32.mxu0 %v2473_v28 }
 0x418   : > { %4324 = vmatprep.mubr.f32.mxu1 %v2456_v29 }
 0x41a   : > { %2701 = vmatmul.mubr.f32.gmra.mrb[20].mxu0 %v2472_v25 }
 0x41b   : > { %4325 = vmatmul.mubr.f32.gmra.mrb[20].mxu1 %v2459_v30  ;;  %2705 = vmatprep.mubr.f32.mxu0 %v2476_v31 }
 0x41c   : > { %4327 = vmatprep.mubr.f32.mxu1 %v2462_v32 }
 0x41e   : > { %2706 = vmatmul.mubr.f32.gmra.mrb[22].mxu0 %v2475_v33 }
 0x41f   : > { %4328 = vmatmul.mubr.f32.gmra.mrb[22].mxu1 %v2465_v34  ;;  %2710 = vmatprep.mubr.f32.mxu0 %v2479_v35 }
 0x420   : > { %4330 = vmatprep.mubr.f32.mxu1 %v2468_v36 }
 0x422   : > { %2711 = vmatmul.mubr.f32.gmra.mrb[24].mxu0 %v2478_v37 }
 0x423   : > { %4331 = vmatmul.mubr.f32.gmra.mrb[24].mxu1 %v2471_v38  ;;  %2715 = vmatprep.mubr.f32.mxu0 %v2482_v39 }
 0x424   : > { %4333 = vmatprep.mubr.f32.mxu1 %v2474_v40 }
 0x426   : > { %2716 = vmatmul.mubr.f32.gmra.mrb[26].mxu0 %v2481_v41 }
 0x427   : > { %4334 = vmatmul.mubr.f32.gmra.mrb[26].mxu1 %v2477_v42  ;;  %2720 = vmatprep.mubr.f32.mxu0 %v2485_v43 }
 0x428   : > { %4336 = vmatprep.mubr.f32.mxu1 %v2480_v44 }
 0x42a   : > { %2721 = vmatmul.mubr.f32.gmra.mrb[28].mxu0 %v2484_v45 }
 0x42b   : > { %4337 = vmatmul.mubr.f32.gmra.mrb[28].mxu1 %v2483_v46  ;;  %2725 = vmatprep.mubr.f32.mxu0 %v2488_v47 }
 0x42c   : > { %4339 = vmatprep.mubr.f32.mxu1 %v2486_v48 }
 0x42e   : > { %2726 = vmatmul.mubr.f32.gmra.mrb[30].mxu0 %v2487_v49 }
 0x42f   : > { %4340 = vmatmul.mubr.f32.gmra.mrb[30].mxu1 %v2489_v50  ;;  %2730 = vmatprep.mubr.f32.mxu0 %v2491_v51  ;;  %v2411_v51 = vld [vmem:[#allocation3 + $0x8] sm:$0xff] }
 0x430   : > { %4342 = vmatprep.mubr.f32.mxu1 %v2492_v52 }
 0x432   : > { %2731 = vmatmul.mubr.f32.gmra.mrb[32].mxu0 %v2490_v53 }
 0x433   : > { %4343 = vmatmul.mubr.f32.gmra.mrb[32].mxu1 %v2495_v54  ;;  %2735 = vmatprep.mubr.f32.mxu0 %v2494_v55  ;;  %v2410_v55 = vld [vmem:[#allocation3] sm:$0xff] }
 0x434   : > { %4345 = vmatprep.mubr.f32.mxu1 %v2498_v56 }
 0x436   : > { %2736 = vmatmul.mubr.f32.gmra.mrb[34].mxu0 %v2493_v57 }
 0x437   : > { %4346 = vmatmul.mubr.f32.gmra.mrb[34].mxu1 %v2501_v58  ;;  %2740 = vmatprep.mubr.f32.mxu0 %v2497_v59 }
 0x438   : > { %4348 = vmatprep.mubr.f32.mxu1 %v2504_v60 }
 0x43a   : > { %2741 = vmatmul.mubr.f32.gmra.mrb[36].mxu0 %v2496_v61  ;;  %v2413_v61 = vld [vmem:[#allocation3 + $0x18] sm:$0xff] }
 0x43b   : > { %4349 = vmatmul.mubr.f32.gmra.mrb[36].mxu1 %v2507_v62  ;;  %2745 = vmatprep.mubr.f32.mxu0 %v2500_v63 }
 0x43c   : > { %4351 = vmatprep.mubr.f32.mxu1 %v2510_v0 }
 0x43e   : > { %2746 = vmatmul.mubr.f32.gmra.mrb[38].mxu0 %v2499_v1 }
 0x43f   : > { %4352 = vmatmul.mubr.f32.gmra.mrb[38].mxu1 %v2513_v2  ;;  %2750 = vmatprep.mubr.f32.mxu0 %v2503_v3  ;;  %v2412_v2 = vld [vmem:[#allocation3 + $0x10] sm:$0xff] }
 0x440   : > { %4354 = vmatprep.mubr.f32.mxu1 %v2516_v4 }
 0x442   : > { %2751 = vmatmul.mubr.f32.gmra.mrb[40].mxu0 %v2502_v5 }
 0x443   : > { %4355 = vmatmul.mubr.f32.gmra.mrb[40].mxu1 %v2519_v6  ;;  %2755 = vmatprep.mubr.f32.mxu0 %v2506_v7 }
 0x444   : > { %4357 = vmatprep.mubr.f32.mxu1 %v2522_v8 }
 0x446   : > { %2756 = vmatmul.mubr.f32.gmra.mrb[42].mxu0 %v2505_v9 }
 0x447   : > { %4358 = vmatmul.mubr.f32.gmra.mrb[42].mxu1 %v2525_v10  ;;  %2760 = vmatprep.mubr.f32.mxu0 %v2509_v11  ;;  %v2415_v10 = vld [vmem:[#allocation3 + $0x28] sm:$0xff] }
 0x448   : > { %4360 = vmatprep.mubr.f32.mxu1 %v2528_v12 }
 0x44a   : > { %2761 = vmatmul.mubr.f32.gmra.mrb[44].mxu0 %v2508_v13 }
 0x44b   : > { %4361 = vmatmul.mubr.f32.gmra.mrb[44].mxu1 %v2531_v14  ;;  %2765 = vmatprep.mubr.f32.mxu0 %v2512_v15  ;;  %v2414_v15 = vld [vmem:[#allocation3 + $0x20] sm:$0xff] }
 0x44c   : > { %4363 = vmatprep.mubr.f32.mxu1 %v2534_v16 }
 0x44e   : > { %2766 = vmatmul.mubr.f32.gmra.mrb[46].mxu0 %v2511_v17 }
 0x44f   : > { %4364 = vmatmul.mubr.f32.gmra.mrb[46].mxu1 %v2537_v18 }
 0x4c5   : > { %v2652_v20 = vpop.f32.mrb[0].mxu0 }
 0x4c6   : > { %v5980_v19 = vpop.f32.mrb[0].mxu1  ;;  %v2654_v22 = vpop.f32.mrb[1].mxu0 }
 0x4c7   : > { %v2774_v21 = vpop.f32.mrb[1].mxu1 }
 0x4c9   : > { %v2657_v24 = vpop.f32.mrb[2].mxu0 }
 0x4ca   : > { %v5982_v23 = vpop.f32.mrb[2].mxu1  ;;  %v2659_v27 = vpop.f32.mrb[3].mxu0 }
 0x4cb   : > { %v2779_v26 = vpop.f32.mrb[3].mxu1 }
 0x4cc   : > { %v2417_v26 = vld [vmem:[#allocation3 + $0x38] sm:$0xff] }
 0x4cd   : > { %v2662_v29 = vpop.f32.mrb[4].mxu0 }
 0x4ce   : > { %v5984_v28 = vpop.f32.mrb[4].mxu1  ;;  %v2664_v30 = vpop.f32.mrb[5].mxu0 }
 0x4cf   : > { %v2784_v25 = vpop.f32.mrb[5].mxu1 }
 0x4d1   : > { %v2667_v32 = vpop.f32.mrb[6].mxu0 }
 0x4d2   : > { %v5986_v31 = vpop.f32.mrb[6].mxu1  ;;  %v2669_v34 = vpop.f32.mrb[7].mxu0 }
 0x4d3   : > { %v2789_v33 = vpop.f32.mrb[7].mxu1 }
 0x4d5   : > { %v2672_v36 = vpop.f32.mrb[8].mxu0 }
 0x4d6   : > { %v5988_v35 = vpop.f32.mrb[8].mxu1  ;;  %v2674_v38 = vpop.f32.mrb[9].mxu0 }
 0x4d7   : > { %v2794_v37 = vpop.f32.mrb[9].mxu1 }
 0x4d9   : > { %v2677_v40 = vpop.f32.mrb[10].mxu0 }
 0x4da   : > { %v5990_v39 = vpop.f32.mrb[10].mxu1  ;;  %v2679_v42 = vpop.f32.mrb[11].mxu0 }
 0x4db   : > { %v2799_v41 = vpop.f32.mrb[11].mxu1 }
 0x4dd   : > { %v2682_v44 = vpop.f32.mrb[12].mxu0 }
 0x4de   : > { %v5992_v43 = vpop.f32.mrb[12].mxu1  ;;  %v2684_v46 = vpop.f32.mrb[13].mxu0 }
 0x4df   : > { %v2804_v45 = vpop.f32.mrb[13].mxu1 }
 0x4e0   : > { %v2419_v45 = vld [vmem:[#allocation3 + $0x48] sm:$0xff] }
 0x4e1   : > { %v2687_v48 = vpop.f32.mrb[14].mxu0 }
 0x4e2   : > { %v5994_v47 = vpop.f32.mrb[14].mxu1  ;;  %v2689_v50 = vpop.f32.mrb[15].mxu0 }
 0x4e3   : > { %v2809_v49 = vpop.f32.mrb[15].mxu1 }
 0x4e5   : > { %v2692_v53 = vpop.f32.mrb[16].mxu0 }
 0x4e6   : > { %v4320_v52 = vpop.f32.mrb[16].mxu1  ;;  %v2694_v57 = vpop.f32.mrb[17].mxu0 }
 0x4e7   : > { %v2883_v54 = vadd.f32 %v4320_v52, %v2657_v24  ;;  %v2877_v56 = vpop.f32.mrb[17].mxu1 }
 0x4e8   : > { %v2878_v58 = vadd.f32 %v2877_v56, %v2652_v20 }
 0x4e9   : > { %v3037_v59 = vadd.f32 %v2883_v54, %v2411_v51  ;;  %v2697_v63 = vpop.f32.mrb[18].mxu0  ;;  %v2418_v51 = vld [vmem:[#allocation3 + $0x40] sm:$0xff] }
 0x4ea   : > { %v3036_v60 = vadd.f32 %v2878_v58, %v2410_v55  ;;  %v4323_v62 = vpop.f32.mrb[18].mxu1  ;;  %v2699_v4 = vpop.f32.mrb[19].mxu0 }
 0x4eb   : > { %v3069_v0 = vmax.f32 %v3037_v59, 0.0  ;;  %v2893_v1 = vadd.f32 %v4323_v62, %v2667_v32  ;;  %v2887_v3 = vpop.f32.mrb[19].mxu1  ;;  %v2416_v32 = vld [vmem:[#allocation3 + $0x30] sm:$0xff]  ;;  %v2421_v59 = vld [vmem:[#allocation3 + $0x58] sm:$0xff] }
 0x4ec   : > { %v3068_v5 = vmax.f32 %v3036_v60, 0.0  ;;  %v2888_v6 = vadd.f32 %v2887_v3, %v2662_v29 }
 0x4ed   : > { %v3039_v7 = vadd.f32 %v2893_v1, %v2413_v61  ;;  %v2702_v12 = vpop.f32.mrb[20].mxu0 }
 0x4ee   : > { %v3738_v8 = vpack.c.bf16 %v3069_v0, %v3068_v5  ;;  %v3038_v9 = vadd.f32 %v2888_v6, %v2412_v2  ;;  %v4326_v11 = vpop.f32.mrb[20].mxu1  ;;  %v2704_v17 = vpop.f32.mrb[21].mxu0  ;;  %v2420_v0 = vld [vmem:[#allocation3 + $0x50] sm:$0xff] }
 0x4ef   : > { %v3071_v13 = vmax.f32 %v3039_v7, 0.0  ;;  %v2903_v14 = vadd.f32 %v4326_v11, %v2677_v40  ;;  %v2897_v16 = vpop.f32.mrb[21].mxu1  ;;  %v2423_v7 = vld [vmem:[#allocation3 + $0x68] sm:$0xff]  ;;  %v2422_v11 = vld [vmem:[#allocation3 + $0x60] sm:$0xff] }
 0x4f0   : > { %3739 = vst [vmem:[%s5614_s20] sm:$0xff] %v3738_v8   ;;  %v3070_v18 = vmax.f32 %v3038_v9, 0.0  ;;  %v2898_v20 = vadd.f32 %v2897_v16, %v2672_v36 }
 0x4f1   : > { %v3041_v21 = vadd.f32 %v2903_v14, %v2415_v10  ;;  %v2707_v29 = vpop.f32.mrb[22].mxu0 }
 0x4f2   : > { %v3743_v22 = vpack.c.bf16 %v3071_v13, %v3070_v18  ;;  %v3040_v24 = vadd.f32 %v2898_v20, %v2414_v15  ;;  %v4329_v27 = vpop.f32.mrb[22].mxu1  ;;  %v2709_v34 = vpop.f32.mrb[23].mxu0 }
 0x4f3   : > { %v3073_v25 = vmax.f32 %v3041_v21, 0.0  ;;  %v2913_v30 = vadd.f32 %v4329_v27, %v2687_v48  ;;  %v2907_v33 = vpop.f32.mrb[23].mxu1  ;;  %v2424_v27 = vld [vmem:[#allocation3 + $0x70] sm:$0xff] }
 0x4f4   : > { %3815 = vst [vmem:[%s5614_s20 + $0x8] sm:$0xff] %v3743_v22   ;;  %v3072_v37 = vmax.f32 %v3040_v24, 0.0  ;;  %v2908_v38 = vadd.f32 %v2907_v33, %v2682_v44 }
 0x4f5   : > { %v3043_v40 = vadd.f32 %v2913_v30, %v2417_v26  ;;  %v2712_v46 = vpop.f32.mrb[24].mxu0 }
 0x4f6   : > { %v3748_v41 = vpack.c.bf16 %v3073_v25, %v3072_v37  ;;  %v3042_v42 = vadd.f32 %v2908_v38, %v2416_v32  ;;  %v4332_v36 = vpop.f32.mrb[24].mxu1  ;;  %v2714_v54 = vpop.f32.mrb[25].mxu0 }
 0x4f7   : > { %v3075_v49 = vmax.f32 %v3043_v40, 0.0  ;;  %v2923_v50 = vadd.f32 %v4332_v36, %v2697_v63  ;;  %v2917_v52 = vpop.f32.mrb[25].mxu1 }
 0x4f8   : > { %3816 = vst [vmem:[%s5614_s20 + $0x10] sm:$0xff] %v3748_v41   ;;  %v3074_v48 = vmax.f32 %v3042_v42, 0.0  ;;  %v2918_v55 = vadd.f32 %v2917_v52, %v2692_v53 }
 0x4f9   : > { %v3045_v56 = vadd.f32 %v2923_v50, %v2419_v45  ;;  %v2717_v60 = vpop.f32.mrb[26].mxu0 }
 0x4fa   : > { %v3753_v57 = vpack.c.bf16 %v3075_v49, %v3074_v48  ;;  %v3044_v58 = vadd.f32 %v2918_v55, %v2418_v51  ;;  %v4335_v44 = vpop.f32.mrb[26].mxu1  ;;  %v2719_v2 = vpop.f32.mrb[27].mxu0  ;;  %v2427_v51 = vld [vmem:[#allocation3 + $0x88] sm:$0xff] }
 0x4fb   : > { %v3077_v61 = vmax.f32 %v3045_v56, 0.0  ;;  %v2933_v62 = vadd.f32 %v4335_v44, %v2707_v29  ;;  %v2927_v1 = vpop.f32.mrb[27].mxu1  ;;  %v2428_v2 = vld [vmem:[#allocation3 + $0x90] sm:$0xff] }
 0x4fc   : > { %3817 = vst [vmem:[%s5614_s20 + $0x18] sm:$0xff] %v3753_v57   ;;  %v3076_v63 = vmax.f32 %v3044_v58, 0.0  ;;  %v2928_v3 = vadd.f32 %v2927_v1, %v2702_v12  ;;  %v2425_v12 = vld [vmem:[#allocation3 + $0x78] sm:$0xff] }
 0x4fd   : > { %v3047_v4 = vadd.f32 %v2933_v62, %v2421_v59  ;;  %v2722_v8 = vpop.f32.mrb[28].mxu0 }
 0x4fe   : > { %v3758_v5 = vpack.c.bf16 %v3077_v61, %v3076_v63  ;;  %v3046_v6 = vadd.f32 %v2928_v3, %v2420_v0  ;;  %v4338_v53 = vpop.f32.mrb[28].mxu1  ;;  %v2724_v14 = vpop.f32.mrb[29].mxu0  ;;  %v2429_v3 = vld [vmem:[#allocation3 + $0x98] sm:$0xff] }
 0x4ff   : > { %v3079_v9 = vmax.f32 %v3047_v4, 0.0  ;;  %v2943_v10 = vadd.f32 %v4338_v53, %v2717_v60  ;;  %v2937_v13 = vpop.f32.mrb[29].mxu1 }
 0x500   : > { %3818 = vst [vmem:[%s5614_s20 + $0x20] sm:$0xff] %v3758_v5   ;;  %v3078_v15 = vmax.f32 %v3046_v6, 0.0  ;;  %v2938_v16 = vadd.f32 %v2937_v13, %v2712_v46  ;;  %v2426_v46 = vld [vmem:[#allocation3 + $0x80] sm:$0xff] }
 0x501   : > { %v3049_v17 = vadd.f32 %v2943_v10, %v2423_v7  ;;  %v2727_v22 = vpop.f32.mrb[30].mxu0 }
 0x502   : > { %v3763_v18 = vpack.c.bf16 %v3079_v9, %v3078_v15  ;;  %v3048_v20 = vadd.f32 %v2938_v16, %v2422_v11  ;;  %v4341_v21 = vpop.f32.mrb[30].mxu1  ;;  %v2729_v25 = vpop.f32.mrb[31].mxu0  ;;  %v2435_v11 = vld [vmem:[#allocation3 + $0xc8] sm:$0xff]  ;;  %v2430_v16 = vld [vmem:[#allocation3 + $0xa0] sm:$0xff] }
 0x503   : > { %v3081_v24 = vmax.f32 %v3049_v17, 0.0  ;;  %v2953_v26 = vadd.f32 %v4341_v21, %v2727_v22  ;;  %v2947_v29 = vpop.f32.mrb[31].mxu1  ;;  %v2431_v25 = vld [vmem:[#allocation3 + $0xa8] sm:$0xff] }
 0x504   : > { %3819 = vst [vmem:[%s5614_s20 + $0x28] sm:$0xff] %v3763_v18   ;;  %v3080_v30 = vmax.f32 %v3048_v20, 0.0  ;;  %v2948_v32 = vadd.f32 %v2947_v29, %v2722_v8  ;;  %v2434_v20 = vld [vmem:[#allocation3 + $0xc0] sm:$0xff] }
 0x505   : > { %v3051_v33 = vadd.f32 %v2953_v26, %v2425_v12  ;;  %v2732_v40 = vpop.f32.mrb[32].mxu0 }
 0x506   : > { %v3768_v34 = vpack.c.bf16 %v3081_v24, %v3080_v30  ;;  %v3050_v37 = vadd.f32 %v2948_v32, %v2424_v27  ;;  %v4344_v38 = vpop.f32.mrb[32].mxu1  ;;  %v2734_v45 = vpop.f32.mrb[33].mxu0  ;;  %v2437_v32 = vld [vmem:[#allocation3 + $0xd8] sm:$0xff] }
 0x507   : > { %v3083_v41 = vmax.f32 %v3051_v33, 0.0  ;;  %v2957_v42 = vpop.f32.mrb[33].mxu1 }
 0x508   : > { %3820 = vst [vmem:[%s5614_s20 + $0x30] sm:$0xff] %v3768_v34   ;;  %v3082_v36 = vmax.f32 %v3050_v37, 0.0  ;;  %v2958_v49 = vadd.f32 %v2957_v42, %v2732_v40  ;;  %v2436_v40 = vld [vmem:[#allocation3 + $0xd0] sm:$0xff] }
 0x509   : > { %v2737_v52 = vpop.f32.mrb[34].mxu0 }
 0x50a   : > { %v3773_v50 = vpack.c.bf16 %v3083_v41, %v3082_v36  ;;  %v4347_v54 = vpop.f32.mrb[34].mxu1  ;;  %v3052_v48 = vadd.f32 %v2958_v49, %v2426_v46  ;;  %v2963_v55 = vadd.f32 %v4344_v38, %v2737_v52  ;;  %v2739_v57 = vpop.f32.mrb[35].mxu0  ;;  %v2439_v52 = vld [vmem:[#allocation3 + $0xe8] sm:$0xff] }
 0x50b   : > { %v2967_v56 = vpop.f32.mrb[35].mxu1  ;;  %v2438_v57 = vld [vmem:[#allocation3 + $0xe0] sm:$0xff] }
 0x50c   : > { %3821 = vst [vmem:[%s5614_s20 + $0x38] sm:$0xff] %v3773_v50   ;;  %v3053_v58 = vadd.f32 %v2963_v55, %v2427_v51  ;;  %v3084_v60 = vmax.f32 %v3052_v48, 0.0 }
 0x50d   : > { %v2742_v59 = vpop.f32.mrb[36].mxu0 }
 0x50e   : > { %v4350_v44 = vpop.f32.mrb[36].mxu1  ;;  %v3085_v61 = vmax.f32 %v3053_v58, 0.0  ;;  %v2968_v62 = vadd.f32 %v2967_v56, %v2742_v59  ;;  %v2744_v1 = vpop.f32.mrb[37].mxu0 }
 0x50f   : > { %v2977_v0 = vpop.f32.mrb[37].mxu1 }
 0x510   : > { %v3778_v63 = vpack.c.bf16 %v3085_v61, %v3084_v60  ;;  %v3054_v6 = vadd.f32 %v2968_v62, %v2428_v2  ;;  %v2433_v2 = vld [vmem:[#allocation3 + $0xb8] sm:$0xff] }
 0x511   : > { %v2747_v4 = vpop.f32.mrb[38].mxu0 }
 0x512   : > { %v6004_v5 = vpop.f32.mrb[38].mxu1  ;;  %3822 = vst [vmem:[%s5614_s20 + $0x40] sm:$0xff] %v3778_v63   ;;  %v2973_v7 = vadd.f32 %v4347_v54, %v2747_v4  ;;  %v2749_v8 = vpop.f32.mrb[39].mxu0  ;;  %v3086_v14 = vmax.f32 %v3054_v6, 0.0 }
 0x513   : > { %v2987_v53 = vpop.f32.mrb[39].mxu1  ;;  %v2440_v8 = vld [vmem:[#allocation3 + $0xf0] sm:$0xff] }
 0x514   : > { %v3055_v9 = vadd.f32 %v2973_v7, %v2429_v3  ;;  %v2441_v3 = vld [vmem:[#allocation3 + $0xf8] sm:$0xff] }
 0x515   : > { %v2752_v10 = vpop.f32.mrb[40].mxu0 }
 0x516   : > { %v4356_v13 = vpop.f32.mrb[40].mxu1  ;;  %v3087_v15 = vmax.f32 %v3055_v9, 0.0  ;;  %v2978_v17 = vadd.f32 %v2977_v0, %v2752_v10  ;;  %v2754_v12 = vpop.f32.mrb[41].mxu0 }
 0x517   : > { %v3003_v18 = vadd.f32 %v4356_v13, %v5982_v23  ;;  %v2997_v21 = vpop.f32.mrb[41].mxu1 }
 0x518   : > { %v2998_v22 = vadd.f32 %v2997_v21, %v5980_v19  ;;  %v3783_v24 = vpack.c.bf16 %v3087_v15, %v3086_v14  ;;  %v3056_v27 = vadd.f32 %v2978_v17, %v2430_v16 }
 0x519   : > { %v3061_v26 = vadd.f32 %v3003_v18, %v2435_v11  ;;  %v2757_v30 = vpop.f32.mrb[42].mxu0 }
 0x51a   : > { %v3060_v29 = vadd.f32 %v2998_v22, %v2434_v20  ;;  %v4359_v33 = vpop.f32.mrb[42].mxu1  ;;  %3823 = vst [vmem:[%s5614_s20 + $0x48] sm:$0xff] %v3783_v24   ;;  %v2983_v37 = vadd.f32 %v4350_v44, %v2757_v30  ;;  %v2759_v41 = vpop.f32.mrb[43].mxu0  ;;  %v3088_v46 = vmax.f32 %v3056_v27, 0.0  ;;  %v2432_v44 = vld [vmem:[#allocation3 + $0xb0] sm:$0xff] }
 0x51b   : > { %v3093_v34 = vmax.f32 %v3061_v26, 0.0  ;;  %v3013_v38 = vadd.f32 %v4359_v33, %v5986_v31  ;;  %v3007_v23 = vpop.f32.mrb[43].mxu1 }
 0x51c   : > { %v3092_v42 = vmax.f32 %v3060_v29, 0.0  ;;  %v3008_v45 = vadd.f32 %v3007_v23, %v5984_v28  ;;  %v3057_v19 = vadd.f32 %v2983_v37, %v2431_v25 }
 0x51d   : > { %v3063_v36 = vadd.f32 %v3013_v38, %v2437_v32  ;;  %v2762_v51 = vpop.f32.mrb[44].mxu0 }
 0x51e   : > { %v3798_v49 = vpack.c.bf16 %v3093_v34, %v3092_v42  ;;  %v3062_v50 = vadd.f32 %v3008_v45, %v2436_v40  ;;  %v4362_v54 = vpop.f32.mrb[44].mxu1  ;;  %v3089_v48 = vmax.f32 %v3057_v19, 0.0  ;;  %v2988_v56 = vadd.f32 %v2987_v53, %v2762_v51  ;;  %v2764_v59 = vpop.f32.mrb[45].mxu0 }
 0x51f   : > { %v3095_v55 = vmax.f32 %v3063_v36, 0.0  ;;  %v3023_v31 = vadd.f32 %v4362_v54, %v5990_v39  ;;  %v3017_v58 = vpop.f32.mrb[45].mxu1 }
 0x520   : > { %3826 = vst [vmem:[%s5614_s20 + $0x60] sm:$0xff] %v3798_v49   ;;  %v3094_v28 = vmax.f32 %v3062_v50, 0.0  ;;  %v3018_v60 = vadd.f32 %v3017_v58, %v5988_v35  ;;  %v3788_v61 = vpack.c.bf16 %v3089_v48, %v3088_v46  ;;  %v3058_v39 = vadd.f32 %v2988_v56, %v2432_v44 }
 0x521   : > { %v3065_v62 = vadd.f32 %v3023_v31, %v2439_v52  ;;  %v2767_v63 = vpop.f32.mrb[46].mxu0 }
 0x522   : > { %v3803_v0 = vpack.c.bf16 %v3095_v55, %v3094_v28  ;;  %v3064_v1 = vadd.f32 %v3018_v60, %v2438_v57  ;;  %v4365_v4 = vpop.f32.mrb[46].mxu1  ;;  %3824 = vst [vmem:[%s5614_s20 + $0x50] sm:$0xff] %v3788_v61   ;;  %v2993_v7 = vadd.f32 %v6004_v5, %v2767_v63  ;;  %v2769_v35 = vpop.f32.mrb[47].mxu0  ;;  %v3090_v17 = vmax.f32 %v3058_v39, 0.0 }
 0x523   : > { %v3097_v6 = vmax.f32 %v3065_v62, 0.0  ;;  %v3033_v53 = vadd.f32 %v4365_v4, %v5994_v47  ;;  %v3027_v9 = vpop.f32.mrb[47].mxu1 }
 0x524   : > { %3827 = vst [vmem:[%s5614_s20 + $0x68] sm:$0xff] %v3803_v0   ;;  %v3096_v10 = vmax.f32 %v3064_v1, 0.0  ;;  %v3028_v11 = vadd.f32 %v3027_v9, %v5992_v43  ;;  %v3059_v13 = vadd.f32 %v2993_v7, %v2433_v2 }
 0x525   : > { %v3067_v14 = vadd.f32 %v3033_v53, %v2441_v3 }
 0x526   : > { %v3808_v15 = vpack.c.bf16 %v3097_v6, %v3096_v10  ;;  %v3066_v16 = vadd.f32 %v3028_v11, %v2440_v8  ;;  %v3091_v18 = vmax.f32 %v3059_v13, 0.0 }
 0x527   : > { %v3099_v20 = vmax.f32 %v3067_v14, 0.0 }
 0x528   : > { %3828 = vst [vmem:[%s5614_s20 + $0x70] sm:$0xff] %v3808_v15   ;;  %v3098_v5 = vmax.f32 %v3066_v16, 0.0  ;;  %v3793_v21 = vpack.c.bf16 %v3091_v18, %v3090_v17 }
 0x52a   : > { %v3813_v47 = vpack.c.bf16 %v3099_v20, %v3098_v5  ;;  %3825 = vst [vmem:[%s5614_s20 + $0x58] sm:$0xff] %v3793_v21  }
 0x52c   : > { %3829 = vst [vmem:[%s5614_s20 + $0x78] sm:$0xff] %v3813_v47  }
 0x52d PF: > { %s6199_s18 = sld [smem:[#allocation30_spill]]  ;;  %s6201_s7 = sld [smem:[#allocation40_spill]] }
 0x52e   : > { %s6202_s16 = sld [smem:[#allocation43_spill]]  ;;  %s3274_s11 = sshll.u32 %s5614_s20, 4  ;;  %s6030_s11 = int_to_ptr.vmem [resolvable:$true] %s3274_s11 }
 0x52f   : > { %s6034_s25 = scalar_lea.sflag [#allocation6], %s378_s17  ;;  %s5016_s19 = scalar_lea.vmem %s6030_s11, 2048 }
 0x530   : > { %p5017_p0 = scmp.ne.s32.totalorder %s6030_s11, %s5016_s19  ;;  %s5200_s13 = smov [#allocation15]  }
 0x531   : > { %s5020_s28 = sshll.u32 %s5200_s13, 4  ;;  %s5021_s28 = int_to_ptr.vmem [resolvable:$false] %s5020_s28 }
 0x532   : > { %s5022_s21 = scalar_lea.vmem %s5021_s28, 4096  ;;  %p5023_p2 = scmp.lt.s32.totalorder %s6030_s11, %s5021_s28 }
 0x533   : > { %s3734_s27 = sshll.u32 %s6199_s18, 11  ;;  %p6203_p10 = scmp.ne.s32.totalorder %s6201_s7, 0 }
 0x534   : > { %s6027_s6 = scalar_lea.hbm %s6202_s16, %s3734_s27  ;;  %p5024_p5 = scmp.lt.s32.totalorder %s5022_s21, %s5016_s19 }
 0x535   : > { %p5018_p7 = pnand %p5017_p0, %p6203_p10 }
 0x536   : > { %p5025_p11 = por %p5024_p5, %p5023_p2 }
 0x537   : > { %p5019_p1 = pneg %p5018_p7 }
 0x539   : > { %p5026_p6 = pnand %p5025_p11, %p5019_p1 }
 0x53b   : > { %5029 = shalt.err (!%p5026_p6)
}
 0x53c   : > { %s5030_s17 = scalar_lea.hbm %s6027_s6, 2048  ;;  %s5034_s14 = scalar_lea.hbm %s6202_s16, 4096 }
 0x53d   : > { %p5031_p8 = scmp.ne.s32.totalorder %s6027_s6, %s5030_s17  ;;  %p5035_p3 = scmp.lt.u32.totalorder %s6027_s6, %s6202_s16 }
 0x53e   : > { %p5036_p12 = scmp.lt.u32.totalorder %s5034_s14, %s5030_s17  ;;  %p5038_p0 = scmp.lt.u32.totalorder %s5030_s17, %s6027_s6 }
 0x53f   : > { %p5032_p13 = pnand %p5031_p8, %p6203_p10 }
 0x540   : > { %p5037_p9 = por %p5036_p12, %p5035_p3 }
 0x541   : > { %p5033_p4 = pneg %p5032_p13 }
 0x542   : > { %p5039_p7 = por %p5038_p0, %p5037_p9 }
 0x544   : > { %p5040_p1 = pnand %p5039_p7, %p5033_p4 }
 0x546   : > { %5043 = shalt.err (!%p5040_p1)
}
 0x547   : > { %s5201_s24 = smov 64   ;;  %s5202_s27 = smov 4  }
 0x548   : > { %4537 = dma.vmem_to_hbm [thread:$0]  (%p6203_p10), %s6030_s11, 2048, %s6027_s6, %s6034_s25, %s5201_s24, %s5201_s24, %s5202_s27  }
 0x549 PF: > { %s6204_s15 = sld [smem:[#allocation25_spill]]  ;;  %p4559_p2 = scmp.ge.s32.totalorder %s5178_s10, 2 }
 0x54a   : > { %s6205_s22 = sld [smem:[#allocation41_spill]] }
 0x54f   : > { %s3289_s19 = sand.u32 1, %s6204_s15  }
 0x550   : > { %p6206_p5 = scmp.ne.s32.totalorder %s6205_s22, 0  ;;  %s3290_s13 = scalar_lea.sflag [#allocation6], %s3289_s19 }
 0x552   : > { %p4550_p11 = pnand %p4559_p2, %p6206_p5 }
 0x554   : > { %5121 = dma.done.wait (!%p4550_p11), %s3290_s13, 2048  }
 0x555   : > { %5123 = vsyncadd (!%p4550_p11), %s3290_s13, 4294965248  ;;  %s27_s10 = sadd.s32 1, %s5178_s10   ;;  %s6208_s21 = sld [smem:[#allocation26_spill]] }
 0x556   : > { %p6063_p6 = scmp.ge.s32.totalorder %s27_s10, 6   ;;  %s6209_s7 = sld [smem:[#allocation38_spill]] }
 0x557   : > { %s6210_s24 = sld [smem:[#allocation27_spill]]  ;;  %s6211_s6 = sld [smem:[#allocation35_spill]] }
 0x558   : > { %s6212_s27 = sld [smem:[#allocation28_spill]]  ;;  %s6213_s11 = sld [smem:[#allocation36_spill]] }
 0x559   : > { %s6214_s17 = sld [smem:[#allocation32_spill]]  ;;  %s6215_s20 = sld [smem:[#allocation33_spill]] }
 0x55a   : > { %s6217_s22 = smov %s5134_s23  ;;  %s6219_s25 = smov %s5146_s26 }
 0x55b   : > { %s6221_s28 = smov %s5158_s29  ;;  %s6223_s30 = smov %s5170_s8 }
 0x55c   : > { %s6218_s23 = smov %s6209_s7  ;;  %s6224_s7 = smov %s5174_s9 }
 0x55d   : > { %s6220_s26 = smov %s6211_s6  ;;  %26 = sbr.rel (!%p6063_p6) target bundleno = 16 (0x10), region = 140 }
 0x55e   : > { %s6222_s29 = smov %s6213_s11 }
 0x55f   : > { %s6225_s8 = smov %s6214_s17  ;;  %s6226_s9 = smov %s6215_s20 }
 0x564   :  { %3295 = vsyncpa [#allocation5], 1 }
 0x565   :  { %3297 = vsyncpa [#allocation5 + $0x1], 1 }
 0x566   :  { %3298 = vsyncpa [#allocation8], 1 }
 0x567   :  { %3300 = vsyncpa [#allocation8 + $0x1], 1 }
 0x568   :  { %3301 = vsyncpa [#allocation11], 1 }
 0x569   :  { %3302 = vsyncpa [#allocation14], 1 }
 0x56a   :  { %3303 = vsyncpa [#allocation6], 1 }
 0x56b   :  { %3305 = vsyncpa [#allocation6 + $0x1], 1 }

</bundles_post_ra>
